<compile_context>
chip_gen: v5e
topology: v5e:2x2
jax: 0.10.0
libtpu: 0.0.40
codegen_flags: <defaults>
</compile_context>

<pallas_src>
import math

import numpy as np
import jax
import jax.numpy as jnp
from jax.experimental import pallas as pl
from jax.experimental.pallas import tpu as pltpu


# ------------------------- fused Pallas kernel -------------------------

def _net_fused_kernel(x_ref, w1_ref, b1_ref, s1_ref, w2_ref, b2_ref, s2_ref,
                      wf1_ref, bf1_ref, wf2_ref, bf2_ref, o_ref):
    f32 = jnp.float32

    def toeplitz_conv(inp, w_ref, out_rows):
        # Returns max over the two width-pool phases of the conv pre-activation.
        # w_ref: (2 phases, 5 height taps, K, N_out);  inp: (rows, K).
        phases = []
        for b in range(2):
            acc = None
            for i in range(5):
                t = jnp.dot(inp[i:i + out_rows, :], w_ref[b, i],
                            preferred_element_type=f32)
                acc = t if acc is None else acc + t
            phases.append(acc)
        return jnp.maximum(phases[0], phases[1])

    x = x_ref[0]                                                  # (28, 28), IC = 1

    # ---- conv1 (5x5, 1->20) + bias + ReLU + 2x2 max-pool --------------------
    h1 = jnp.maximum(toeplitz_conv(x, w1_ref, 24) + b1_ref[...], 0.0)      # (24, 240)
    # Height half of the pool: exact even/odd row selection (0/1 matrices) + max.
    pool1 = jnp.maximum(jnp.dot(s1_ref[0], h1, preferred_element_type=f32),
                        jnp.dot(s1_ref[1], h1, preferred_element_type=f32))  # (12, 240)

    # ---- conv2 (5x5, 20->50) + bias + ReLU + 2x2 max-pool -------------------
    h2 = jnp.maximum(toeplitz_conv(pool1, w2_ref, 8) + b2_ref[...], 0.0)   # (8, 200)
    pool2 = jnp.maximum(jnp.dot(s2_ref[0], h2, preferred_element_type=f32),
                        jnp.dot(s2_ref[1], h2, preferred_element_type=f32))  # (4, 200)

    # ---- fc1 (800 -> 500) + ReLU (NCHW flatten order folded into wf1_ref) ---
    acc = None
    for r in range(4):
        t = jnp.dot(pool2[r:r + 1, :], wf1_ref[r], preferred_element_type=f32)
        acc = t if acc is None else acc + t
    h3 = jnp.maximum(acc + bf1_ref[...], 0.0)                              # (1, 500)

    # ---- fc2 (500 -> 10) + log_softmax(dim=1) --------------------------------
    logits = jnp.dot(h3, wf2_ref[...], preferred_element_type=f32) + bf2_ref[...]
    m = jnp.max(logits, axis=-1, keepdims=True)
    s = logits - m
    lse = jnp.log(jnp.sum(jnp.exp(s), axis=-1, keepdims=True))
    o_ref[0] = (s - lse).astype(o_ref.dtype)


# ------------------------- wrapper -------------------------

def net_forward(x_nchw, pk):
    """Fused forward. x_nchw: (N, 1, 28, 28) f32 -> (N, 10) log-probs."""
    N = x_nchw.shape[0]
    x = x_nchw.reshape(N, 28, 28)

    def full(a):  # whole-array, VMEM-resident (constant block index across the grid)
        return pl.BlockSpec(a.shape, lambda n, _nd=a.ndim: (0,) * _nd)

    out = pl.pallas_call(
        _net_fused_kernel,
        out_shape=jax.ShapeDtypeStruct((N, 1, 10), jnp.float32),
        grid=(N,),
        in_specs=[
            pl.BlockSpec((1, 28, 28), lambda n: (n, 0, 0)),
            full(pk["W1b"]), full(pk["b1t"]), full(pk["Se1"]),
            full(pk["W2b"]), full(pk["b2t"]), full(pk["Se2"]),
            full(pk["Wf1p"]), full(pk["bf1"]), full(pk["Wf2"]), full(pk["bf2"]),
        ],
        out_specs=pl.BlockSpec((1, 1, 10), lambda n: (n, 0, 0)),
        compiler_params=pltpu.CompilerParams(
            dimension_semantics=("parallel",),
            vmem_limit_bytes=32 * 1024 * 1024),
    )(x, pk["W1b"], pk["b1t"], pk["Se1"], pk["W2b"], pk["b2t"], pk["Se2"],
      pk["Wf1p"], pk["bf1"], pk["Wf2"], pk["bf2"])
    return out.reshape(N, 10)


# ------------------------- deterministic params + one-time packing -------------------------

def init_params(key):
    def u(k, shape, bound):
        return jax.random.uniform(k, shape, jnp.float32, -bound, bound)
    ks = jax.random.split(key, 8)
    p = {}
    b = 1.0 / math.sqrt(1 * 5 * 5)
    p["w1"], p["b1"] = u(ks[0], (20, 1, 5, 5), b), u(ks[1], (20,), b)
    b = 1.0 / math.sqrt(20 * 5 * 5)
    p["w2"], p["b2"] = u(ks[2], (50, 20, 5, 5), b), u(ks[3], (50,), b)
    b = 1.0 / math.sqrt(800)
    p["wf1"], p["bf1"] = u(ks[4], (500, 800), b), u(ks[5], (500,), b)
    b = 1.0 / math.sqrt(500)
    p["wf2"], p["bf2"] = u(ks[6], (10, 500), b), u(ks[7], (10,), b)
    return p


def pack_params(p):
    """One-time host-side repack of PyTorch-layout weights into the fused kernel's
    matmul layout (Toeplitz width folding + width-pool phases, even/odd pool
    selectors, NCHW-flatten permutation for fc1, pre-transposed fc weights)."""
    w1 = np.asarray(p["w1"], np.float32)    # (20, 1, 5, 5)   (OC, IC, KH, KW)
    b1 = np.asarray(p["b1"], np.float32)
    w2 = np.asarray(p["w2"], np.float32)    # (50, 20, 5, 5)
    b2 = np.asarray(p["b2"], np.float32)
    wf1 = np.asarray(p["wf1"], np.float32)  # (500, 800)
    bf1 = np.asarray(p["bf1"], np.float32)
    wf2 = np.asarray(p["wf2"], np.float32)  # (10, 500)
    bf2 = np.asarray(p["bf2"], np.float32)

    # conv1:  preact_b[oh, owp*20+oc] = sum_i  x[oh+i, :] @ W1b[b, i]    (ow = 2*owp + b)
    W1b = np.zeros((2, 5, 28, 12 * 20), np.float32)
    for b in range(2):
        for i in range(5):
            for owp in range(12):
                for j in range(5):
                    c = 2 * owp + b + j
                    W1b[b, i, c, owp * 20:(owp + 1) * 20] = w1[:, 0, i, j]
    b1t = np.tile(b1, 12)[None, :]                                   # (1, 240)

    # conv2:  preact_b[oh2, ow2p*50+oc2] = sum_i  pool1[oh2+i, :] @ W2b[b, i]
    #         (pool1 cols = owp*20+oc, ow2 = 2*ow2p + b)
    W2b = np.zeros((2, 5, 12 * 20, 4 * 50), np.float32)
    for b in range(2):
        for i in range(5):
            for ow2p in range(4):
                for j in range(5):
                    owp = 2 * ow2p + b + j
                    W2b[b, i, owp * 20:(owp + 1) * 20,
                        ow2p * 50:(ow2p + 1) * 50] = w2[:, :, i, j].T
    b2t = np.tile(b2, 4)[None, :]                                    # (1, 200)

    # Even/odd row selectors for the height half of the 2x2 max-pools.
    Se1 = np.zeros((2, 12, 24), np.float32)
    Se1[0, np.arange(12), 2 * np.arange(12)] = 1.0
    Se1[1, np.arange(12), 2 * np.arange(12) + 1] = 1.0
    Se2 = np.zeros((2, 4, 8), np.float32)
    Se2[0, np.arange(4), 2 * np.arange(4)] = 1.0
    Se2[1, np.arange(4), 2 * np.arange(4) + 1] = 1.0

    # fc1: permute the 800 inputs from NCHW flatten order (oc*16 + oh*4 + ow)
    # to the kernel's (oh, ow*50 + oc) layout; fc2: pre-transpose.
    Wf1p = wf1.reshape(500, 50, 4, 4).transpose(2, 3, 1, 0).reshape(4, 200, 500)

    return {
        "W1b": jnp.asarray(W1b), "b1t": jnp.asarray(b1t), "Se1": jnp.asarray(Se1),
        "W2b": jnp.asarray(W2b), "b2t": jnp.asarray(b2t), "Se2": jnp.asarray(Se2),
        "Wf1p": jnp.asarray(np.ascontiguousarray(Wf1p)),
        "bf1": jnp.asarray(bf1[None, :]),
        "Wf2": jnp.asarray(np.ascontiguousarray(wf2.T)),
        "bf2": jnp.asarray(bf2[None, :]),
    }


# ------------------------- pure-JAX reference (for verification) -------------------------

def reference_forward(x, p):
    dn = ("NCHW", "OIHW", "NCHW")
    y = jax.lax.conv_general_dilated(x, p["w1"], (1, 1), "VALID", dimension_numbers=dn)
    y = jax.nn.relu(y + p["b1"][None, :, None, None])
    y = jax.lax.reduce_window(y, -jnp.inf, jax.lax.max, (1, 1, 2, 2), (1, 1, 2, 2), "VALID")
    y = jax.lax.conv_general_dilated(y, p["w2"], (1, 1), "VALID", dimension_numbers=dn)
    y = jax.nn.relu(y + p["b2"][None, :, None, None])
    y = jax.lax.reduce_window(y, -jnp.inf, jax.lax.max, (1, 1, 2, 2), (1, 1, 2, 2), "VALID")
    y = y.reshape(-1, 4 * 4 * 50)
    y = jax.nn.relu(y @ p["wf1"].T + p["bf1"])
    y = y @ p["wf2"].T + p["bf2"]
    return jax.nn.log_softmax(y, axis=1)


if __name__ == "__main__":
    key = jax.random.PRNGKey(0)
    k_x, k_p = jax.random.split(key)
    # MNIST-shaped input is required by the architecture (fc1 expects 4*4*50 = 800).
    x = jax.random.normal(k_x, (2, 1, 28, 28), jnp.float32)
    params = init_params(k_p)
    packed = pack_params(params)      # one-time host-side weight repacking

    out = jax.jit(net_forward)(x, packed)
    out = jax.block_until_ready(out)

    ref = jax.block_until_ready(reference_forward(x, params))
    assert out.shape == (2, 10) and out.dtype == jnp.float32
    assert jnp.allclose(out, ref, atol=1e-4, rtol=1e-4), "mismatch vs. pure-JAX reference"

    print("KERNEL_OK")
</pallas_src>

<mosaic_0001>
module attributes {stable_mosaic.version = 11 : i64} {
  func.func @_net_fused_kernel(%arg0: i32, %arg1: memref<1x28x28xf32, #tpu.memory_space<vmem>>, %arg2: memref<2x5x28x240xf32, #tpu.memory_space<vmem>>, %arg3: memref<1x240xf32, #tpu.memory_space<vmem>>, %arg4: memref<2x12x24xf32, #tpu.memory_space<vmem>>, %arg5: memref<2x5x240x200xf32, #tpu.memory_space<vmem>>, %arg6: memref<1x200xf32, #tpu.memory_space<vmem>>, %arg7: memref<2x4x8xf32, #tpu.memory_space<vmem>>, %arg8: memref<4x200x500xf32, #tpu.memory_space<vmem>>, %arg9: memref<1x500xf32, #tpu.memory_space<vmem>>, %arg10: memref<500x10xf32, #tpu.memory_space<vmem>>, %arg11: memref<1x10xf32, #tpu.memory_space<vmem>>, %arg12: memref<1x1x10xf32, #tpu.memory_space<vmem>>) attributes {dimension_semantics = [#tpu.dimension_semantics<parallel>], iteration_bounds = array<i64: 2>, scalar_prefetch = 0 : i64, scratch_operands = 0 : i64, tpu.core_type = #tpu.core_type<tc>, window_params = [{transform_indices = @transform_0, window_bounds = array<i64: 1, 28, 28>}, {pipeline_mode = #tpu.pipeline_mode<synchronous>, transform_indices = @transform_1, window_bounds = array<i64: 2, 5, 28, 240>}, {pipeline_mode = #tpu.pipeline_mode<synchronous>, transform_indices = @transform_2, window_bounds = array<i64: 1, 240>}, {pipeline_mode = #tpu.pipeline_mode<synchronous>, transform_indices = @transform_3, window_bounds = array<i64: 2, 12, 24>}, {pipeline_mode = #tpu.pipeline_mode<synchronous>, transform_indices = @transform_4, window_bounds = array<i64: 2, 5, 240, 200>}, {pipeline_mode = #tpu.pipeline_mode<synchronous>, transform_indices = @transform_5, window_bounds = array<i64: 1, 200>}, {pipeline_mode = #tpu.pipeline_mode<synchronous>, transform_indices = @transform_6, window_bounds = array<i64: 2, 4, 8>}, {pipeline_mode = #tpu.pipeline_mode<synchronous>, transform_indices = @transform_7, window_bounds = array<i64: 4, 200, 500>}, {pipeline_mode = #tpu.pipeline_mode<synchronous>, transform_indices = @transform_8, window_bounds = array<i64: 1, 500>}, {pipeline_mode = #tpu.pipeline_mode<synchronous>, transform_indices = @transform_9, window_bounds = array<i64: 500, 10>}, {pipeline_mode = #tpu.pipeline_mode<synchronous>, transform_indices = @transform_10, window_bounds = array<i64: 1, 10>}, {transform_indices = @transform_11, window_bounds = array<i64: 1, 1, 10>}]} {
    %c0 = arith.constant 0 : index
    %c0_0 = arith.constant 0 : index
    %c0_1 = arith.constant 0 : index
    %0 = vector.load %arg1[%c0, %c0_0, %c0_1] : memref<1x28x28xf32, #tpu.memory_space<vmem>>, vector<1x28x28xf32>
    %1 = vector.shape_cast %0 : vector<1x28x28xf32> to vector<28x28xf32>
    %2 = vector.extract_strided_slice %1 {offsets = [0, 0], sizes = [24, 28], strides = [1, 1]} : vector<28x28xf32> to vector<24x28xf32>
    %c0_2 = arith.constant 0 : index
    %c0_3 = arith.constant 0 : index
    %c0_4 = arith.constant 0 : index
    %c0_5 = arith.constant 0 : index
    %3 = vector.load %arg2[%c0_2, %c0_3, %c0_4, %c0_5] : memref<2x5x28x240xf32, #tpu.memory_space<vmem>>, vector<1x1x28x240xf32>
    %4 = vector.shape_cast %3 : vector<1x1x28x240xf32> to vector<28x240xf32>
    %cst = arith.constant dense<0.000000e+00> : vector<24x240xf32>
    %5 = tpu.matmul %2, %4, %cst {dimension_numbers = #tpu.dot_dimension_numbers<[1], [0], [0], [1], [0, 0, 1, 1], [], []>} : vector<24x28xf32>, vector<28x240xf32>, vector<24x240xf32> -> vector<24x240xf32>
    %6 = vector.extract_strided_slice %1 {offsets = [1, 0], sizes = [24, 28], strides = [1, 1]} : vector<28x28xf32> to vector<24x28xf32>
    %c0_6 = arith.constant 0 : index
    %c1 = arith.constant 1 : index
    %c0_7 = arith.constant 0 : index
    %c0_8 = arith.constant 0 : index
    %7 = vector.load %arg2[%c0_6, %c1, %c0_7, %c0_8] : memref<2x5x28x240xf32, #tpu.memory_space<vmem>>, vector<1x1x28x240xf32>
    %8 = vector.shape_cast %7 : vector<1x1x28x240xf32> to vector<28x240xf32>
    %cst_9 = arith.constant dense<0.000000e+00> : vector<24x240xf32>
    %9 = tpu.matmul %6, %8, %cst_9 {dimension_numbers = #tpu.dot_dimension_numbers<[1], [0], [0], [1], [0, 0, 1, 1], [], []>} : vector<24x28xf32>, vector<28x240xf32>, vector<24x240xf32> -> vector<24x240xf32>
    %10 = arith.addf %5, %9 : vector<24x240xf32>
    %11 = vector.extract_strided_slice %1 {offsets = [2, 0], sizes = [24, 28], strides = [1, 1]} : vector<28x28xf32> to vector<24x28xf32>
    %c0_10 = arith.constant 0 : index
    %c2 = arith.constant 2 : index
    %c0_11 = arith.constant 0 : index
    %c0_12 = arith.constant 0 : index
    %12 = vector.load %arg2[%c0_10, %c2, %c0_11, %c0_12] : memref<2x5x28x240xf32, #tpu.memory_space<vmem>>, vector<1x1x28x240xf32>
    %13 = vector.shape_cast %12 : vector<1x1x28x240xf32> to vector<28x240xf32>
    %cst_13 = arith.constant dense<0.000000e+00> : vector<24x240xf32>
    %14 = tpu.matmul %11, %13, %cst_13 {dimension_numbers = #tpu.dot_dimension_numbers<[1], [0], [0], [1], [0, 0, 1, 1], [], []>} : vector<24x28xf32>, vector<28x240xf32>, vector<24x240xf32> -> vector<24x240xf32>
    %15 = arith.addf %10, %14 : vector<24x240xf32>
    %16 = vector.extract_strided_slice %1 {offsets = [3, 0], sizes = [24, 28], strides = [1, 1]} : vector<28x28xf32> to vector<24x28xf32>
    %c0_14 = arith.constant 0 : index
    %c3 = arith.constant 3 : index
    %c0_15 = arith.constant 0 : index
    %c0_16 = arith.constant 0 : index
    %17 = vector.load %arg2[%c0_14, %c3, %c0_15, %c0_16] : memref<2x5x28x240xf32, #tpu.memory_space<vmem>>, vector<1x1x28x240xf32>
    %18 = vector.shape_cast %17 : vector<1x1x28x240xf32> to vector<28x240xf32>
    %cst_17 = arith.constant dense<0.000000e+00> : vector<24x240xf32>
    %19 = tpu.matmul %16, %18, %cst_17 {dimension_numbers = #tpu.dot_dimension_numbers<[1], [0], [0], [1], [0, 0, 1, 1], [], []>} : vector<24x28xf32>, vector<28x240xf32>, vector<24x240xf32> -> vector<24x240xf32>
    %20 = arith.addf %15, %19 : vector<24x240xf32>
    %21 = vector.extract_strided_slice %1 {offsets = [4, 0], sizes = [24, 28], strides = [1, 1]} : vector<28x28xf32> to vector<24x28xf32>
    %c0_18 = arith.constant 0 : index
    %c4 = arith.constant 4 : index
    %c0_19 = arith.constant 0 : index
    %c0_20 = arith.constant 0 : index
    %22 = vector.load %arg2[%c0_18, %c4, %c0_19, %c0_20] : memref<2x5x28x240xf32, #tpu.memory_space<vmem>>, vector<1x1x28x240xf32>
    %23 = vector.shape_cast %22 : vector<1x1x28x240xf32> to vector<28x240xf32>
    %cst_21 = arith.constant dense<0.000000e+00> : vector<24x240xf32>
    %24 = tpu.matmul %21, %23, %cst_21 {dimension_numbers = #tpu.dot_dimension_numbers<[1], [0], [0], [1], [0, 0, 1, 1], [], []>} : vector<24x28xf32>, vector<28x240xf32>, vector<24x240xf32> -> vector<24x240xf32>
    %25 = arith.addf %20, %24 : vector<24x240xf32>
    %26 = vector.extract_strided_slice %1 {offsets = [0, 0], sizes = [24, 28], strides = [1, 1]} : vector<28x28xf32> to vector<24x28xf32>
    %c1_22 = arith.constant 1 : index
    %c0_23 = arith.constant 0 : index
    %c0_24 = arith.constant 0 : index
    %c0_25 = arith.constant 0 : index
    %27 = vector.load %arg2[%c1_22, %c0_23, %c0_24, %c0_25] : memref<2x5x28x240xf32, #tpu.memory_space<vmem>>, vector<1x1x28x240xf32>
    %28 = vector.shape_cast %27 : vector<1x1x28x240xf32> to vector<28x240xf32>
    %cst_26 = arith.constant dense<0.000000e+00> : vector<24x240xf32>
    %29 = tpu.matmul %26, %28, %cst_26 {dimension_numbers = #tpu.dot_dimension_numbers<[1], [0], [0], [1], [0, 0, 1, 1], [], []>} : vector<24x28xf32>, vector<28x240xf32>, vector<24x240xf32> -> vector<24x240xf32>
    %30 = vector.extract_strided_slice %1 {offsets = [1, 0], sizes = [24, 28], strides = [1, 1]} : vector<28x28xf32> to vector<24x28xf32>
    %c1_27 = arith.constant 1 : index
    %c1_28 = arith.constant 1 : index
    %c0_29 = arith.constant 0 : index
    %c0_30 = arith.constant 0 : index
    %31 = vector.load %arg2[%c1_27, %c1_28, %c0_29, %c0_30] : memref<2x5x28x240xf32, #tpu.memory_space<vmem>>, vector<1x1x28x240xf32>
    %32 = vector.shape_cast %31 : vector<1x1x28x240xf32> to vector<28x240xf32>
    %cst_31 = arith.constant dense<0.000000e+00> : vector<24x240xf32>
    %33 = tpu.matmul %30, %32, %cst_31 {dimension_numbers = #tpu.dot_dimension_numbers<[1], [0], [0], [1], [0, 0, 1, 1], [], []>} : vector<24x28xf32>, vector<28x240xf32>, vector<24x240xf32> -> vector<24x240xf32>
    %34 = arith.addf %29, %33 : vector<24x240xf32>
    %35 = vector.extract_strided_slice %1 {offsets = [2, 0], sizes = [24, 28], strides = [1, 1]} : vector<28x28xf32> to vector<24x28xf32>
    %c1_32 = arith.constant 1 : index
    %c2_33 = arith.constant 2 : index
    %c0_34 = arith.constant 0 : index
    %c0_35 = arith.constant 0 : index
    %36 = vector.load %arg2[%c1_32, %c2_33, %c0_34, %c0_35] : memref<2x5x28x240xf32, #tpu.memory_space<vmem>>, vector<1x1x28x240xf32>
    %37 = vector.shape_cast %36 : vector<1x1x28x240xf32> to vector<28x240xf32>
    %cst_36 = arith.constant dense<0.000000e+00> : vector<24x240xf32>
    %38 = tpu.matmul %35, %37, %cst_36 {dimension_numbers = #tpu.dot_dimension_numbers<[1], [0], [0], [1], [0, 0, 1, 1], [], []>} : vector<24x28xf32>, vector<28x240xf32>, vector<24x240xf32> -> vector<24x240xf32>
    %39 = arith.addf %34, %38 : vector<24x240xf32>
    %40 = vector.extract_strided_slice %1 {offsets = [3, 0], sizes = [24, 28], strides = [1, 1]} : vector<28x28xf32> to vector<24x28xf32>
    %c1_37 = arith.constant 1 : index
    %c3_38 = arith.constant 3 : index
    %c0_39 = arith.constant 0 : index
    %c0_40 = arith.constant 0 : index
    %41 = vector.load %arg2[%c1_37, %c3_38, %c0_39, %c0_40] : memref<2x5x28x240xf32, #tpu.memory_space<vmem>>, vector<1x1x28x240xf32>
    %42 = vector.shape_cast %41 : vector<1x1x28x240xf32> to vector<28x240xf32>
    %cst_41 = arith.constant dense<0.000000e+00> : vector<24x240xf32>
    %43 = tpu.matmul %40, %42, %cst_41 {dimension_numbers = #tpu.dot_dimension_numbers<[1], [0], [0], [1], [0, 0, 1, 1], [], []>} : vector<24x28xf32>, vector<28x240xf32>, vector<24x240xf32> -> vector<24x240xf32>
    %44 = arith.addf %39, %43 : vector<24x240xf32>
    %45 = vector.extract_strided_slice %1 {offsets = [4, 0], sizes = [24, 28], strides = [1, 1]} : vector<28x28xf32> to vector<24x28xf32>
    %c1_42 = arith.constant 1 : index
    %c4_43 = arith.constant 4 : index
    %c0_44 = arith.constant 0 : index
    %c0_45 = arith.constant 0 : index
    %46 = vector.load %arg2[%c1_42, %c4_43, %c0_44, %c0_45] : memref<2x5x28x240xf32, #tpu.memory_space<vmem>>, vector<1x1x28x240xf32>
    %47 = vector.shape_cast %46 : vector<1x1x28x240xf32> to vector<28x240xf32>
    %cst_46 = arith.constant dense<0.000000e+00> : vector<24x240xf32>
    %48 = tpu.matmul %45, %47, %cst_46 {dimension_numbers = #tpu.dot_dimension_numbers<[1], [0], [0], [1], [0, 0, 1, 1], [], []>} : vector<24x28xf32>, vector<28x240xf32>, vector<24x240xf32> -> vector<24x240xf32>
    %49 = arith.addf %44, %48 : vector<24x240xf32>
    %50 = arith.maximumf %25, %49 : vector<24x240xf32>
    %c0_47 = arith.constant 0 : index
    %c0_48 = arith.constant 0 : index
    %51 = vector.load %arg3[%c0_47, %c0_48] : memref<1x240xf32, #tpu.memory_space<vmem>>, vector<1x240xf32>
    %52 = vector.broadcast %51 : vector<1x240xf32> to vector<24x240xf32>
    %53 = arith.addf %50, %52 : vector<24x240xf32>
    %cst_49 = arith.constant 0.000000e+00 : f32
    %54 = vector.broadcast %cst_49 : f32 to vector<24x240xf32>
    %55 = arith.maximumf %53, %54 : vector<24x240xf32>
    %c0_50 = arith.constant 0 : index
    %c0_51 = arith.constant 0 : index
    %c0_52 = arith.constant 0 : index
    %56 = vector.load %arg4[%c0_50, %c0_51, %c0_52] : memref<2x12x24xf32, #tpu.memory_space<vmem>>, vector<1x12x24xf32>
    %57 = vector.shape_cast %56 : vector<1x12x24xf32> to vector<12x24xf32>
    %cst_53 = arith.constant dense<0.000000e+00> : vector<12x240xf32>
    %58 = tpu.matmul %57, %55, %cst_53 {dimension_numbers = #tpu.dot_dimension_numbers<[1], [0], [0], [1], [0, 0, 1, 1], [], []>} : vector<12x24xf32>, vector<24x240xf32>, vector<12x240xf32> -> vector<12x240xf32>
    %c1_54 = arith.constant 1 : index
    %c0_55 = arith.constant 0 : index
    %c0_56 = arith.constant 0 : index
    %59 = vector.load %arg4[%c1_54, %c0_55, %c0_56] : memref<2x12x24xf32, #tpu.memory_space<vmem>>, vector<1x12x24xf32>
    %60 = vector.shape_cast %59 : vector<1x12x24xf32> to vector<12x24xf32>
    %cst_57 = arith.constant dense<0.000000e+00> : vector<12x240xf32>
    %61 = tpu.matmul %60, %55, %cst_57 {dimension_numbers = #tpu.dot_dimension_numbers<[1], [0], [0], [1], [0, 0, 1, 1], [], []>} : vector<12x24xf32>, vector<24x240xf32>, vector<12x240xf32> -> vector<12x240xf32>
    %62 = arith.maximumf %58, %61 : vector<12x240xf32>
    %63 = vector.extract_strided_slice %62 {offsets = [0, 0], sizes = [8, 240], strides = [1, 1]} : vector<12x240xf32> to vector<8x240xf32>
    %c0_58 = arith.constant 0 : index
    %c0_59 = arith.constant 0 : index
    %c0_60 = arith.constant 0 : index
    %c0_61 = arith.constant 0 : index
    %64 = vector.load %arg5[%c0_58, %c0_59, %c0_60, %c0_61] : memref<2x5x240x200xf32, #tpu.memory_space<vmem>>, vector<1x1x240x200xf32>
    %65 = vector.shape_cast %64 : vector<1x1x240x200xf32> to vector<240x200xf32>
    %cst_62 = arith.constant dense<0.000000e+00> : vector<8x200xf32>
    %66 = tpu.matmul %63, %65, %cst_62 {dimension_numbers = #tpu.dot_dimension_numbers<[1], [0], [0], [1], [0, 0, 1, 1], [], []>} : vector<8x240xf32>, vector<240x200xf32>, vector<8x200xf32> -> vector<8x200xf32>
    %67 = vector.extract_strided_slice %62 {offsets = [1, 0], sizes = [8, 240], strides = [1, 1]} : vector<12x240xf32> to vector<8x240xf32>
    %c0_63 = arith.constant 0 : index
    %c1_64 = arith.constant 1 : index
    %c0_65 = arith.constant 0 : index
    %c0_66 = arith.constant 0 : index
    %68 = vector.load %arg5[%c0_63, %c1_64, %c0_65, %c0_66] : memref<2x5x240x200xf32, #tpu.memory_space<vmem>>, vector<1x1x240x200xf32>
    %69 = vector.shape_cast %68 : vector<1x1x240x200xf32> to vector<240x200xf32>
    %cst_67 = arith.constant dense<0.000000e+00> : vector<8x200xf32>
    %70 = tpu.matmul %67, %69, %cst_67 {dimension_numbers = #tpu.dot_dimension_numbers<[1], [0], [0], [1], [0, 0, 1, 1], [], []>} : vector<8x240xf32>, vector<240x200xf32>, vector<8x200xf32> -> vector<8x200xf32>
    %71 = arith.addf %66, %70 : vector<8x200xf32>
    %72 = vector.extract_strided_slice %62 {offsets = [2, 0], sizes = [8, 240], strides = [1, 1]} : vector<12x240xf32> to vector<8x240xf32>
    %c0_68 = arith.constant 0 : index
    %c2_69 = arith.constant 2 : index
    %c0_70 = arith.constant 0 : index
    %c0_71 = arith.constant 0 : index
    %73 = vector.load %arg5[%c0_68, %c2_69, %c0_70, %c0_71] : memref<2x5x240x200xf32, #tpu.memory_space<vmem>>, vector<1x1x240x200xf32>
    %74 = vector.shape_cast %73 : vector<1x1x240x200xf32> to vector<240x200xf32>
    %cst_72 = arith.constant dense<0.000000e+00> : vector<8x200xf32>
    %75 = tpu.matmul %72, %74, %cst_72 {dimension_numbers = #tpu.dot_dimension_numbers<[1], [0], [0], [1], [0, 0, 1, 1], [], []>} : vector<8x240xf32>, vector<240x200xf32>, vector<8x200xf32> -> vector<8x200xf32>
    %76 = arith.addf %71, %75 : vector<8x200xf32>
    %77 = vector.extract_strided_slice %62 {offsets = [3, 0], sizes = [8, 240], strides = [1, 1]} : vector<12x240xf32> to vector<8x240xf32>
    %c0_73 = arith.constant 0 : index
    %c3_74 = arith.constant 3 : index
    %c0_75 = arith.constant 0 : index
    %c0_76 = arith.constant 0 : index
    %78 = vector.load %arg5[%c0_73, %c3_74, %c0_75, %c0_76] : memref<2x5x240x200xf32, #tpu.memory_space<vmem>>, vector<1x1x240x200xf32>
    %79 = vector.shape_cast %78 : vector<1x1x240x200xf32> to vector<240x200xf32>
    %cst_77 = arith.constant dense<0.000000e+00> : vector<8x200xf32>
    %80 = tpu.matmul %77, %79, %cst_77 {dimension_numbers = #tpu.dot_dimension_numbers<[1], [0], [0], [1], [0, 0, 1, 1], [], []>} : vector<8x240xf32>, vector<240x200xf32>, vector<8x200xf32> -> vector<8x200xf32>
    %81 = arith.addf %76, %80 : vector<8x200xf32>
    %82 = vector.extract_strided_slice %62 {offsets = [4, 0], sizes = [8, 240], strides = [1, 1]} : vector<12x240xf32> to vector<8x240xf32>
    %c0_78 = arith.constant 0 : index
    %c4_79 = arith.constant 4 : index
    %c0_80 = arith.constant 0 : index
    %c0_81 = arith.constant 0 : index
    %83 = vector.load %arg5[%c0_78, %c4_79, %c0_80, %c0_81] : memref<2x5x240x200xf32, #tpu.memory_space<vmem>>, vector<1x1x240x200xf32>
    %84 = vector.shape_cast %83 : vector<1x1x240x200xf32> to vector<240x200xf32>
    %cst_82 = arith.constant dense<0.000000e+00> : vector<8x200xf32>
    %85 = tpu.matmul %82, %84, %cst_82 {dimension_numbers = #tpu.dot_dimension_numbers<[1], [0], [0], [1], [0, 0, 1, 1], [], []>} : vector<8x240xf32>, vector<240x200xf32>, vector<8x200xf32> -> vector<8x200xf32>
    %86 = arith.addf %81, %85 : vector<8x200xf32>
    %87 = vector.extract_strided_slice %62 {offsets = [0, 0], sizes = [8, 240], strides = [1, 1]} : vector<12x240xf32> to vector<8x240xf32>
    %c1_83 = arith.constant 1 : index
    %c0_84 = arith.constant 0 : index
    %c0_85 = arith.constant 0 : index
    %c0_86 = arith.constant 0 : index
    %88 = vector.load %arg5[%c1_83, %c0_84, %c0_85, %c0_86] : memref<2x5x240x200xf32, #tpu.memory_space<vmem>>, vector<1x1x240x200xf32>
    %89 = vector.shape_cast %88 : vector<1x1x240x200xf32> to vector<240x200xf32>
    %cst_87 = arith.constant dense<0.000000e+00> : vector<8x200xf32>
    %90 = tpu.matmul %87, %89, %cst_87 {dimension_numbers = #tpu.dot_dimension_numbers<[1], [0], [0], [1], [0, 0, 1, 1], [], []>} : vector<8x240xf32>, vector<240x200xf32>, vector<8x200xf32> -> vector<8x200xf32>
    %91 = vector.extract_strided_slice %62 {offsets = [1, 0], sizes = [8, 240], strides = [1, 1]} : vector<12x240xf32> to vector<8x240xf32>
    %c1_88 = arith.constant 1 : index
    %c1_89 = arith.constant 1 : index
    %c0_90 = arith.constant 0 : index
    %c0_91 = arith.constant 0 : index
    %92 = vector.load %arg5[%c1_88, %c1_89, %c0_90, %c0_91] : memref<2x5x240x200xf32, #tpu.memory_space<vmem>>, vector<1x1x240x200xf32>
    %93 = vector.shape_cast %92 : vector<1x1x240x200xf32> to vector<240x200xf32>
    %cst_92 = arith.constant dense<0.000000e+00> : vector<8x200xf32>
    %94 = tpu.matmul %91, %93, %cst_92 {dimension_numbers = #tpu.dot_dimension_numbers<[1], [0], [0], [1], [0, 0, 1, 1], [], []>} : vector<8x240xf32>, vector<240x200xf32>, vector<8x200xf32> -> vector<8x200xf32>
    %95 = arith.addf %90, %94 : vector<8x200xf32>
    %96 = vector.extract_strided_slice %62 {offsets = [2, 0], sizes = [8, 240], strides = [1, 1]} : vector<12x240xf32> to vector<8x240xf32>
    %c1_93 = arith.constant 1 : index
    %c2_94 = arith.constant 2 : index
    %c0_95 = arith.constant 0 : index
    %c0_96 = arith.constant 0 : index
    %97 = vector.load %arg5[%c1_93, %c2_94, %c0_95, %c0_96] : memref<2x5x240x200xf32, #tpu.memory_space<vmem>>, vector<1x1x240x200xf32>
    %98 = vector.shape_cast %97 : vector<1x1x240x200xf32> to vector<240x200xf32>
    %cst_97 = arith.constant dense<0.000000e+00> : vector<8x200xf32>
    %99 = tpu.matmul %96, %98, %cst_97 {dimension_numbers = #tpu.dot_dimension_numbers<[1], [0], [0], [1], [0, 0, 1, 1], [], []>} : vector<8x240xf32>, vector<240x200xf32>, vector<8x200xf32> -> vector<8x200xf32>
    %100 = arith.addf %95, %99 : vector<8x200xf32>
    %101 = vector.extract_strided_slice %62 {offsets = [3, 0], sizes = [8, 240], strides = [1, 1]} : vector<12x240xf32> to vector<8x240xf32>
    %c1_98 = arith.constant 1 : index
    %c3_99 = arith.constant 3 : index
    %c0_100 = arith.constant 0 : index
    %c0_101 = arith.constant 0 : index
    %102 = vector.load %arg5[%c1_98, %c3_99, %c0_100, %c0_101] : memref<2x5x240x200xf32, #tpu.memory_space<vmem>>, vector<1x1x240x200xf32>
    %103 = vector.shape_cast %102 : vector<1x1x240x200xf32> to vector<240x200xf32>
    %cst_102 = arith.constant dense<0.000000e+00> : vector<8x200xf32>
    %104 = tpu.matmul %101, %103, %cst_102 {dimension_numbers = #tpu.dot_dimension_numbers<[1], [0], [0], [1], [0, 0, 1, 1], [], []>} : vector<8x240xf32>, vector<240x200xf32>, vector<8x200xf32> -> vector<8x200xf32>
    %105 = arith.addf %100, %104 : vector<8x200xf32>
    %106 = vector.extract_strided_slice %62 {offsets = [4, 0], sizes = [8, 240], strides = [1, 1]} : vector<12x240xf32> to vector<8x240xf32>
    %c1_103 = arith.constant 1 : index
    %c4_104 = arith.constant 4 : index
    %c0_105 = arith.constant 0 : index
    %c0_106 = arith.constant 0 : index
    %107 = vector.load %arg5[%c1_103, %c4_104, %c0_105, %c0_106] : memref<2x5x240x200xf32, #tpu.memory_space<vmem>>, vector<1x1x240x200xf32>
    %108 = vector.shape_cast %107 : vector<1x1x240x200xf32> to vector<240x200xf32>
    %cst_107 = arith.constant dense<0.000000e+00> : vector<8x200xf32>
    %109 = tpu.matmul %106, %108, %cst_107 {dimension_numbers = #tpu.dot_dimension_numbers<[1], [0], [0], [1], [0, 0, 1, 1], [], []>} : vector<8x240xf32>, vector<240x200xf32>, vector<8x200xf32> -> vector<8x200xf32>
    %110 = arith.addf %105, %109 : vector<8x200xf32>
    %111 = arith.maximumf %86, %110 : vector<8x200xf32>
    %c0_108 = arith.constant 0 : index
    %c0_109 = arith.constant 0 : index
    %112 = vector.load %arg6[%c0_108, %c0_109] : memref<1x200xf32, #tpu.memory_space<vmem>>, vector<1x200xf32>
    %113 = vector.broadcast %112 : vector<1x200xf32> to vector<8x200xf32>
    %114 = arith.addf %111, %113 : vector<8x200xf32>
    %cst_110 = arith.constant 0.000000e+00 : f32
    %115 = vector.broadcast %cst_110 : f32 to vector<8x200xf32>
    %116 = arith.maximumf %114, %115 : vector<8x200xf32>
    %c0_111 = arith.constant 0 : index
    %c0_112 = arith.constant 0 : index
    %c0_113 = arith.constant 0 : index
    %117 = vector.load %arg7[%c0_111, %c0_112, %c0_113] : memref<2x4x8xf32, #tpu.memory_space<vmem>>, vector<1x4x8xf32>
    %118 = vector.shape_cast %117 : vector<1x4x8xf32> to vector<4x8xf32>
    %cst_114 = arith.constant dense<0.000000e+00> : vector<4x200xf32>
    %119 = tpu.matmul %118, %116, %cst_114 {dimension_numbers = #tpu.dot_dimension_numbers<[1], [0], [0], [1], [0, 0, 1, 1], [], []>} : vector<4x8xf32>, vector<8x200xf32>, vector<4x200xf32> -> vector<4x200xf32>
    %c1_115 = arith.constant 1 : index
    %c0_116 = arith.constant 0 : index
    %c0_117 = arith.constant 0 : index
    %120 = vector.load %arg7[%c1_115, %c0_116, %c0_117] : memref<2x4x8xf32, #tpu.memory_space<vmem>>, vector<1x4x8xf32>
    %121 = vector.shape_cast %120 : vector<1x4x8xf32> to vector<4x8xf32>
    %cst_118 = arith.constant dense<0.000000e+00> : vector<4x200xf32>
    %122 = tpu.matmul %121, %116, %cst_118 {dimension_numbers = #tpu.dot_dimension_numbers<[1], [0], [0], [1], [0, 0, 1, 1], [], []>} : vector<4x8xf32>, vector<8x200xf32>, vector<4x200xf32> -> vector<4x200xf32>
    %123 = arith.maximumf %119, %122 : vector<4x200xf32>
    %124 = vector.extract_strided_slice %123 {offsets = [0, 0], sizes = [1, 200], strides = [1, 1]} : vector<4x200xf32> to vector<1x200xf32>
    %c0_119 = arith.constant 0 : index
    %c0_120 = arith.constant 0 : index
    %c0_121 = arith.constant 0 : index
    %125 = vector.load %arg8[%c0_119, %c0_120, %c0_121] : memref<4x200x500xf32, #tpu.memory_space<vmem>>, vector<1x200x500xf32>
    %126 = vector.shape_cast %125 : vector<1x200x500xf32> to vector<200x500xf32>
    %cst_122 = arith.constant dense<0.000000e+00> : vector<1x500xf32>
    %127 = tpu.matmul %124, %126, %cst_122 {dimension_numbers = #tpu.dot_dimension_numbers<[1], [0], [0], [1], [0, 0, 1, 1], [], []>} : vector<1x200xf32>, vector<200x500xf32>, vector<1x500xf32> -> vector<1x500xf32>
    %128 = vector.extract_strided_slice %123 {offsets = [1, 0], sizes = [1, 200], strides = [1, 1]} : vector<4x200xf32> to vector<1x200xf32>
    %c1_123 = arith.constant 1 : index
    %c0_124 = arith.constant 0 : index
    %c0_125 = arith.constant 0 : index
    %129 = vector.load %arg8[%c1_123, %c0_124, %c0_125] : memref<4x200x500xf32, #tpu.memory_space<vmem>>, vector<1x200x500xf32>
    %130 = vector.shape_cast %129 : vector<1x200x500xf32> to vector<200x500xf32>
    %cst_126 = arith.constant dense<0.000000e+00> : vector<1x500xf32>
    %131 = tpu.matmul %128, %130, %cst_126 {dimension_numbers = #tpu.dot_dimension_numbers<[1], [0], [0], [1], [0, 0, 1, 1], [], []>} : vector<1x200xf32>, vector<200x500xf32>, vector<1x500xf32> -> vector<1x500xf32>
    %132 = arith.addf %127, %131 : vector<1x500xf32>
    %133 = vector.extract_strided_slice %123 {offsets = [2, 0], sizes = [1, 200], strides = [1, 1]} : vector<4x200xf32> to vector<1x200xf32>
    %c2_127 = arith.constant 2 : index
    %c0_128 = arith.constant 0 : index
    %c0_129 = arith.constant 0 : index
    %134 = vector.load %arg8[%c2_127, %c0_128, %c0_129] : memref<4x200x500xf32, #tpu.memory_space<vmem>>, vector<1x200x500xf32>
    %135 = vector.shape_cast %134 : vector<1x200x500xf32> to vector<200x500xf32>
    %cst_130 = arith.constant dense<0.000000e+00> : vector<1x500xf32>
    %136 = tpu.matmul %133, %135, %cst_130 {dimension_numbers = #tpu.dot_dimension_numbers<[1], [0], [0], [1], [0, 0, 1, 1], [], []>} : vector<1x200xf32>, vector<200x500xf32>, vector<1x500xf32> -> vector<1x500xf32>
    %137 = arith.addf %132, %136 : vector<1x500xf32>
    %138 = vector.extract_strided_slice %123 {offsets = [3, 0], sizes = [1, 200], strides = [1, 1]} : vector<4x200xf32> to vector<1x200xf32>
    %c3_131 = arith.constant 3 : index
    %c0_132 = arith.constant 0 : index
    %c0_133 = arith.constant 0 : index
    %139 = vector.load %arg8[%c3_131, %c0_132, %c0_133] : memref<4x200x500xf32, #tpu.memory_space<vmem>>, vector<1x200x500xf32>
    %140 = vector.shape_cast %139 : vector<1x200x500xf32> to vector<200x500xf32>
    %cst_134 = arith.constant dense<0.000000e+00> : vector<1x500xf32>
    %141 = tpu.matmul %138, %140, %cst_134 {dimension_numbers = #tpu.dot_dimension_numbers<[1], [0], [0], [1], [0, 0, 1, 1], [], []>} : vector<1x200xf32>, vector<200x500xf32>, vector<1x500xf32> -> vector<1x500xf32>
    %142 = arith.addf %137, %141 : vector<1x500xf32>
    %c0_135 = arith.constant 0 : index
    %c0_136 = arith.constant 0 : index
    %143 = vector.load %arg9[%c0_135, %c0_136] : memref<1x500xf32, #tpu.memory_space<vmem>>, vector<1x500xf32>
    %144 = arith.addf %142, %143 : vector<1x500xf32>
    %cst_137 = arith.constant 0.000000e+00 : f32
    %145 = vector.broadcast %cst_137 : f32 to vector<1x500xf32>
    %146 = arith.maximumf %144, %145 : vector<1x500xf32>
    %c0_138 = arith.constant 0 : index
    %c0_139 = arith.constant 0 : index
    %147 = vector.load %arg10[%c0_138, %c0_139] : memref<500x10xf32, #tpu.memory_space<vmem>>, vector<500x10xf32>
    %cst_140 = arith.constant dense<0.000000e+00> : vector<1x10xf32>
    %148 = tpu.matmul %146, %147, %cst_140 {dimension_numbers = #tpu.dot_dimension_numbers<[1], [0], [0], [1], [0, 0, 1, 1], [], []>} : vector<1x500xf32>, vector<500x10xf32>, vector<1x10xf32> -> vector<1x10xf32>
    %c0_141 = arith.constant 0 : index
    %c0_142 = arith.constant 0 : index
    %149 = vector.load %arg11[%c0_141, %c0_142] : memref<1x10xf32, #tpu.memory_space<vmem>>, vector<1x10xf32>
    %150 = arith.addf %148, %149 : vector<1x10xf32>
    %cst_143 = arith.constant dense<0xFF800000> : vector<1xf32>
    %151 = vector.multi_reduction <maximumf>, %150, %cst_143 [1] : vector<1x10xf32> to vector<1xf32>
    %152 = vector.shape_cast %151 : vector<1xf32> to vector<1x1xf32>
    %153 = vector.broadcast %152 : vector<1x1xf32> to vector<1x10xf32>
    %154 = arith.subf %150, %153 : vector<1x10xf32>
    %155 = math.exp %154 : vector<1x10xf32>
    %cst_144 = arith.constant dense<0.000000e+00> : vector<1xf32>
    %156 = vector.multi_reduction <add>, %155, %cst_144 [1] : vector<1x10xf32> to vector<1xf32>
    %157 = vector.shape_cast %156 : vector<1xf32> to vector<1x1xf32>
    %158 = math.log %157 : vector<1x1xf32>
    %159 = vector.broadcast %158 : vector<1x1xf32> to vector<1x10xf32>
    %160 = arith.subf %154, %159 : vector<1x10xf32>
    %c0_145 = arith.constant 0 : index
    %c0_146 = arith.constant 0 : index
    %c0_147 = arith.constant 0 : index
    %161 = vector.load %arg12[%c0_145, %c0_146, %c0_147] : memref<1x1x10xf32, #tpu.memory_space<vmem>>, vector<1x1x10xf32>
    %162 = vector.shape_cast %161 : vector<1x1x10xf32> to vector<1x10xf32>
    %163 = vector.shape_cast %160 : vector<1x10xf32> to vector<1x1x10xf32>
    tpu.vector_store %arg12[%c0_145, %c0_146, %c0_147], %163 {strides = array<i32>} : memref<1x1x10xf32, #tpu.memory_space<vmem>>, vector<1x1x10xf32>,
    return
  }
  func.func @transform_0(%arg0: i32) -> (i32, i32, i32) {
    %c0_i32 = arith.constant 0 : i32
    %c0_i32_0 = arith.constant 0 : i32
    %c0_i32_1 = arith.constant 0 : i32
    return %arg0, %c0_i32, %c0_i32_0 : i32, i32, i32
  }
  func.func @transform_1(%arg0: i32) -> (i32, i32, i32, i32) {
    %c0_i32 = arith.constant 0 : i32
    %c0_i32_0 = arith.constant 0 : i32
    %c0_i32_1 = arith.constant 0 : i32
    %c0_i32_2 = arith.constant 0 : i32
    %c0_i32_3 = arith.constant 0 : i32
    return %c0_i32, %c0_i32_0, %c0_i32_1, %c0_i32_2 : i32, i32, i32, i32
  }
  func.func @transform_2(%arg0: i32) -> (i32, i32) {
    %c0_i32 = arith.constant 0 : i32
    %c0_i32_0 = arith.constant 0 : i32
    %c0_i32_1 = arith.constant 0 : i32
    return %c0_i32, %c0_i32_0 : i32, i32
  }
  func.func @transform_3(%arg0: i32) -> (i32, i32, i32) {
    %c0_i32 = arith.constant 0 : i32
    %c0_i32_0 = arith.constant 0 : i32
    %c0_i32_1 = arith.constant 0 : i32
    %c0_i32_2 = arith.constant 0 : i32
    return %c0_i32, %c0_i32_0, %c0_i32_1 : i32, i32, i32
  }
  func.func @transform_4(%arg0: i32) -> (i32, i32, i32, i32) {
    %c0_i32 = arith.constant 0 : i32
    %c0_i32_0 = arith.constant 0 : i32
    %c0_i32_1 = arith.constant 0 : i32
    %c0_i32_2 = arith.constant 0 : i32
    %c0_i32_3 = arith.constant 0 : i32
    return %c0_i32, %c0_i32_0, %c0_i32_1, %c0_i32_2 : i32, i32, i32, i32
  }
  func.func @transform_5(%arg0: i32) -> (i32, i32) {
    %c0_i32 = arith.constant 0 : i32
    %c0_i32_0 = arith.constant 0 : i32
    %c0_i32_1 = arith.constant 0 : i32
    return %c0_i32, %c0_i32_0 : i32, i32
  }
  func.func @transform_6(%arg0: i32) -> (i32, i32, i32) {
    %c0_i32 = arith.constant 0 : i32
    %c0_i32_0 = arith.constant 0 : i32
    %c0_i32_1 = arith.constant 0 : i32
    %c0_i32_2 = arith.constant 0 : i32
    return %c0_i32, %c0_i32_0, %c0_i32_1 : i32, i32, i32
  }
  func.func @transform_7(%arg0: i32) -> (i32, i32, i32) {
    %c0_i32 = arith.constant 0 : i32
    %c0_i32_0 = arith.constant 0 : i32
    %c0_i32_1 = arith.constant 0 : i32
    %c0_i32_2 = arith.constant 0 : i32
    return %c0_i32, %c0_i32_0, %c0_i32_1 : i32, i32, i32
  }
  func.func @transform_8(%arg0: i32) -> (i32, i32) {
    %c0_i32 = arith.constant 0 : i32
    %c0_i32_0 = arith.constant 0 : i32
    %c0_i32_1 = arith.constant 0 : i32
    return %c0_i32, %c0_i32_0 : i32, i32
  }
  func.func @transform_9(%arg0: i32) -> (i32, i32) {
    %c0_i32 = arith.constant 0 : i32
    %c0_i32_0 = arith.constant 0 : i32
    %c0_i32_1 = arith.constant 0 : i32
    return %c0_i32, %c0_i32_0 : i32, i32
  }
  func.func @transform_10(%arg0: i32) -> (i32, i32) {
    %c0_i32 = arith.constant 0 : i32
    %c0_i32_0 = arith.constant 0 : i32
    %c0_i32_1 = arith.constant 0 : i32
    return %c0_i32, %c0_i32_0 : i32, i32
  }
  func.func @transform_11(%arg0: i32) -> (i32, i32, i32) {
    %c0_i32 = arith.constant 0 : i32
    %c0_i32_0 = arith.constant 0 : i32
    %c0_i32_1 = arith.constant 0 : i32
    return %arg0, %c0_i32, %c0_i32_0 : i32, i32, i32
  }
}

</mosaic_0001>

<bundles_post_ra>
// kernel: net_forward.1
= control target key start
LH: loop header
LB: loop body
LE: loop exit
PB: predicated region body
PF: predicated region fallthrough
CT: control target
= control target key end

     0   :  { %16 = vsyncpa [#allocation3], 0  ;;  %s9433_s0 = inlined_call_operand.vmem [shape: f32[2,28,28], index: 0, kind: input, shape index: {}]   ;;  %s9434_s1 = inlined_call_operand.vmem [shape: f32[2,5,28,240], index: 1, kind: input, shape index: {}]   ;;  %s9435_s2 = inlined_call_operand.vmem [shape: f32[1,240], index: 2, kind: input, shape index: {}]   ;;  %s9436_s3 = inlined_call_operand.vmem [shape: f32[2,12,24], index: 3, kind: input, shape index: {}]   ;;  %s9437_s4 = inlined_call_operand.vmem [shape: f32[2,5,240,200], index: 4, kind: input, shape index: {}]   ;;  %s9438_s5 = inlined_call_operand.vmem [shape: f32[1,200], index: 5, kind: input, shape index: {}]   ;;  %s9439_s6 = inlined_call_operand.vmem [shape: f32[2,4,8], index: 6, kind: input, shape index: {}]   ;;  %s9440_s7 = inlined_call_operand.vmem [shape: f32[4,200,500], index: 7, kind: input, shape index: {}]   ;;  %s9441_s8 = inlined_call_operand.vmem [shape: f32[1,500], index: 8, kind: input, shape index: {}]   ;;  %s9442_s9 = inlined_call_operand.vmem [shape: f32[500,10], index: 9, kind: input, shape index: {}]   ;;  %s9443_s10 = inlined_call_operand.vmem [shape: f32[1,10], index: 10, kind: input, shape index: {}]   ;;  %s9444_s11 = inlined_call_operand.hbm [shape: f32[2,1,10], index: 11, kind: output, shape index: {}]  }
   0x1   :  { %18 = vsyncpa [#allocation3 + $0x1], 0  ;;  %s5413_s17 = smov 0   ;;  %s5415_s18 = smov 0  }
   0x2   :  { %s5417_s19 = smov 0   ;;  %s5419_s20 = smov 0  }
   0x3 LB: > { %s5434_s21 = sadd.s32 4294967295, %s5351_s20   ;;  %s4188_s22 = sadd.s32 4294967294, %s5351_s20   ;;  %s5351_s20 = sphi %s5419_s20, %s9464_s20   ;;  %s5347_s19 = sphi %s5417_s19, %s9463_s19   ;;  %s5343_s18 = sphi %s5415_s18, %s9462_s18   ;;  %s5339_s17 = sphi %s5413_s17, %s9461_s17  }
   0x4   : > { %s5438_s23 = sadd.s32 1, %s5351_s20   ;;  %s267_s24 = sadd.s32 1, %s5347_s19 }
   0x5   : > { %s264_s25 = ssub.s32 %s5351_s20, %s5438_s23  ;;  %p277_p0 = scmp.ne.s32.totalorder %s5347_s19, %s5343_s18 }
   0x6   : > { %p265_p1 = scmp.eq.s32.totalorder %s264_s25, 0  ;;  %p278_p2 = scmp.eq.s32.totalorder %s5434_s21, 1 }
   0x7   : > { %p283_p3 = scmp.ne.s32.totalorder %s5343_s18, %s5339_s17  ;;  %p284_p4 = scmp.eq.s32.totalorder %s4188_s22, 1 }
   0x8   : > { %s5449_s26 = scalar_select %p265_p1, %s5347_s19, %s267_s24  }
   0x9   : > { %p5451_p5 = por %p278_p2, %p277_p0  ;;  %p5455_p6 = por %p284_p4, %p283_p3 }
   0xa   : > { %9445 = sst [smem:[#allocation5_spill]] %s5449_s26  ;;  %p4191_p7 = scmp.ge.s32.totalorder %s5351_s20, 1 }
   0xb   : > { %p340_p8 = scmp.lt.s32.totalorder %s5351_s20, 3 }
   0xd   : > { %p341_p9 = pnand %p4191_p7, %p340_p8 }
   0xf   : > { %344 = sbr.rel (%p341_p9) target bundleno = 1662 (0x67e), region = 64 }
  0x14   : > { %v394_v0 = vld [vmem:[%s9434_s1 + $0x30] sm:$0xf]  ;;  %vm424_vm0 = vcmask 1043456   ;;  %v392_v2 = vld [vmem:[%s9434_s1 + $0x20] sm:$0xff]  ;;  %v4201_v3 = vld [vmem:[%s9434_s1 + $0x78] sm:$0xf]  ;;  %s4129_s24 = scalar_lea.hbm %s9444_s11, %s5434_s21 }
  0x15   : > { %v4200_v1 = vld [vmem:[%s9434_s1 + $0x70] sm:$0xf]  ;;  %4210 = vmatpush.msk.msra.mxu2 %vm424_vm0, %v394_v0  ;;  %v4198_v4 = vld [vmem:[%s9434_s1 + $0x60] sm:$0xff]  ;;  %v4199_v5 = vld [vmem:[%s9434_s1 + $0x68] sm:$0xff]  ;;  %p379_p10 = scmp.lt.s32.totalorder %s5434_s21, 1  ;;  %4206 = vmatpush.msk.msra.mxu1 %vm424_vm0, %v4201_v3  ;;  %vm417_vm1 = vcmask 228352  }
  0x16   : > { %4202 = vmatpush.msk.msra.mxu0 %vm424_vm0, %v4200_v1  ;;  %v390_v6 = vld [vmem:[%s9434_s1 + $0x10] sm:$0xff]  ;;  %v395_v7 = vld [vmem:[%s9434_s1 + $0x38] sm:$0xf]  ;;  %v393_v10 = vld [vmem:[%s9434_s1 + $0x28] sm:$0xff]  ;;  %vm409_vm2 = vcmask 1046528   ;;  %vm643_vm3 = vcmask 1044480  }
  0x17   : > { %v4196_v8 = vld [vmem:[%s9434_s1 + $0x50] sm:$0xff]  ;;  %508 = vmatpush.msra.mxu2 %v392_v2  ;;  %v4197_v9 = vld [vmem:[%s9434_s1 + $0x58] sm:$0xff]  ;;  %s380_s12 = scalar_select %p379_p10, %s5434_s21, 1  ;;  %470 = vmatpush.msra.mxu1 %v4199_v5  ;;  %v388_v11 = vld [vmem:[%s9434_s1] sm:$0xff]  ;;  %vm556_vm4 = vcmask 1045504   ;;  %vm1186_vm5 = vcmask 195584  }
  0x18   : > { %444 = vmatpush.msra.mxu0 %v4198_v4  ;;  %5242 = vmatpush.msk.msra.mxu3 %vm424_vm0, %v395_v7  ;;  %v4194_v12 = vld [vmem:[%s9434_s1 + $0x40] sm:$0xff]  ;;  %v4195_v13 = vld [vmem:[%s9434_s1 + $0x48] sm:$0xff]  ;;  %v391_v14 = vld [vmem:[%s9434_s1 + $0x18] sm:$0xff]  ;;  %vm1430_vm6 = vcmask 916480   ;;  %vm2775_vm7 = vcmask 64512   ;;  %vm3072_vm8 = vcmask 588800  }
  0x19   : > { %509 = vmatpush.msra.mxu2 %v390_v6  ;;  %s5241_s22 = sshll.u32 %s380_s12, 5  ;;  %471 = vmatpush.msra.mxu1 %v4197_v9  ;;  %v4225_v17 = vld [vmem:[%s9434_s1 + $0xb8] sm:$0xf]  ;;  %v389_v21 = vld [vmem:[%s9434_s1 + $0x8] sm:$0xff]  ;;  %v4240_v22 = vld [vmem:[%s9434_s1 + $0xf0] sm:$0xf] }
  0x1a   : > { %445 = vmatpush.msra.mxu0 %v4196_v8  ;;  %5243 = vmatpush.msra.mxu3 %v393_v10  ;;  %s5512_s26 = scalar_lea.vmem %s9433_s0, %s5241_s22  ;;  %v4223_v24 = vld [vmem:[%s9434_s1 + $0xa8] sm:$0xff]  ;;  %v4241_v25 = vld [vmem:[%s9434_s1 + $0xf8] sm:$0xf]  ;;  %v4238_v28 = vld [vmem:[%s9434_s1 + $0xe0] sm:$0xff]  ;;  %vm4019_vm9 = vcmask 949248   ;;  %vm4106_vm10 = vcmask 73728  }
  0x1b   : > { %510 = vmatpush.msra.mxu2 %v388_v11  ;;  %v5518_v15 = vld [vmem:[%s5512_s26] sm:$0xff]  ;;  %v5521_v16 = vld [vmem:[%s5512_s26 + $0x8] sm:$0xff]  ;;  %472 = vmatpush.msra.mxu1 %v4195_v13  ;;  %v5531_v20 = vld [vmem:[%s5512_s26 + $0x10] sm:$0xff]  ;;  %s377_s15 = sand.u32 1, %s5343_s18   ;;  %s4133_s30 = sshll.u32 %s4129_s24, 4  ;;  %s4134_s30 = int_to_ptr.hbm [resolvable:$true] %s4133_s30 }
  0x1c   : > { %446 = vmatpush.msra.mxu0 %v4194_v12  ;;  %4211 = vmatmul.msk.f32.vlgmr.msra.gmra.mxu2 %vm417_vm1, %v5518_v15  ;;  %v410_v18 = vrot.slane %v5518_v15, 1  ;;  %v411_v19 = vrot.slane %v5521_v16, 1  ;;  %v413_v26 = vrot.slane %v5531_v20, 1  ;;  %v4221_v27 = vld [vmem:[%s9434_s1 + $0x98] sm:$0xff]  ;;  %v4239_v29 = vld [vmem:[%s9434_s1 + $0xe8] sm:$0xff]  ;;  %v4236_v36 = vld [vmem:[%s9434_s1 + $0xd0] sm:$0xff] }
  0x1d   : > { %5244 = vmatpush.msra.mxu3 %v391_v14  ;;  %4230 = vmatpush.msk.msrb.mxu1 %vm424_vm0, %v4225_v17  ;;  %v4219_v30 = vld [vmem:[%s9434_s1 + $0x88] sm:$0xff]  ;;  %v4237_v31 = vld [vmem:[%s9434_s1 + $0xd8] sm:$0xff]  ;;  %v4224_v32 = vld [vmem:[%s9434_s1 + $0xb0] sm:$0xf]  ;;  %v644_v44 = vrot.slane %v5518_v15, 3  ;;  %v645_v45 = vrot.slane %v5521_v16, 3 }
  0x1e   : > { %4214 = vmatpush.msk.msrb.mxu0 %vm424_vm0, %v395_v7  ;;  %v5541_v23 = vsel %vm409_vm2, %v410_v18, %v411_v19  ;;  %4242 = vmatpush.msk.msrb.mxu2 %vm424_vm0, %v4240_v22  ;;  %v5580_v33 = vsel %vm409_vm2, %v411_v19, %v413_v26  ;;  %v5583_v34 = vld [vmem:[%s5512_s26 + $0x18] sm:$0xf]  ;;  %v4235_v35 = vld [vmem:[%s9434_s1 + $0xc8] sm:$0xff]  ;;  %v4222_v37 = vld [vmem:[%s9434_s1 + $0xa0] sm:$0xff]  ;;  %v557_v56 = vrot.slane %v5518_v15, 2  ;;  %v558_v57 = vrot.slane %v5521_v16, 2 }
  0x1f   : > { %4203 = vmatmul.msk.f32.vlgmr.msra.gmra.mxu0 %vm417_vm1, %v5541_v23  ;;  %4207 = vmatmul.msk.f32.vlgmr.msra.gmra.mxu1 %vm417_vm1, %v5541_v23  ;;  %v4234_v38 = vld [vmem:[%s9434_s1 + $0xc0] sm:$0xff]  ;;  %v4281_v39 = vld [vmem:[%s9434_s1 + $0x1b8] sm:$0xf]  ;;  %v415_v40 = vrot.slane %v5583_v34, 1  ;;  %v4220_v41 = vld [vmem:[%s9434_s1 + $0x90] sm:$0xff]  ;;  %v5645_v53 = vsel %vm643_vm3, %v644_v44, %v645_v45  ;;  %v647_v59 = vrot.slane %v5531_v20, 3 }
  0x20   : > { %5245 = vmatpush.msra.mxu3 %v389_v21  ;;  %534 = vmatpush.msrb.mxu0 %v393_v10  ;;  %v4257_v42 = vld [vmem:[%s9434_s1 + $0x138] sm:$0xf]  ;;  %v4279_v43 = vld [vmem:[%s9434_s1 + $0x1a8] sm:$0xff]  ;;  %v4218_v46 = vld [vmem:[%s9434_s1 + $0x80] sm:$0xff]  ;;  %v5670_v61 = vsel %vm556_vm4, %v557_v56, %v558_v57  ;;  %v560_v1 = vrot.slane %v5531_v20, 2  ;;  %v649_v4 = vrot.slane %v5583_v34, 3 }
  0x21   : > { %4216 = vmatmul.msk.f32.vlgmr.msra.gmra.mxu3 %vm417_vm1, %v5521_v16  ;;  %615 = vmatpush.msrb.mxu1 %v4223_v24  ;;  %v4255_v47 = vld [vmem:[%s9434_s1 + $0x128] sm:$0xff]  ;;  %v4277_v48 = vld [vmem:[%s9434_s1 + $0x198] sm:$0xff]  ;;  %v4280_v49 = vld [vmem:[%s9434_s1 + $0x1b0] sm:$0xf]  ;;  %v5636_v50 = vsel %vm409_vm2, %v413_v26, %v415_v40  ;;  %v5678_v63 = vsel %vm643_vm3, %v645_v45, %v647_v59  ;;  %v562_v12 = vrot.slane %v5583_v34, 2  ;;  %v730_v26 = vrot.slane %v5518_v15, 4 }
  0x22   : > { %4246 = vmatpush.msk.msrb.mxu3 %vm424_vm0, %v4241_v25  ;;  %535 = vmatpush.msrb.mxu0 %v391_v14  ;;  %v4275_v51 = vld [vmem:[%s9434_s1 + $0x188] sm:$0xff]  ;;  %v4253_v52 = vld [vmem:[%s9434_s1 + $0x118] sm:$0xff]  ;;  %v4278_v54 = vld [vmem:[%s9434_s1 + $0x1a0] sm:$0xff]  ;;  %v5706_v7 = vsel %vm556_vm4, %v558_v57, %v560_v1  ;;  %v5711_v8 = vsel %vm643_vm3, %v647_v59, %v649_v4  ;;  %s378_s25 = scalar_lea.vmem [#allocation2], %s377_s15  ;;  %s4121_s26 = scalar_lea.sflag [#allocation3], %s377_s15 }
  0x23   : > { %616 = vmatpush.msrb.mxu1 %v4221_v27  ;;  %676 = vmatpush.msrb.mxu2 %v4238_v28  ;;  %v4251_v55 = vld [vmem:[%s9434_s1 + $0x108] sm:$0xff]  ;;  %v4276_v58 = vld [vmem:[%s9434_s1 + $0x190] sm:$0xff]  ;;  %v4274_v60 = vld [vmem:[%s9434_s1 + $0x180] sm:$0xff]  ;;  %v731_v27 = vrot.slane %v5521_v16, 4  ;;  %s4131_s29 = sshll.u32 %s378_s25, 4  ;;  %s5303_s13 = sshra.s32 %s4134_s30, 4  ;;  %s4132_s29 = int_to_ptr.vmem [resolvable:$true] %s4131_s29  ;;  %s5304_s13 = int_to_ptr.hbm [resolvable:$true] %s5303_s13 }
  0x24   : > { %4212 = vmatmul.msk.f32.gmra.mxu2 %vm417_vm1, %v5521_v16  ;;  %702 = vmatpush.msrb.mxu3 %v4239_v29  ;;  %v4256_v62 = vld [vmem:[%s9434_s1 + $0x130] sm:$0xf]  ;;  %v4254_v0 = vld [vmem:[%s9434_s1 + $0x120] sm:$0xff]  ;;  %v4305_v3 = vld [vmem:[%s9434_s1 + $0x1f8] sm:$0xf]  ;;  %s5305_s14 = scalar_lea.hbm %s5304_s13, 1  ;;  %p5310_p0 = scmp.lt.s32.totalorder %s5304_s13, %s9444_s11 }
  0x25   : > { %536 = vmatpush.msrb.mxu0 %v389_v21  ;;  %617 = vmatpush.msrb.mxu1 %v4219_v30  ;;  %v4252_v2 = vld [vmem:[%s9434_s1 + $0x110] sm:$0xff]  ;;  %v4303_v5 = vld [vmem:[%s9434_s1 + $0x1e8] sm:$0xff]  ;;  %v4250_v6 = vld [vmem:[%s9434_s1 + $0x100] sm:$0xff]  ;;  %v5747_v21 = vsel %vm556_vm4, %v560_v1, %v562_v12  ;;  %p5306_p11 = scmp.ne.s32.totalorder %s5304_s13, %s5305_s14  ;;  %s5309_s16 = scalar_lea.hbm %s9444_s11, 2 }
  0x26   : > { %703 = vmatpush.msrb.mxu3 %v4237_v31  ;;  %677 = vmatpush.msrb.mxu2 %v4236_v36  ;;  %v4273_v9 = vld [vmem:[%s9434_s1 + $0x178] sm:$0xf]  ;;  %v4271_v11 = vld [vmem:[%s9434_s1 + $0x168] sm:$0xff]  ;;  %v4304_v17 = vld [vmem:[%s9434_s1 + $0x1f0] sm:$0xf]  ;;  %v5779_v31 = vsel %vm424_vm0, %v730_v26, %v731_v27  ;;  %p5311_p1 = scmp.lt.s32.totalorder %s5309_s16, %s5305_s14 }
  0x27   : > { %4226 = vmatpush.msk.msra.mxu0 %vm424_vm0, %v4224_v32  ;;  %4208 = vmatmul.msk.f32.gmra.mxu1 %vm417_vm1, %v5580_v33  ;;  %v4301_v10 = vld [vmem:[%s9434_s1 + $0x1d8] sm:$0xff]  ;;  %v4299_v13 = vld [vmem:[%s9434_s1 + $0x1c8] sm:$0xff]  ;;  %v4302_v18 = vld [vmem:[%s9434_s1 + $0x1e0] sm:$0xff]  ;;  %v733_v32 = vrot.slane %v5531_v20, 4  ;;  %p5307_p12 = pnand %p5306_p11, %p5451_p5 }
  0x28   : > { %4204 = vmatmul.msk.f32.gmra.mxu0 %vm417_vm1, %v5580_v33  ;;  %704 = vmatpush.msrb.mxu3 %v4235_v35  ;;  %v4269_v14 = vld [vmem:[%s9434_s1 + $0x158] sm:$0xff]  ;;  %v4267_v19 = vld [vmem:[%s9434_s1 + $0x148] sm:$0xff]  ;;  %v4272_v22 = vld [vmem:[%s9434_s1 + $0x170] sm:$0xf]  ;;  %p5312_p2 = por %p5311_p1, %p5310_p0 }
  0x29   : > { %4217 = vmatmul.msk.f32.gmra.mxu3 %vm417_vm1, %v5531_v20  ;;  %589 = vmatpush.msra.mxu0 %v4222_v37  ;;  %v4300_v24 = vld [vmem:[%s9434_s1 + $0x1d0] sm:$0xff]  ;;  %v4270_v25 = vld [vmem:[%s9434_s1 + $0x160] sm:$0xff]  ;;  %v4337_v35 = vld [vmem:[%s9434_s1 + $0x278] sm:$0xf]  ;;  %v734_v36 = vsel %vm424_vm0, %v731_v27, %v733_v32  ;;  %p5308_p13 = pneg %p5307_p12 }
  0x2a   : > { %678 = vmatpush.msrb.mxu2 %v4234_v38  ;;  %4286 = vmatpush.msk.msra.mxu3 %vm424_vm0, %v4281_v39  ;;  %v4298_v28 = vld [vmem:[%s9434_s1 + $0x1c0] sm:$0xff]  ;;  %v4268_v29 = vld [vmem:[%s9434_s1 + $0x150] sm:$0xff]  ;;  %v4321_v37 = vld [vmem:[%s9434_s1 + $0x238] sm:$0xf] }
  0x2b   : > { %590 = vmatpush.msra.mxu0 %v4220_v41  ;;  %4262 = vmatpush.msk.msra.mxu1 %vm424_vm0, %v4257_v42  ;;  %v4266_v30 = vld [vmem:[%s9434_s1 + $0x140] sm:$0xff]  ;;  %v4333_v38 = vld [vmem:[%s9434_s1 + $0x258] sm:$0xff]  ;;  %v4319_v39 = vld [vmem:[%s9434_s1 + $0x228] sm:$0xff]  ;;  %p5313_p3 = pnand %p5312_p2, %p5308_p13 }
  0x2c   : > { %4213 = vmatmul.msk.f32.gmra.mxu2 %vm417_vm1, %v5531_v20  ;;  %870 = vmatpush.msra.mxu3 %v4279_v43  ;;  %v4331_v40 = vld [vmem:[%s9434_s1 + $0x248] sm:$0xff]  ;;  %v4317_v41 = vld [vmem:[%s9434_s1 + $0x218] sm:$0xff]  ;;  %v4336_v42 = vld [vmem:[%s9434_s1 + $0x270] sm:$0xf] }
  0x2d   : > { %591 = vmatpush.msra.mxu0 %v4218_v46  ;;  %788 = vmatpush.msra.mxu1 %v4255_v47  ;;  %v4315_v43 = vld [vmem:[%s9434_s1 + $0x208] sm:$0xff]  ;;  %v4320_v45 = vld [vmem:[%s9434_s1 + $0x230] sm:$0xf]  ;;  %v4318_v47 = vld [vmem:[%s9434_s1 + $0x220] sm:$0xff] }
  0x2e   : > { %871 = vmatpush.msra.mxu3 %v4277_v48  ;;  %4282 = vmatpush.msk.msra.mxu2 %vm424_vm0, %v4280_v49  ;;  %v4332_v46 = vld [vmem:[%s9434_s1 + $0x250] sm:$0xff]  ;;  %v4330_v48 = vld [vmem:[%s9434_s1 + $0x240] sm:$0xff] }
  0x2f   : > { %4209 = vmatmul.msk.f32.gmra.mxu1 %vm417_vm1, %v5636_v50  ;;  %v4316_v49 = vld [vmem:[%s9434_s1 + $0x210] sm:$0xff] }
  0x30   : > { %4205 = vmatmul.msk.f32.gmra.mxu0 %vm417_vm1, %v5636_v50  ;;  %872 = vmatpush.msra.mxu3 %v4275_v51 }
  0x31   : > { %789 = vmatpush.msra.mxu1 %v4253_v52  ;;  %4247 = vmatmul.msk.f32.vlgmr.msrb.gmra.mxu3 %vm417_vm1, %v5645_v53 }
  0x32   : > { %844 = vmatpush.msra.mxu2 %v4278_v54  ;;  %4310 = vmatpush.msk.msrb.mxu3 %vm424_vm0, %v4305_v3 }
  0x33   : > { %790 = vmatpush.msra.mxu1 %v4251_v55 }
  0x34   : > { %845 = vmatpush.msra.mxu2 %v4276_v58  ;;  %995 = vmatpush.msrb.mxu3 %v4303_v5 }
  0x35   : > { %4243 = vmatmul.msk.f32.vlgmr.msrb.gmra.mxu2 %vm417_vm1, %v5645_v53 }
  0x36   : > { %846 = vmatpush.msra.mxu2 %v4274_v60  ;;  %996 = vmatpush.msrb.mxu3 %v4301_v10 }
  0x37   : > { %4231 = vmatmul.msk.f32.vlgmr.msrb.gmra.mxu1 %vm417_vm1, %v5670_v61 }
  0x38   : > { %4215 = vmatmul.msk.f32.vlgmr.msrb.gmra.mxu0 %vm417_vm1, %v5518_v15  ;;  %4294 = vmatpush.msk.msrb.mxu1 %vm424_vm0, %v4273_v9 }
  0x39   : > { %4258 = vmatpush.msk.msrb.mxu0 %vm424_vm0, %v4256_v62  ;;  %4248 = vmatmul.msk.f32.gmra.mxu3 %vm417_vm1, %v5678_v63 }
  0x3a   : > { %928 = vmatpush.msrb.mxu1 %v4271_v11  ;;  %997 = vmatpush.msrb.mxu3 %v4299_v13 }
  0x3b   : > { %762 = vmatpush.msrb.mxu0 %v4254_v0  ;;  %4306 = vmatpush.msk.msrb.mxu2 %vm424_vm0, %v4304_v17 }
  0x3c   : > { %929 = vmatpush.msrb.mxu1 %v4269_v14 }
  0x3d   : > { %4244 = vmatmul.msk.f32.gmra.mxu2 %vm417_vm1, %v5678_v63  ;;  %763 = vmatpush.msrb.mxu0 %v4252_v2 }
  0x3e   : > { %969 = vmatpush.msrb.mxu2 %v4302_v18  ;;  %930 = vmatpush.msrb.mxu1 %v4267_v19 }
  0x3f   : > { %764 = vmatpush.msrb.mxu0 %v4250_v6  ;;  %4232 = vmatmul.msk.f32.gmra.mxu1 %vm417_vm1, %v5706_v7 }
  0x40   : > { %4227 = vmatmul.msk.f32.vlgmr.msra.gmra.mxu0 %vm417_vm1, %v5670_v61  ;;  %970 = vmatpush.msrb.mxu2 %v4300_v24 }
  0x41   : > { %4249 = vmatmul.msk.f32.gmra.mxu3 %vm417_vm1, %v5711_v8  ;;  %4290 = vmatpush.msk.msra.mxu0 %vm424_vm0, %v4272_v22 }
  0x42   : > { %971 = vmatpush.msrb.mxu2 %v4298_v28 }
  0x43   : > { %902 = vmatpush.msra.mxu0 %v4270_v25 }
  0x45   : > { %4245 = vmatmul.msk.f32.gmra.mxu2 %vm417_vm1, %v5711_v8  ;;  %903 = vmatpush.msra.mxu0 %v4268_v29 }
  0x47   : > { %4233 = vmatmul.msk.f32.gmra.mxu1 %vm417_vm1, %v5747_v21  ;;  %904 = vmatpush.msra.mxu0 %v4266_v30 }
  0x48   : > { %4228 = vmatmul.msk.f32.gmra.mxu0 %vm417_vm1, %v5706_v7 }
  0x49   : > { %4287 = vmatmul.msk.f32.vlgmr.msra.gmra.mxu3 %vm417_vm1, %v5541_v23 }
  0x4a   : > { %4342 = vmatpush.msk.msra.mxu3 %vm424_vm0, %v4337_v35 }
  0x4d   : > { %4283 = vmatmul.msk.f32.vlgmr.msra.gmra.mxu2 %vm417_vm1, %v5541_v23  ;;  %v4335_v23 = vld [vmem:[%s9434_s1 + $0x268] sm:$0xff] }
  0x4e   : > { %1141 = vmatpush.msra.mxu3 %v4335_v23  ;;  %4338 = vmatpush.msk.msra.mxu2 %vm424_vm0, %v4336_v42 }
  0x4f   : > { %4263 = vmatmul.msk.f32.vlgmr.msra.gmra.mxu1 %vm417_vm1, %v5779_v31 }
  0x50   : > { %4229 = vmatmul.msk.f32.gmra.mxu0 %vm417_vm1, %v5747_v21  ;;  %4326 = vmatpush.msk.msra.mxu1 %vm424_vm0, %v4321_v37 }
  0x51   : > { %4288 = vmatmul.msk.f32.gmra.mxu3 %vm417_vm1, %v5580_v33 }
  0x52   : > { %1142 = vmatpush.msra.mxu3 %v4333_v38  ;;  %1068 = vmatpush.msra.mxu1 %v4319_v39 }
  0x54   : > { %1143 = vmatpush.msra.mxu3 %v4331_v40  ;;  %1069 = vmatpush.msra.mxu1 %v4317_v41 }
  0x55   : > { %4284 = vmatmul.msk.f32.gmra.mxu2 %vm417_vm1, %v5580_v33  ;;  %v735_v33 = vrot.slane %v5583_v34, 4  ;;  %v4334_v34 = vld [vmem:[%s9434_s1 + $0x260] sm:$0xff] }
  0x56   : > { %1115 = vmatpush.msra.mxu2 %v4334_v34  ;;  %1070 = vmatpush.msra.mxu1 %v4315_v43 }
  0x57   : > { %4264 = vmatmul.msk.f32.gmra.mxu1 %vm417_vm1, %v734_v36  ;;  %v736_v44 = vsel %vm424_vm0, %v733_v32, %v735_v33 }
  0x58   : > { %4259 = vmatmul.msk.f32.vlgmr.msrb.gmra.mxu0 %vm417_vm1, %v5779_v31  ;;  %1116 = vmatpush.msra.mxu2 %v4332_v46 }
  0x59   : > { %4289 = vmatmul.msk.f32.gmra.mxu3 %vm417_vm1, %v5636_v50  ;;  %4322 = vmatpush.msk.msrb.mxu0 %vm424_vm0, %v4320_v45 }
  0x5a   : > { %1117 = vmatpush.msra.mxu2 %v4330_v48 }
  0x5b   : > { %1042 = vmatpush.msrb.mxu0 %v4318_v47 }
  0x5d   : > { %4285 = vmatmul.msk.f32.gmra.mxu2 %vm417_vm1, %v5636_v50  ;;  %v4314_v50 = vld [vmem:[%s9434_s1 + $0x200] sm:$0xff]  ;;  %1043 = vmatpush.msrb.mxu0 %v4316_v49 }
  0x5f   : > { %4265 = vmatmul.msk.f32.gmra.mxu1 %vm417_vm1, %v736_v44  ;;  %1044 = vmatpush.msrb.mxu0 %v4314_v50 }
  0x60   : > { %4260 = vmatmul.msk.f32.gmra.mxu0 %vm417_vm1, %v734_v36 }
  0x61   : > { %4311 = vmatmul.msk.f32.vlgmr.msrb.gmra.mxu3 %vm417_vm1, %v5670_v61 }
  0x65   : > { %4307 = vmatmul.msk.f32.vlgmr.msrb.gmra.mxu2 %vm417_vm1, %v5670_v61 }
  0x67   : > { %4295 = vmatmul.msk.f32.vlgmr.msrb.gmra.mxu1 %vm417_vm1, %v5518_v15 }
  0x68   : > { %4261 = vmatmul.msk.f32.gmra.mxu0 %vm417_vm1, %v736_v44 }
  0x69   : > { %4312 = vmatmul.msk.f32.gmra.mxu3 %vm417_vm1, %v5706_v7 }
  0x6d   : > { %4308 = vmatmul.msk.f32.gmra.mxu2 %vm417_vm1, %v5706_v7 }
  0x6f   : > { %4296 = vmatmul.msk.f32.gmra.mxu1 %vm417_vm1, %v5521_v16 }
  0x70   : > { %4291 = vmatmul.msk.f32.vlgmr.msra.gmra.mxu0 %vm417_vm1, %v5518_v15 }
  0x71   : > { %4313 = vmatmul.msk.f32.gmra.mxu3 %vm417_vm1, %v5747_v21 }
  0x75   : > { %4309 = vmatmul.msk.f32.gmra.mxu2 %vm417_vm1, %v5747_v21 }
  0x77   : > { %4297 = vmatmul.msk.f32.gmra.mxu1 %vm417_vm1, %v5531_v20 }
  0x78   : > { %4292 = vmatmul.msk.f32.gmra.mxu0 %vm417_vm1, %v5521_v16 }
  0x79   : > { %4343 = vmatmul.msk.f32.vlgmr.msra.gmra.mxu3 %vm417_vm1, %v5779_v31 }
  0x7d   : > { %4339 = vmatmul.msk.f32.vlgmr.msra.gmra.mxu2 %vm417_vm1, %v5779_v31 }
  0x7f   : > { %4327 = vmatmul.msk.f32.vlgmr.msra.gmra.mxu1 %vm417_vm1, %v5645_v53 }
  0x80   : > { %4293 = vmatmul.msk.f32.gmra.mxu0 %vm417_vm1, %v5531_v20 }
  0x81   : > { %4344 = vmatmul.msk.f32.gmra.mxu3 %vm417_vm1, %v734_v36 }
  0x85   : > { %4340 = vmatmul.msk.f32.gmra.mxu2 %vm417_vm1, %v734_v36 }
  0x87   : > { %4328 = vmatmul.msk.f32.gmra.mxu1 %vm417_vm1, %v5678_v63 }
  0x88   : > { %4323 = vmatmul.msk.f32.vlgmr.msrb.gmra.mxu0 %vm417_vm1, %v5645_v53 }
  0x89   : > { %4345 = vmatmul.msk.f32.gmra.mxu3 %vm417_vm1, %v736_v44 }
  0x8d   : > { %4341 = vmatmul.msk.f32.gmra.mxu2 %vm417_vm1, %v736_v44 }
  0x8f   : > { %4329 = vmatmul.msk.f32.gmra.mxu1 %vm417_vm1, %v5711_v8 }
  0x90   : > { %4324 = vmatmul.msk.f32.gmra.mxu0 %vm417_vm1, %v5678_v63 }
  0x98   : > { %4325 = vmatmul.msk.f32.gmra.mxu0 %vm417_vm1, %v5711_v8 }
  0x9c   : > { %v5901_v15 = vpop.f32.mrf.mxu0  ;;  %v474_v16 = vpop.f32.mrf.mxu1 }
  0x9f   : > { %v5903_v20 = vpop.f32.mrf.mxu2 }
  0xa4   : > { %v477_v52 = vpop.f32.mrf.mxu1  ;;  %v541_v53 = vpop.f32.mrf.mxu3 }
  0xa5   : > { %v5905_v51 = vpop.f32.mrf.mxu0  ;;  %v542_v43 = vadd.f32 %v541_v53, %v477_v52 }
  0xa7   : > { %v5907_v54 = vpop.f32.mrf.mxu2 }
  0xa8   : > { %v516_v52 = vadd.f32 %v5907_v54, %v5905_v51  ;;  %v1166_v51 = vld [vmem:[%s9435_s2] sm:$0x3] }
  0xac   : > { %v480_v56 = vpop.f32.mrf.mxu1  ;;  %v544_v57 = vpop.f32.mrf.mxu3 }
  0xad   : > { %v5909_v55 = vpop.f32.mrf.mxu0  ;;  %v545_v46 = vadd.f32 %v544_v57, %v480_v56 }
  0xaf   : > { %v5911_v58 = vpop.f32.mrf.mxu2 }
  0xb0   : > { %v519_v53 = vadd.f32 %v5911_v58, %v5909_v55 }
  0xb4   : > { %v619_v60 = vpop.f32.mrf.mxu1  ;;  %v5913_v61 = vpop.f32.mrf.mxu3 }
  0xb5   : > { %v538_v59 = vpop.f32.mrf.mxu0 }
  0xb6   : > { %v539_v41 = vadd.f32 %v538_v59, %v474_v16 }
  0xb8   : > { %v5915_v62 = vpop.f32.mrf.mxu2 }
  0xb9   : > { %9448 = vst [vmem:[#allocation6_spill] sm:$0xff] %v5915_v62 }
  0xbc   : > { %v622_v0 = vpop.f32.mrf.mxu1  ;;  %v709_v1 = vpop.f32.mrf.mxu3 }
  0xbd   : > { %v5917_v63 = vpop.f32.mrf.mxu0  ;;  %v631_v47 = vadd.f32 %v622_v0, %v542_v43  ;;  %v1168_v43 = vperm.slane %v1166_v51, 0 }
  0xbf   : > { %v718_v16 = vadd.f32 %v709_v1, %v631_v47  ;;  %v1184_v47 = vld [vmem:[%s9436_s3] sm:$0xff] }
  0xc0   : > { %v5919_v2 = vpop.f32.mrf.mxu2 }
  0xc1   : > { %9449 = vst [vmem:[#allocation7_spill] sm:$0xff] %v5919_v2 }
  0xc4   : > { %v625_v4 = vpop.f32.mrf.mxu1  ;;  %v712_v5 = vpop.f32.mrf.mxu3 }
  0xc5   : > { %v5921_v3 = vpop.f32.mrf.mxu0 }
  0xc8   : > { %v5923_v6 = vpop.f32.mrf.mxu2 }
  0xc9   : > { %9450 = vst [vmem:[#allocation8_spill] sm:$0xff] %v5923_v6 }
  0xcc   : > { %v792_v8 = vpop.f32.mrf.mxu1  ;;  %v874_v9 = vpop.f32.mrf.mxu3 }
  0xcd   : > { %v5925_v7 = vpop.f32.mrf.mxu0 }
  0xd0   : > { %v848_v10 = vpop.f32.mrf.mxu2 }
  0xd4   : > { %v795_v12 = vpop.f32.mrf.mxu1  ;;  %v877_v13 = vpop.f32.mrf.mxu3 }
  0xd5   : > { %v5927_v11 = vpop.f32.mrf.mxu0 }
  0xd6   : > { %9451 = vst [vmem:[#allocation9_spill] sm:$0xff] %v5927_v11  ;;  %v633_v11 = vadd.f32 %v625_v4, %v545_v46  ;;  %v804_v4 = vadd.f32 %v795_v12, %v718_v16 }
  0xd8   : > { %v851_v14 = vpop.f32.mrf.mxu2  ;;  %v720_v57 = vadd.f32 %v712_v5, %v633_v11  ;;  %v632_v11 = vadd.f32 %v5925_v7, %v519_v53 }
  0xdc   : > { %v798_v18 = vpop.f32.mrf.mxu1  ;;  %v880_v19 = vpop.f32.mrf.mxu3 }
  0xdd   : > { %v5929_v17 = vpop.f32.mrf.mxu0  ;;  %v806_v1 = vadd.f32 %v798_v18, %v720_v57  ;;  %v4411_v57 = vld [vmem:[%s9437_s4 + $0x398] sm:$0xff] }
  0xde   : > { %9452 = vst [vmem:[#allocation10_spill] sm:$0xff] %v5929_v17 }
  0xe0   : > { %v854_v21 = vpop.f32.mrf.mxu2 }
  0xe4   : > { %v932_v24 = vpop.f32.mrf.mxu1  ;;  %v999_v25 = vpop.f32.mrf.mxu3 }
  0xe5   : > { %v5931_v22 = vpop.f32.mrf.mxu0  ;;  %v933_v40 = vadd.f32 %v932_v24, %v874_v9  ;;  %v513_v9 = vadd.f32 %v5903_v20, %v5901_v15  ;;  %v630_v15 = vadd.f32 %v5921_v3, %v516_v52  ;;  %v9454_v3 = vld [vmem:[#allocation7_spill] sm:$0xff] }
  0xe6   : > { %9453 = vst [vmem:[#allocation11_spill] sm:$0xff] %v5931_v22  ;;  %v629_v22 = vadd.f32 %v619_v60, %v539_v41  ;;  %v4413_v52 = vld [vmem:[%s9437_s4 + $0x3a8] sm:$0xff] }
  0xe7   : > { %v1009_v48 = vadd.f32 %v999_v25, %v933_v40  ;;  %v628_v5 = vadd.f32 %v5917_v63, %v513_v9 }
  0xe8   : > { %v973_v26 = vpop.f32.mrf.mxu2  ;;  %v716_v56 = vadd.f32 %v5913_v61, %v629_v22  ;;  %v1169_v22 = vperm.slane %v1166_v51, 1  ;;  %v4382_v51 = vld [vmem:[%s9437_s4 + $0x2b0] sm:$0xff] }
  0xea   : > { %v802_v20 = vadd.f32 %v792_v8, %v716_v56  ;;  %v717_v8 = vadd.f32 %v9454_v3, %v630_v15  ;;  %v4410_v56 = vld [vmem:[%s9437_s4 + $0x390] sm:$0xff]  ;;  %v4384_v15 = vld [vmem:[%s9437_s4 + $0x2c0] sm:$0xff]  ;;  %v4379_v3 = vld [vmem:[%s9437_s4 + $0x298] sm:$0xff] }
  0xec   : > { %v935_v28 = vpop.f32.mrf.mxu1  ;;  %v1002_v29 = vpop.f32.mrf.mxu3 }
  0xed   : > { %v906_v27 = vpop.f32.mrf.mxu0  ;;  %v936_v33 = vadd.f32 %v935_v28, %v877_v13  ;;  %v9455_v28 = vld [vmem:[#allocation6_spill] sm:$0xff]  ;;  %v9459_v41 = vld [vmem:[#allocation11_spill] sm:$0xff] }
  0xee   : > { %v907_v62 = vadd.f32 %v906_v27, %v848_v10 }
  0xef   : > { %v1011_v44 = vadd.f32 %v1002_v29, %v936_v33  ;;  %v715_v29 = vadd.f32 %v9455_v28, %v628_v5  ;;  %v9458_v33 = vld [vmem:[#allocation9_spill] sm:$0xff]  ;;  %v4402_v5 = vld [vmem:[%s9437_s4 + $0x350] sm:$0xff] }
  0xf0   : > { %v976_v30 = vpop.f32.mrf.mxu2  ;;  %v1008_v25 = vadd.f32 %v973_v26, %v907_v62  ;;  %v4399_v28 = vld [vmem:[%s9437_s4 + $0x338] sm:$0xff] }
  0xf1   : > { %v801_v40 = vadd.f32 %v9458_v33, %v715_v29  ;;  %v4372_v29 = vld [vmem:[%s9437_s4 + $0x260] sm:$0xff]  ;;  %v4393_v33 = vld [vmem:[%s9437_s4 + $0x308] sm:$0xff] }
  0xf4   : > { %v938_v32 = vpop.f32.mrf.mxu1  ;;  %v1005_v35 = vpop.f32.mrf.mxu3 }
  0xf5   : > { %v909_v31 = vpop.f32.mrf.mxu0  ;;  %v939_v49 = vadd.f32 %v938_v32, %v880_v19 }
  0xf6   : > { %v910_v17 = vadd.f32 %v909_v31, %v851_v14  ;;  %v9457_v31 = vld [vmem:[#allocation10_spill] sm:$0xff] }
  0xf7   : > { %v1013_v59 = vadd.f32 %v1005_v35, %v939_v49  ;;  %v803_v32 = vadd.f32 %v9457_v31, %v717_v8  ;;  %v4415_v49 = vld [vmem:[%s9437_s4 + $0x3b8] sm:$0xff]  ;;  %v4398_v8 = vld [vmem:[%s9437_s4 + $0x330] sm:$0xff]  ;;  %v4397_v31 = vld [vmem:[%s9437_s4 + $0x328] sm:$0xff] }
  0xf8   : > { %v979_v23 = vpop.f32.mrf.mxu2  ;;  %v1010_v10 = vadd.f32 %v976_v30, %v910_v17 }
  0xfc   : > { %v1072_v37 = vpop.f32.mrf.mxu1  ;;  %v1145_v38 = vpop.f32.mrf.mxu3 }
  0xfd   : > { %v912_v36 = vpop.f32.mrf.mxu0  ;;  %v1082_v6 = vadd.f32 %v1072_v37, %v1009_v48  ;;  %v4414_v48 = vld [vmem:[%s9437_s4 + $0x3b0] sm:$0xff] }
  0xfe   : > { %v913_v54 = vadd.f32 %v912_v36, %v854_v21  ;;  %v9456_v21 = vld [vmem:[#allocation8_spill] sm:$0xff] }
  0xff   : > { %v1155_v14 = vadd.f32 %v1145_v38, %v1082_v6  ;;  %v719_v30 = vadd.f32 %v9456_v21, %v632_v11  ;;  %v4378_v11 = vld [vmem:[%s9437_s4 + $0x290] sm:$0xff]  ;;  %v4375_v21 = vld [vmem:[%s9437_s4 + $0x278] sm:$0xff] }
 0x100   : > { %v1119_v39 = vpop.f32.mrf.mxu2  ;;  %v1012_v18 = vadd.f32 %v979_v23, %v913_v54  ;;  %v4404_v54 = vld [vmem:[%s9437_s4 + $0x360] sm:$0xff] }
 0x101   : > { %v1161_v6 = vmax.f32 %v802_v20, %v1155_v14  ;;  %v4408_v14 = vld [vmem:[%s9437_s4 + $0x380] sm:$0xff]  ;;  %v4406_v20 = vld [vmem:[%s9437_s4 + $0x370] sm:$0xff] }
 0x103   : > { %v1173_v38 = vadd.f32 %v1169_v22, %v1161_v6  ;;  %v4381_v6 = vld [vmem:[%s9437_s4 + $0x2a8] sm:$0xff] }
 0x104   : > { %v1075_v34 = vpop.f32.mrf.mxu1  ;;  %v1148_v45 = vpop.f32.mrf.mxu3 }
 0x105   : > { %v1046_v42 = vpop.f32.mrf.mxu0  ;;  %v1084_v50 = vadd.f32 %v1075_v34, %v1011_v44  ;;  %v1179_v46 = vmax.f32 %v1173_v38, 0.0  ;;  %v4390_v38 = vld [vmem:[%s9437_s4 + $0x2f0] sm:$0xff] }
 0x106   : > { %v1081_v12 = vadd.f32 %v1046_v42, %v1008_v25  ;;  %v805_v42 = vadd.f32 %v9459_v41, %v719_v30  ;;  %v4407_v25 = vld [vmem:[%s9437_s4 + $0x378] sm:$0xff]  ;;  %v4394_v30 = vld [vmem:[%s9437_s4 + $0x310] sm:$0xff]  ;;  %v4369_v41 = vld [vmem:[%s9437_s4 + $0x248] sm:$0xff] }
 0x107   : > { %v1157_v13 = vadd.f32 %v1148_v45, %v1084_v50 }
 0x108   : > { %v1122_v2 = vpop.f32.mrf.mxu2  ;;  %v1154_v36 = vadd.f32 %v1119_v39, %v1081_v12  ;;  %v4350_v39 = vld [vmem:[%s9436_s3 + $0x10] sm:$0xff]  ;;  %v4400_v12 = vld [vmem:[%s9437_s4 + $0x340] sm:$0xff] }
 0x109   : > { %v1163_v55 = vmax.f32 %v804_v4, %v1157_v13  ;;  %v4412_v13 = vld [vmem:[%s9437_s4 + $0x3a0] sm:$0xff]  ;;  %v1185_v4 = vld [vmem:[%s9436_s3 + $0x8] sm:$0xf] }
 0x10a   : > { %v1160_v44 = vmax.f32 %v801_v40, %v1154_v36  ;;  %v4395_v36 = vld [vmem:[%s9437_s4 + $0x318] sm:$0xff]  ;;  %v4366_v40 = vld [vmem:[%s9437_s4 + $0x230] sm:$0xff] }
 0x10b   : > { %v1175_v27 = vadd.f32 %v1169_v22, %v1163_v55  ;;  %v4383_v55 = vld [vmem:[%s9437_s4 + $0x2b8] sm:$0xff] }
 0x10c   : > { %v1078_v0 = vpop.f32.mrf.mxu1  ;;  %v1151_v24 = vpop.f32.mrf.mxu3 }
 0x10d   : > { %v1049_v60 = vpop.f32.mrf.mxu0  ;;  %v1086_v19 = vadd.f32 %v1078_v0, %v1013_v59  ;;  %v1181_v34 = vmax.f32 %v1175_v27, 0.0  ;;  %v1172_v59 = vadd.f32 %v1168_v43, %v1160_v44  ;;  %v4351_v0 = vld [vmem:[%s9436_s3 + $0x18] sm:$0xf]  ;;  %v4396_v27 = vld [vmem:[%s9437_s4 + $0x320] sm:$0xff]  ;;  %v4389_v44 = vld [vmem:[%s9437_s4 + $0x2e8] sm:$0xff] }
 0x10e   : > { %v1083_v58 = vadd.f32 %v1049_v60, %v1010_v10  ;;  %v4386_v10 = vld [vmem:[%s9437_s4 + $0x2d0] sm:$0xff] }
 0x10f   : > { %v1159_v61 = vadd.f32 %v1151_v24, %v1086_v19  ;;  %v1178_v60 = vmax.f32 %v1172_v59, 0.0  ;;  %v4387_v19 = vld [vmem:[%s9437_s4 + $0x2d8] sm:$0xff]  ;;  %v4409_v24 = vld [vmem:[%s9437_s4 + $0x388] sm:$0xff]  ;;  %v1322_v59 = vld [vmem:[%s9437_s4 + $0xc0] sm:$0xff] }
 0x110   : > { %v1156_v62 = vadd.f32 %v1122_v2, %v1083_v58  ;;  %v1125_v63 = vpop.f32.mrf.mxu2  ;;  %v4405_v58 = vld [vmem:[%s9437_s4 + $0x368] sm:$0xff] }
 0x111   : > { %v1165_v17 = vmax.f32 %v806_v1, %v1159_v61  ;;  %v4385_v1 = vld [vmem:[%s9437_s4 + $0x2c8] sm:$0xff]  ;;  %v4380_v61 = vld [vmem:[%s9437_s4 + $0x2a0] sm:$0xff] }
 0x112   : > { %v1162_v23 = vmax.f32 %v803_v32, %v1156_v62  ;;  %v4374_v62 = vld [vmem:[%s9437_s4 + $0x270] sm:$0xff] }
 0x113   : > { %v1177_v26 = vadd.f32 %v1169_v22, %v1165_v17  ;;  %v4403_v17 = vld [vmem:[%s9437_s4 + $0x358] sm:$0xff]  ;;  %v4376_v22 = vld [vmem:[%s9437_s4 + $0x280] sm:$0xff]  ;;  %v4370_v32 = vld [vmem:[%s9437_s4 + $0x250] sm:$0xff] }
 0x114   : > { %v1174_v9 = vadd.f32 %v1168_v43, %v1162_v23  ;;  %v4391_v23 = vld [vmem:[%s9437_s4 + $0x2f8] sm:$0xff] }
 0x115   : > { %v1052_v35 = vpop.f32.mrf.mxu0  ;;  %v1183_v7 = vmax.f32 %v1177_v26, 0.0  ;;  %v4377_v26 = vld [vmem:[%s9437_s4 + $0x288] sm:$0xff] }
 0x116   : > { %v1085_v37 = vadd.f32 %v1052_v35, %v1012_v18  ;;  %v1180_v53 = vmax.f32 %v1174_v9, 0.0  ;;  %v4401_v18 = vld [vmem:[%s9437_s4 + $0x348] sm:$0xff]  ;;  %v1354_v9 = vld [vmem:[%s9437_s4 + $0x1c0] sm:$0xff] }
 0x117   : > { %1229 = vmatpush.msrb.mxu1 %v1183_v7  ;;  %1284 = vmatpush.msrb.mxu3 %v1183_v7  ;;  %v4373_v35 = vld [vmem:[%s9437_s4 + $0x268] sm:$0xff]  ;;  %v4368_v7 = vld [vmem:[%s9437_s4 + $0x240] sm:$0xff] }
 0x118   : > { %v1158_v2 = vadd.f32 %v1125_v63, %v1085_v37  ;;  %v4392_v63 = vld [vmem:[%s9437_s4 + $0x300] sm:$0xff]  ;;  %v4371_v37 = vld [vmem:[%s9437_s4 + $0x258] sm:$0xff] }
 0x119   : > { %1230 = vmatpush.msrb.mxu1 %v1181_v34  ;;  %1285 = vmatpush.msrb.mxu3 %v1181_v34  ;;  %v1328_v34 = vld [vmem:[%s9437_s4 + $0xf0] sm:$0xff] }
 0x11a   : > { %v1164_v45 = vmax.f32 %v805_v42, %v1158_v2  ;;  %v4388_v42 = vld [vmem:[%s9437_s4 + $0x2e0] sm:$0xff] }
 0x11b   : > { %1231 = vmatpush.msrb.mxu1 %v1179_v46  ;;  %1286 = vmatpush.msrb.mxu3 %v1179_v46  ;;  %v4364_v2 = vld [vmem:[%s9437_s4 + $0x220] sm:$0xff] }
 0x11c   : > { %v1176_v50 = vadd.f32 %v1168_v43, %v1164_v45  ;;  %4354 = vmatmul.msk.f32.vlgmr.msrb.gmra.mxu3 %vm1186_vm5, %v4350_v39  ;;  %4348 = vmatmul.msk.f32.vlgmr.msrb.gmra.mxu1 %vm1186_vm5, %v1184_v47  ;;  %v4367_v43 = vld [vmem:[%s9437_s4 + $0x238] sm:$0xff]  ;;  %v4362_v45 = vld [vmem:[%s9437_s4 + $0x210] sm:$0xff]  ;;  %v1326_v46 = vld [vmem:[%s9437_s4 + $0xe0] sm:$0xff] }
 0x11d   : > { %1455 = vmatpush.msra.mxu1 %v4414_v48  ;;  %1495 = vmatpush.msra.mxu3 %v4415_v49  ;;  %v4360_v48 = vld [vmem:[%s9437_s4 + $0x200] sm:$0xff]  ;;  %v1324_v49 = vld [vmem:[%s9437_s4 + $0xd0] sm:$0xff] }
 0x11e   : > { %v1182_v16 = vmax.f32 %v1176_v50, 0.0  ;;  %v4363_v50 = vld [vmem:[%s9437_s4 + $0x218] sm:$0xff] }
 0x11f   : > { %1456 = vmatpush.msra.mxu1 %v4412_v13  ;;  %1496 = vmatpush.msra.mxu3 %v4413_v52  ;;  %v4361_v13 = vld [vmem:[%s9437_s4 + $0x208] sm:$0xff]  ;;  %v1352_v52 = vld [vmem:[%s9437_s4 + $0x1b0] sm:$0xff] }
 0x120   : > { %1206 = vmatpush.msra.mxu0 %v1182_v16  ;;  %1261 = vmatpush.msrb.mxu2 %v1182_v16  ;;  %v4358_v16 = vld [vmem:[%s9437_s4 + $0x1f0] sm:$0xff] }
 0x121   : > { %1457 = vmatpush.msra.mxu1 %v4410_v56  ;;  %1497 = vmatpush.msra.mxu3 %v4411_v57  ;;  %v1320_v56 = vld [vmem:[%s9437_s4 + $0xb0] sm:$0xff]  ;;  %v1329_v57 = vld [vmem:[%s9437_s4 + $0xf8] sm:$0xff] }
 0x122   : > { %1207 = vmatpush.msra.mxu0 %v1180_v53  ;;  %1262 = vmatpush.msrb.mxu2 %v1180_v53  ;;  %v4356_v53 = vld [vmem:[%s9437_s4 + $0x1e0] sm:$0xff] }
 0x123   : > { %1458 = vmatpush.msra.mxu1 %v4408_v14  ;;  %1498 = vmatpush.msra.mxu3 %v4409_v24  ;;  %v4357_v14 = vld [vmem:[%s9437_s4 + $0x1e8] sm:$0xff]  ;;  %v1348_v24 = vld [vmem:[%s9437_s4 + $0x190] sm:$0xff] }
 0x124   : > { %1208 = vmatpush.msra.mxu0 %v1178_v60  ;;  %1263 = vmatpush.msrb.mxu2 %v1178_v60  ;;  %v4359_v60 = vld [vmem:[%s9437_s4 + $0x1f8] sm:$0xff] }
 0x125   : > { %4352 = vmatmul.msk.f32.vlgmr.msrb.gmra.mxu2 %vm1186_vm5, %v4350_v39  ;;  %4355 = vmatmul.msk.f32.gmra.mxu3 %vm1186_vm5, %v4351_v0  ;;  %v4365_v39 = vld [vmem:[%s9437_s4 + $0x228] sm:$0xff] }
 0x126   : > { %4346 = vmatmul.msk.f32.vlgmr.msra.gmra.mxu0 %vm1186_vm5, %v1184_v47  ;;  %4349 = vmatmul.msk.f32.gmra.mxu1 %vm1186_vm5, %v1185_v4  ;;  %v1356_v47 = vld [vmem:[%s9437_s4 + $0x1d0] sm:$0xff] }
 0x127   : > { %1433 = vmatpush.msrb.mxu0 %v4386_v10  ;;  %1473 = vmatpush.msra.mxu2 %v4387_v19  ;;  %v1327_v10 = vld [vmem:[%s9437_s4 + $0xe8] sm:$0xff]  ;;  %v1316_v19 = vld [vmem:[%s9437_s4 + $0x90] sm:$0xff] }
 0x128   : > { %1459 = vmatpush.msra.mxu1 %v4406_v20  ;;  %1499 = vmatpush.msra.mxu3 %v4407_v25  ;;  %v1357_v20 = vld [vmem:[%s9437_s4 + $0x1d8] sm:$0xff]  ;;  %v1346_v25 = vld [vmem:[%s9437_s4 + $0x180] sm:$0xff] }
 0x129   : > { %1434 = vmatpush.msrb.mxu0 %v4384_v15  ;;  %1474 = vmatpush.msra.mxu2 %v4385_v1  ;;  %v1325_v15 = vld [vmem:[%s9437_s4 + $0xd8] sm:$0xff]  ;;  %v1314_v1 = vld [vmem:[%s9437_s4 + $0x80] sm:$0xff] }
 0x12a   : > { %1460 = vmatpush.msra.mxu1 %v4404_v54  ;;  %1500 = vmatpush.msra.mxu3 %v4405_v58  ;;  %v1355_v54 = vld [vmem:[%s9437_s4 + $0x1c8] sm:$0xff]  ;;  %v1344_v58 = vld [vmem:[%s9437_s4 + $0x170] sm:$0xff] }
 0x12b   : > { %1435 = vmatpush.msrb.mxu0 %v4382_v51  ;;  %1475 = vmatpush.msra.mxu2 %v4383_v55  ;;  %v1323_v51 = vld [vmem:[%s9437_s4 + $0xc8] sm:$0xff]  ;;  %v1312_v55 = vld [vmem:[%s9437_s4 + $0x70] sm:$0xff] }
 0x12c   : > { %1461 = vmatpush.msra.mxu1 %v4402_v5  ;;  %1501 = vmatpush.msra.mxu3 %v4403_v17  ;;  %v1353_v5 = vld [vmem:[%s9437_s4 + $0x1b8] sm:$0xff]  ;;  %v1351_v17 = vld [vmem:[%s9437_s4 + $0x1a8] sm:$0xff] }
 0x12d   : > { %4353 = vmatmul.msk.f32.gmra.mxu2 %vm1186_vm5, %v4351_v0  ;;  %1436 = vmatpush.msrb.mxu0 %v4380_v61  ;;  %v1318_v0 = vld [vmem:[%s9437_s4 + $0xa0] sm:$0xff]  ;;  %v1321_v61 = vld [vmem:[%s9437_s4 + $0xb8] sm:$0xff] }
 0x12e   : > { %4347 = vmatmul.msk.f32.gmra.mxu0 %vm1186_vm5, %v1185_v4  ;;  %1476 = vmatpush.msra.mxu2 %v4381_v6  ;;  %v1350_v4 = vld [vmem:[%s9437_s4 + $0x1a0] sm:$0xff] }
 0x12f   : > { %1437 = vmatpush.msrb.mxu0 %v4378_v11  ;;  %1462 = vmatpush.msra.mxu1 %v4400_v12  ;;  %v1310_v11 = vld [vmem:[%s9437_s4 + $0x60] sm:$0xff]  ;;  %v1319_v12 = vld [vmem:[%s9437_s4 + $0xa8] sm:$0xff] }
 0x130   : > { %1477 = vmatpush.msra.mxu2 %v4379_v3  ;;  %1502 = vmatpush.msra.mxu3 %v4401_v18  ;;  %v1342_v6 = vld [vmem:[%s9437_s4 + $0x160] sm:$0xff]  ;;  %v1340_v3 = vld [vmem:[%s9437_s4 + $0x150] sm:$0xff]  ;;  %v1349_v18 = vld [vmem:[%s9437_s4 + $0x198] sm:$0xff] }
 0x131   : > { %1438 = vmatpush.msrb.mxu0 %v4376_v22  ;;  %1463 = vmatpush.msra.mxu1 %v4398_v8  ;;  %v1308_v22 = vld [vmem:[%s9437_s4 + $0x50] sm:$0xff]  ;;  %v1317_v8 = vld [vmem:[%s9437_s4 + $0x98] sm:$0xff] }
 0x132   : > { %1478 = vmatpush.msra.mxu2 %v4377_v26  ;;  %1503 = vmatpush.msra.mxu3 %v4399_v28  ;;  %v1338_v26 = vld [vmem:[%s9437_s4 + $0x140] sm:$0xff]  ;;  %v1347_v28 = vld [vmem:[%s9437_s4 + $0x188] sm:$0xff] }
 0x133   : > { %1439 = vmatpush.msrb.mxu0 %v4374_v62  ;;  %1464 = vmatpush.msra.mxu1 %v4396_v27  ;;  %v1306_v62 = vld [vmem:[%s9437_s4 + $0x40] sm:$0xff]  ;;  %v1315_v27 = vld [vmem:[%s9437_s4 + $0x88] sm:$0xff] }
 0x134   : > { %1479 = vmatpush.msra.mxu2 %v4375_v21  ;;  %1504 = vmatpush.msra.mxu3 %v4397_v31  ;;  %v1336_v21 = vld [vmem:[%s9437_s4 + $0x130] sm:$0xff]  ;;  %v1345_v31 = vld [vmem:[%s9437_s4 + $0x178] sm:$0xff] }
 0x135   : > { %1440 = vmatpush.msrb.mxu0 %v4372_v29  ;;  %1465 = vmatpush.msra.mxu1 %v4394_v30  ;;  %v1304_v29 = vld [vmem:[%s9437_s4 + $0x30] sm:$0xff]  ;;  %v1313_v30 = vld [vmem:[%s9437_s4 + $0x78] sm:$0xff] }
 0x136   : > { %1480 = vmatpush.msra.mxu2 %v4373_v35  ;;  %1505 = vmatpush.msra.mxu3 %v4395_v36  ;;  %v1334_v35 = vld [vmem:[%s9437_s4 + $0x120] sm:$0xff]  ;;  %v1343_v36 = vld [vmem:[%s9437_s4 + $0x168] sm:$0xff] }
 0x137   : > { %1441 = vmatpush.msrb.mxu0 %v4370_v32  ;;  %1466 = vmatpush.msra.mxu1 %v4392_v63  ;;  %v1302_v32 = vld [vmem:[%s9437_s4 + $0x20] sm:$0xff]  ;;  %v1311_v63 = vld [vmem:[%s9437_s4 + $0x68] sm:$0xff] }
 0x138   : > { %1481 = vmatpush.msra.mxu2 %v4371_v37  ;;  %1506 = vmatpush.msra.mxu3 %v4393_v33  ;;  %v1332_v37 = vld [vmem:[%s9437_s4 + $0x110] sm:$0xff]  ;;  %v1341_v33 = vld [vmem:[%s9437_s4 + $0x158] sm:$0xff] }
 0x139   : > { %1442 = vmatpush.msrb.mxu0 %v4368_v7  ;;  %1467 = vmatpush.msra.mxu1 %v4390_v38  ;;  %v1300_v7 = vld [vmem:[%s9437_s4 + $0x10] sm:$0xff]  ;;  %v1309_v38 = vld [vmem:[%s9437_s4 + $0x58] sm:$0xff] }
 0x13a   : > { %1482 = vmatpush.msra.mxu2 %v4369_v41  ;;  %1507 = vmatpush.msra.mxu3 %v4391_v23  ;;  %v1330_v41 = vld [vmem:[%s9437_s4 + $0x100] sm:$0xff]  ;;  %v1339_v23 = vld [vmem:[%s9437_s4 + $0x148] sm:$0xff] }
 0x13b   : > { %1443 = vmatpush.msrb.mxu0 %v4366_v40  ;;  %1468 = vmatpush.msra.mxu1 %v4388_v42  ;;  %v1298_v40 = vld [vmem:[%s9437_s4] sm:$0xff]  ;;  %v1307_v42 = vld [vmem:[%s9437_s4 + $0x48] sm:$0xff] }
 0x13c   : > { %1483 = vmatpush.msra.mxu2 %v4367_v43  ;;  %1508 = vmatpush.msra.mxu3 %v4389_v44  ;;  %v1303_v43 = vld [vmem:[%s9437_s4 + $0x28] sm:$0xff] }
 0x13d   : > { %1444 = vmatpush.msrb.mxu0 %v4364_v2  ;;  %1515 = vmatpush.msrb.mxu1 %v1328_v34  ;;  %v1305_v2 = vld [vmem:[%s9437_s4 + $0x38] sm:$0xff]  ;;  %v1335_v44 = vld [vmem:[%s9437_s4 + $0x128] sm:$0xff] }
 0x13e   : > { %1484 = vmatpush.msra.mxu2 %v4365_v39  ;;  %1537 = vmatpush.msrb.mxu3 %v1356_v47  ;;  %v1337_v34 = vld [vmem:[%s9437_s4 + $0x138] sm:$0xff]  ;;  %v1299_v39 = vld [vmem:[%s9437_s4 + $0x8] sm:$0xff] }
 0x13f   : > { %1445 = vmatpush.msrb.mxu0 %v4362_v45  ;;  %1516 = vmatpush.msrb.mxu1 %v1326_v46  ;;  %v1301_v45 = vld [vmem:[%s9437_s4 + $0x18] sm:$0xff]  ;;  %v1331_v47 = vld [vmem:[%s9437_s4 + $0x108] sm:$0xff] }
 0x140   : > { %1485 = vmatpush.msra.mxu2 %v4363_v50  ;;  %1538 = vmatpush.msrb.mxu3 %v1354_v9  ;;  %v1333_v46 = vld [vmem:[%s9437_s4 + $0x118] sm:$0xff] }
 0x141   : > { %1446 = vmatpush.msrb.mxu0 %v4360_v48  ;;  %1517 = vmatpush.msrb.mxu1 %v1324_v49 }
 0x142   : > { %1486 = vmatpush.msra.mxu2 %v4361_v13  ;;  %1539 = vmatpush.msrb.mxu3 %v1352_v52 }
 0x143   : > { %1447 = vmatpush.msrb.mxu0 %v4358_v16  ;;  %1518 = vmatpush.msrb.mxu1 %v1322_v59 }
 0x144   : > { %1487 = vmatpush.msra.mxu2 %v4359_v60  ;;  %1540 = vmatpush.msrb.mxu3 %v1350_v4  ;;  %v4478_v60 = vld [vmem:[%s9437_s4 + $0x590] sm:$0xff] }
 0x145   : > { %1448 = vmatpush.msrb.mxu0 %v4356_v53  ;;  %1519 = vmatpush.msrb.mxu1 %v1320_v56 }
 0x146   : > { %1488 = vmatpush.msra.mxu2 %v4357_v14  ;;  %1541 = vmatpush.msrb.mxu3 %v1348_v24  ;;  %v4476_v14 = vld [vmem:[%s9437_s4 + $0x580] sm:$0xff] }
 0x147   : > { %1555 = vmatpush.msra.mxu0 %v1329_v57  ;;  %1520 = vmatpush.msrb.mxu1 %v1318_v0  ;;  %v4450_v57 = vld [vmem:[%s9437_s4 + $0x4b0] sm:$0xff] }
 0x148   : > { %1577 = vmatpush.msrb.mxu2 %v1357_v20  ;;  %1542 = vmatpush.msrb.mxu3 %v1346_v25  ;;  %v4474_v20 = vld [vmem:[%s9437_s4 + $0x570] sm:$0xff]  ;;  %v4444_v25 = vld [vmem:[%s9437_s4 + $0x480] sm:$0xff] }
 0x149   : > { %1556 = vmatpush.msra.mxu0 %v1327_v10  ;;  %1521 = vmatpush.msrb.mxu1 %v1316_v19  ;;  %v4448_v10 = vld [vmem:[%s9437_s4 + $0x4a0] sm:$0xff] }
 0x14a   : > { %1578 = vmatpush.msrb.mxu2 %v1355_v54  ;;  %1543 = vmatpush.msrb.mxu3 %v1344_v58 }
 0x14b   : > { %1557 = vmatpush.msra.mxu0 %v1325_v15  ;;  %1522 = vmatpush.msrb.mxu1 %v1314_v1  ;;  %v4446_v15 = vld [vmem:[%s9437_s4 + $0x490] sm:$0xff] }
 0x14c   : > { %1579 = vmatpush.msrb.mxu2 %v1353_v5  ;;  %1544 = vmatpush.msrb.mxu3 %v1342_v6  ;;  %v4470_v5 = vld [vmem:[%s9437_s4 + $0x550] sm:$0xff]  ;;  %v4479_v6 = vld [vmem:[%s9437_s4 + $0x598] sm:$0xff] }
 0x14d   : > { %1558 = vmatpush.msra.mxu0 %v1323_v51  ;;  %1523 = vmatpush.msrb.mxu1 %v1312_v55  ;;  %v4472_v51 = vld [vmem:[%s9437_s4 + $0x560] sm:$0xff] }
 0x14e   : > { %1580 = vmatpush.msrb.mxu2 %v1351_v17  ;;  %1545 = vmatpush.msrb.mxu3 %v1340_v3  ;;  %v4468_v17 = vld [vmem:[%s9437_s4 + $0x540] sm:$0xff]  ;;  %v4477_v3 = vld [vmem:[%s9437_s4 + $0x588] sm:$0xff] }
 0x14f   : > { %1559 = vmatpush.msra.mxu0 %v1321_v61  ;;  %1524 = vmatpush.msrb.mxu1 %v1310_v11  ;;  %v4442_v61 = vld [vmem:[%s9437_s4 + $0x470] sm:$0xff]  ;;  %v4451_v11 = vld [vmem:[%s9437_s4 + $0x4b8] sm:$0xff] }
 0x150   : > { %1581 = vmatpush.msrb.mxu2 %v1349_v18  ;;  %1546 = vmatpush.msrb.mxu3 %v1338_v26  ;;  %v4466_v18 = vld [vmem:[%s9437_s4 + $0x530] sm:$0xff]  ;;  %v4475_v26 = vld [vmem:[%s9437_s4 + $0x578] sm:$0xff] }
 0x151   : > { %1560 = vmatpush.msra.mxu0 %v1319_v12  ;;  %1525 = vmatpush.msrb.mxu1 %v1308_v22  ;;  %v4440_v12 = vld [vmem:[%s9437_s4 + $0x460] sm:$0xff]  ;;  %v4449_v22 = vld [vmem:[%s9437_s4 + $0x4a8] sm:$0xff] }
 0x152   : > { %1582 = vmatpush.msrb.mxu2 %v1347_v28  ;;  %1547 = vmatpush.msrb.mxu3 %v1336_v21  ;;  %v4464_v28 = vld [vmem:[%s9437_s4 + $0x520] sm:$0xff]  ;;  %v4473_v21 = vld [vmem:[%s9437_s4 + $0x568] sm:$0xff] }
 0x153   : > { %1561 = vmatpush.msra.mxu0 %v1317_v8  ;;  %1526 = vmatpush.msrb.mxu1 %v1306_v62  ;;  %v4438_v8 = vld [vmem:[%s9437_s4 + $0x450] sm:$0xff]  ;;  %v4447_v62 = vld [vmem:[%s9437_s4 + $0x498] sm:$0xff] }
 0x154   : > { %1583 = vmatpush.msrb.mxu2 %v1345_v31  ;;  %1548 = vmatpush.msrb.mxu3 %v1334_v35  ;;  %v4462_v31 = vld [vmem:[%s9437_s4 + $0x510] sm:$0xff]  ;;  %v4471_v35 = vld [vmem:[%s9437_s4 + $0x558] sm:$0xff] }
 0x155   : > { %1562 = vmatpush.msra.mxu0 %v1315_v27  ;;  %1527 = vmatpush.msrb.mxu1 %v1304_v29  ;;  %v4436_v27 = vld [vmem:[%s9437_s4 + $0x440] sm:$0xff]  ;;  %v4445_v29 = vld [vmem:[%s9437_s4 + $0x488] sm:$0xff] }
 0x156   : > { %1584 = vmatpush.msrb.mxu2 %v1343_v36  ;;  %1549 = vmatpush.msrb.mxu3 %v1332_v37  ;;  %v4460_v36 = vld [vmem:[%s9437_s4 + $0x500] sm:$0xff]  ;;  %v4469_v37 = vld [vmem:[%s9437_s4 + $0x548] sm:$0xff] }
 0x157   : > { %1563 = vmatpush.msra.mxu0 %v1313_v30  ;;  %1528 = vmatpush.msrb.mxu1 %v1302_v32  ;;  %v4434_v30 = vld [vmem:[%s9437_s4 + $0x430] sm:$0xff]  ;;  %v4443_v32 = vld [vmem:[%s9437_s4 + $0x478] sm:$0xff] }
 0x158   : > { %1585 = vmatpush.msrb.mxu2 %v1341_v33  ;;  %1550 = vmatpush.msrb.mxu3 %v1330_v41  ;;  %v4458_v33 = vld [vmem:[%s9437_s4 + $0x4f0] sm:$0xff]  ;;  %v4467_v41 = vld [vmem:[%s9437_s4 + $0x538] sm:$0xff] }
 0x159   : > { %1564 = vmatpush.msra.mxu0 %v1311_v63  ;;  %1529 = vmatpush.msrb.mxu1 %v1300_v7  ;;  %v4432_v63 = vld [vmem:[%s9437_s4 + $0x420] sm:$0xff]  ;;  %v4441_v7 = vld [vmem:[%s9437_s4 + $0x468] sm:$0xff] }
 0x15a   : > { %1586 = vmatpush.msrb.mxu2 %v1339_v23  ;;  %v4456_v23 = vld [vmem:[%s9437_s4 + $0x4e0] sm:$0xff] }
 0x15b   : > { %1565 = vmatpush.msra.mxu0 %v1309_v38  ;;  %1530 = vmatpush.msrb.mxu1 %v1298_v40  ;;  %v4430_v38 = vld [vmem:[%s9437_s4 + $0x410] sm:$0xff]  ;;  %v4439_v40 = vld [vmem:[%s9437_s4 + $0x458] sm:$0xff] }
 0x15c   : > { %1587 = vmatpush.msrb.mxu2 %v1337_v34  ;;  %v4465_v34 = vld [vmem:[%s9437_s4 + $0x528] sm:$0xff] }
 0x15d   : > { %1566 = vmatpush.msra.mxu0 %v1307_v42  ;;  %v4428_v42 = vld [vmem:[%s9437_s4 + $0x400] sm:$0xff] }
 0x15e   : > { %1588 = vmatpush.msrb.mxu2 %v1335_v44  ;;  %v4454_v44 = vld [vmem:[%s9437_s4 + $0x4d0] sm:$0xff] }
 0x15f   : > { %1567 = vmatpush.msra.mxu0 %v1305_v2  ;;  %v4437_v2 = vld [vmem:[%s9437_s4 + $0x448] sm:$0xff] }
 0x160   : > { %1589 = vmatpush.msrb.mxu2 %v1333_v46  ;;  %v4463_v46 = vld [vmem:[%s9437_s4 + $0x518] sm:$0xff] }
 0x161   : > { %1568 = vmatpush.msra.mxu0 %v1303_v43  ;;  %v4426_v43 = vld [vmem:[%s9437_s4 + $0x3f0] sm:$0xff] }
 0x162   : > { %1590 = vmatpush.msrb.mxu2 %v1331_v47  ;;  %v4424_v47 = vld [vmem:[%s9437_s4 + $0x3e0] sm:$0xff] }
 0x163   : > { %1569 = vmatpush.msra.mxu0 %v1301_v45  ;;  %v4435_v45 = vld [vmem:[%s9437_s4 + $0x438] sm:$0xff] }
 0x165   : > { %1570 = vmatpush.msra.mxu0 %v1299_v39 }
 0x199   : > { %v1233_v48 = vpop.f32.mrf.mxu1 }
 0x19f   : > { %v1288_v49 = vpop.f32.mrf.mxu3 }
 0x1a0   : > { %v6332_v16 = vmax.f32 %v1233_v48, %v1288_v49  ;;  %v4452_v48 = vld [vmem:[%s9437_s4 + $0x4c0] sm:$0xff]  ;;  %v4433_v49 = vld [vmem:[%s9437_s4 + $0x428] sm:$0xff] }
 0x1a2   : > { %v1426_v56 = vrot.slane %v6332_v16, 1 }
 0x1a3   : > { %v1210_v50 = vpop.f32.mrf.mxu0  ;;  %v1236_v9 = vpop.f32.mrf.mxu1 }
 0x1a8   : > { %v1265_v59 = vpop.f32.mrf.mxu2  ;;  %v1291_v13 = vpop.f32.mrf.mxu3 }
 0x1a9   : > { %v6334_v52 = vmax.f32 %v1236_v9, %v1291_v13  ;;  %v6357_v19 = vmax.f32 %v1210_v50, %v1265_v59  ;;  %v4461_v50 = vld [vmem:[%s9437_s4 + $0x508] sm:$0xff]  ;;  %v1659_v9 = vrot.slane %v6332_v16, 2  ;;  %v4422_v59 = vld [vmem:[%s9437_s4 + $0x3d0] sm:$0xff] }
 0x1aa   : > { %v4512_v13 = vld [vmem:[%s9437_s4 + $0x690] sm:$0xff] }
 0x1ab   : > { %v1427_v53 = vrot.slane %v6334_v52, 1  ;;  %v1213_v4 = vpop.f32.mrf.mxu0  ;;  %v1423_v54 = vrot.slane %v6357_v19, 1  ;;  %v1660_v39 = vrot.slane %v6334_v52, 2 }
 0x1ad   : > { %v6345_v0 = vsel %vm409_vm2, %v1426_v56, %v1427_v53  ;;  %v4431_v53 = vld [vmem:[%s9437_s4 + $0x418] sm:$0xff]  ;;  %v6518_v56 = vsel %vm556_vm4, %v1659_v9, %v1660_v39  ;;  %v4488_v39 = vld [vmem:[%s9437_s4 + $0x5d0] sm:$0xff]  ;;  %v4518_v9 = vld [vmem:[%s9437_s4 + $0x6c0] sm:$0xff] }
 0x1ae   : > { %4416 = vmatmul.msk.f32.vlgmr.msra.gmra.mxu1 %vm1430_vm6, %v6345_v0  ;;  %4417 = vmatmul.msk.f32.vlgmr.msra.gmra.mxu3 %vm1430_vm6, %v6345_v0 }
 0x1af   : > { %1665 = vmatpush.msra.mxu3 %v4450_v57  ;;  %1687 = vmatpush.msra.mxu1 %v4478_v60  ;;  %v4459_v57 = vld [vmem:[%s9437_s4 + $0x4f8] sm:$0xff]  ;;  %v4420_v60 = vld [vmem:[%s9437_s4 + $0x3c0] sm:$0xff] }
 0x1b0   : > { %v1268_v24 = vpop.f32.mrf.mxu2 }
 0x1b1   : > { %v6365_v1 = vmax.f32 %v1213_v4, %v1268_v24  ;;  %1666 = vmatpush.msra.mxu3 %v4448_v10  ;;  %1688 = vmatpush.msra.mxu1 %v4476_v14  ;;  %v4510_v10 = vld [vmem:[%s9437_s4 + $0x680] sm:$0xff]  ;;  %v4429_v14 = vld [vmem:[%s9437_s4 + $0x408] sm:$0xff] }
 0x1b2   : > { %v4457_v24 = vld [vmem:[%s9437_s4 + $0x4e8] sm:$0xff] }
 0x1b3   : > { %1667 = vmatpush.msra.mxu3 %v4446_v15  ;;  %1689 = vmatpush.msra.mxu1 %v4474_v20  ;;  %v1424_v55 = vrot.slane %v6365_v1, 1  ;;  %v1657_v4 = vrot.slane %v6365_v1, 2  ;;  %v1656_v15 = vrot.slane %v6357_v19, 2  ;;  %v4508_v20 = vld [vmem:[%s9437_s4 + $0x670] sm:$0xff] }
 0x1b5   : > { %1668 = vmatpush.msra.mxu3 %v4444_v25  ;;  %1690 = vmatpush.msra.mxu1 %v4472_v51  ;;  %v6376_v58 = vsel %vm409_vm2, %v1423_v54, %v1424_v55  ;;  %v4540_v25 = vld [vmem:[%s9437_s4 + $0x770] sm:$0xff]  ;;  %v6546_v51 = vsel %vm556_vm4, %v1656_v15, %v1657_v4  ;;  %v4427_v54 = vld [vmem:[%s9437_s4 + $0x3f8] sm:$0xff]  ;;  %v1809_v15 = vrot.slane %v6365_v1, 3 }
 0x1b6   : > { %1449 = vmatmul.f32.vlgmr.msrb.gmra.mxu0 %v6376_v58  ;;  %1489 = vmatmul.f32.vlgmr.msra.gmra.mxu2 %v6376_v58  ;;  %v4455_v55 = vld [vmem:[%s9437_s4 + $0x4d8] sm:$0xff] }
 0x1b7   : > { %1531 = vmatmul.f32.vlgmr.msrb.gmra.mxu1 %v6357_v19  ;;  %4418 = vmatmul.msk.f32.vlgmr.msrb.gmra.mxu3 %vm1430_vm6, %v6332_v16  ;;  %v4525_v4 = vld [vmem:[%s9437_s4 + $0x6f8] sm:$0xff] }
 0x1b8   : > { %1669 = vmatpush.msra.mxu3 %v4442_v61  ;;  %1691 = vmatpush.msra.mxu1 %v4470_v5  ;;  %v4506_v61 = vld [vmem:[%s9437_s4 + $0x660] sm:$0xff] }
 0x1b9   : > { %1705 = vmatpush.msra.mxu2 %v4451_v11  ;;  %1727 = vmatpush.msrb.mxu0 %v4479_v6  ;;  %v4538_v5 = vld [vmem:[%s9437_s4 + $0x760] sm:$0xff]  ;;  %v4425_v11 = vld [vmem:[%s9437_s4 + $0x3e8] sm:$0xff] }
 0x1ba   : > { %1670 = vmatpush.msra.mxu3 %v4440_v12  ;;  %1692 = vmatpush.msra.mxu1 %v4468_v17  ;;  %v4453_v6 = vld [vmem:[%s9437_s4 + $0x4c8] sm:$0xff]  ;;  %v4504_v12 = vld [vmem:[%s9437_s4 + $0x650] sm:$0xff] }
 0x1bb   : > { %1706 = vmatpush.msra.mxu2 %v4449_v22  ;;  %1728 = vmatpush.msrb.mxu0 %v4477_v3  ;;  %v4536_v17 = vld [vmem:[%s9437_s4 + $0x750] sm:$0xff]  ;;  %v4513_v22 = vld [vmem:[%s9437_s4 + $0x698] sm:$0xff] }
 0x1bc   : > { %1671 = vmatpush.msra.mxu3 %v4438_v8  ;;  %1693 = vmatpush.msra.mxu1 %v4466_v18  ;;  %v4423_v3 = vld [vmem:[%s9437_s4 + $0x3d8] sm:$0xff]  ;;  %v4502_v8 = vld [vmem:[%s9437_s4 + $0x640] sm:$0xff] }
 0x1bd   : > { %1707 = vmatpush.msra.mxu2 %v4447_v62  ;;  %1729 = vmatpush.msrb.mxu0 %v4475_v26  ;;  %v4534_v18 = vld [vmem:[%s9437_s4 + $0x740] sm:$0xff]  ;;  %v4511_v62 = vld [vmem:[%s9437_s4 + $0x688] sm:$0xff] }
 0x1be   : > { %1672 = vmatpush.msra.mxu3 %v4436_v27  ;;  %1694 = vmatpush.msra.mxu1 %v4464_v28  ;;  %v4421_v26 = vld [vmem:[%s9437_s4 + $0x3c8] sm:$0xff]  ;;  %v4500_v27 = vld [vmem:[%s9437_s4 + $0x630] sm:$0xff] }
 0x1bf   : > { %1708 = vmatpush.msra.mxu2 %v4445_v29  ;;  %1730 = vmatpush.msrb.mxu0 %v4473_v21  ;;  %v4532_v28 = vld [vmem:[%s9437_s4 + $0x730] sm:$0xff]  ;;  %v4509_v29 = vld [vmem:[%s9437_s4 + $0x678] sm:$0xff] }
 0x1c0   : > { %1571 = vmatmul.f32.vlgmr.msra.gmra.mxu0 %v6357_v19  ;;  %4419 = vmatmul.msk.f32.vlgmr.msrb.gmra.mxu2 %vm1430_vm6, %v6332_v16  ;;  %v4541_v21 = vld [vmem:[%s9437_s4 + $0x778] sm:$0xff] }
 0x1c1   : > { %1673 = vmatpush.msra.mxu3 %v4434_v30  ;;  %1695 = vmatpush.msra.mxu1 %v4462_v31  ;;  %v4498_v30 = vld [vmem:[%s9437_s4 + $0x620] sm:$0xff] }
 0x1c2   : > { %1709 = vmatpush.msra.mxu2 %v4443_v32  ;;  %1731 = vmatpush.msrb.mxu0 %v4471_v35  ;;  %v4530_v31 = vld [vmem:[%s9437_s4 + $0x720] sm:$0xff]  ;;  %v4507_v32 = vld [vmem:[%s9437_s4 + $0x668] sm:$0xff] }
 0x1c3   : > { %1674 = vmatpush.msra.mxu3 %v4432_v63  ;;  %1696 = vmatpush.msra.mxu1 %v4460_v36  ;;  %v4539_v35 = vld [vmem:[%s9437_s4 + $0x768] sm:$0xff]  ;;  %v4496_v63 = vld [vmem:[%s9437_s4 + $0x610] sm:$0xff] }
 0x1c4   : > { %1710 = vmatpush.msra.mxu2 %v4441_v7  ;;  %1732 = vmatpush.msrb.mxu0 %v4469_v37  ;;  %v4528_v36 = vld [vmem:[%s9437_s4 + $0x710] sm:$0xff]  ;;  %v4505_v7 = vld [vmem:[%s9437_s4 + $0x658] sm:$0xff] }
 0x1c5   : > { %1675 = vmatpush.msra.mxu3 %v4430_v38  ;;  %1697 = vmatpush.msra.mxu1 %v4458_v33  ;;  %v4537_v37 = vld [vmem:[%s9437_s4 + $0x758] sm:$0xff]  ;;  %v4494_v38 = vld [vmem:[%s9437_s4 + $0x600] sm:$0xff] }
 0x1c6   : > { %1711 = vmatpush.msra.mxu2 %v4439_v40  ;;  %1733 = vmatpush.msrb.mxu0 %v4467_v41  ;;  %v4526_v33 = vld [vmem:[%s9437_s4 + $0x700] sm:$0xff]  ;;  %v4503_v40 = vld [vmem:[%s9437_s4 + $0x648] sm:$0xff] }
 0x1c7   : > { %1676 = vmatpush.msra.mxu3 %v4428_v42  ;;  %1698 = vmatpush.msra.mxu1 %v4456_v23  ;;  %v4535_v41 = vld [vmem:[%s9437_s4 + $0x748] sm:$0xff]  ;;  %v4492_v42 = vld [vmem:[%s9437_s4 + $0x5f0] sm:$0xff] }
 0x1c8   : > { %1712 = vmatpush.msra.mxu2 %v4437_v2  ;;  %1734 = vmatpush.msrb.mxu0 %v4465_v34  ;;  %v4524_v23 = vld [vmem:[%s9437_s4 + $0x6f0] sm:$0xff]  ;;  %v4501_v2 = vld [vmem:[%s9437_s4 + $0x638] sm:$0xff] }
 0x1c9   : > { %1677 = vmatpush.msra.mxu3 %v4426_v43  ;;  %1699 = vmatpush.msra.mxu1 %v4454_v44  ;;  %v4533_v34 = vld [vmem:[%s9437_s4 + $0x738] sm:$0xff]  ;;  %v4490_v43 = vld [vmem:[%s9437_s4 + $0x5e0] sm:$0xff] }
 0x1ca   : > { %1713 = vmatpush.msra.mxu2 %v4435_v45  ;;  %1735 = vmatpush.msrb.mxu0 %v4463_v46  ;;  %v4522_v44 = vld [vmem:[%s9437_s4 + $0x6e0] sm:$0xff]  ;;  %v4499_v45 = vld [vmem:[%s9437_s4 + $0x628] sm:$0xff] }
 0x1cb   : > { %1678 = vmatpush.msra.mxu3 %v4424_v47  ;;  %1700 = vmatpush.msra.mxu1 %v4452_v48  ;;  %v4531_v46 = vld [vmem:[%s9437_s4 + $0x728] sm:$0xff]  ;;  %v4520_v47 = vld [vmem:[%s9437_s4 + $0x6d0] sm:$0xff]  ;;  %v4497_v48 = vld [vmem:[%s9437_s4 + $0x618] sm:$0xff] }
 0x1cc   : > { %1714 = vmatpush.msra.mxu2 %v4433_v49  ;;  %1736 = vmatpush.msrb.mxu0 %v4461_v50  ;;  %v4529_v49 = vld [vmem:[%s9437_s4 + $0x718] sm:$0xff]  ;;  %v4486_v50 = vld [vmem:[%s9437_s4 + $0x5c0] sm:$0xff] }
 0x1cd   : > { %4480 = vmatmul.msk.f32.vlgmr.msra.gmra.mxu1 %vm1430_vm6, %v6518_v56  ;;  %1679 = vmatpush.msra.mxu3 %v4422_v59  ;;  %v4495_v59 = vld [vmem:[%s9437_s4 + $0x608] sm:$0xff] }
 0x1ce   : > { %1817 = vmatpush.msrb.mxu1 %v4512_v13  ;;  %1715 = vmatpush.msra.mxu2 %v4431_v53  ;;  %v4527_v13 = vld [vmem:[%s9437_s4 + $0x708] sm:$0xff]  ;;  %v4484_v53 = vld [vmem:[%s9437_s4 + $0x5b0] sm:$0xff] }
 0x1cf   : > { %1737 = vmatpush.msrb.mxu0 %v4459_v57  ;;  %1680 = vmatpush.msra.mxu3 %v4420_v60  ;;  %v4516_v57 = vld [vmem:[%s9437_s4 + $0x6b0] sm:$0xff]  ;;  %v4493_v60 = vld [vmem:[%s9437_s4 + $0x5f8] sm:$0xff] }
 0x1d0   : > { %1818 = vmatpush.msrb.mxu1 %v4510_v10  ;;  %1716 = vmatpush.msra.mxu2 %v4429_v14  ;;  %v1812_v10 = vrot.slane %v6334_v52, 3  ;;  %v4482_v14 = vld [vmem:[%s9437_s4 + $0x5a0] sm:$0xff] }
 0x1d1   : > { %1738 = vmatpush.msrb.mxu0 %v4457_v24  ;;  %1681 = vmatmul.f32.vlgmr.msra.gmra.mxu3 %v6546_v51  ;;  %v4514_v24 = vld [vmem:[%s9437_s4 + $0x6a0] sm:$0xff] }
 0x1d2   : > { %1819 = vmatpush.msrb.mxu1 %v4508_v20  ;;  %1839 = vmatpush.msrb.mxu3 %v4540_v25  ;;  %v4491_v20 = vld [vmem:[%s9437_s4 + $0x5e8] sm:$0xff] }
 0x1d3   : > { %1717 = vmatpush.msra.mxu2 %v4427_v54  ;;  %1739 = vmatpush.msrb.mxu0 %v4455_v55  ;;  %v4523_v25 = vld [vmem:[%s9437_s4 + $0x6e8] sm:$0xff]  ;;  %v1808_v54 = vrot.slane %v6357_v19, 3  ;;  %v1811_v55 = vrot.slane %v6332_v16, 3 }
 0x1d4   : > { %1820 = vmatpush.msrb.mxu1 %v4506_v61  ;;  %1840 = vmatpush.msrb.mxu3 %v4538_v5  ;;  %v4574_v61 = vld [vmem:[%s9437_s4 + $0x870] sm:$0xff] }
 0x1d5   : > { %1718 = vmatpush.msra.mxu2 %v4425_v11  ;;  %1740 = vmatpush.msrb.mxu0 %v4453_v6  ;;  %v4602_v5 = vld [vmem:[%s9437_s4 + $0x950] sm:$0xff]  ;;  %v6725_v11 = vsel %vm643_vm3, %v1808_v54, %v1809_v15  ;;  %v6728_v6 = vsel %vm643_vm3, %v1811_v55, %v1812_v10  ;;  %v4561_v10 = vld [vmem:[%s9437_s4 + $0x808] sm:$0xff]  ;;  %v1964_v54 = vrot.slane %v6334_v52, 4  ;;  %v4548_v55 = vld [vmem:[%s9437_s4 + $0x7a0] sm:$0xff] }
 0x1d6   : > { %4481 = vmatmul.msk.f32.vlgmr.msrb.gmra.mxu0 %vm1430_vm6, %v6518_v56  ;;  %1821 = vmatpush.msrb.mxu1 %v4504_v12  ;;  %v4489_v12 = vld [vmem:[%s9437_s4 + $0x5d8] sm:$0xff]  ;;  %v4578_v15 = vld [vmem:[%s9437_s4 + $0x890] sm:$0xff]  ;;  %v4585_v52 = vld [vmem:[%s9437_s4 + $0x8c8] sm:$0xff] }
 0x1d7   : > { %1841 = vmatpush.msrb.mxu3 %v4536_v17  ;;  %1857 = vmatpush.msra.mxu0 %v4513_v22  ;;  %v4521_v17 = vld [vmem:[%s9437_s4 + $0x6d8] sm:$0xff]  ;;  %v4572_v22 = vld [vmem:[%s9437_s4 + $0x860] sm:$0xff] }
 0x1d8   : > { %1719 = vmatpush.msra.mxu2 %v4423_v3  ;;  %1822 = vmatpush.msrb.mxu1 %v4502_v8  ;;  %v4600_v3 = vld [vmem:[%s9437_s4 + $0x940] sm:$0xff]  ;;  %v4487_v8 = vld [vmem:[%s9437_s4 + $0x5c8] sm:$0xff] }
 0x1d9   : > { %1842 = vmatpush.msrb.mxu3 %v4534_v18  ;;  %1858 = vmatpush.msra.mxu0 %v4511_v62  ;;  %v4519_v18 = vld [vmem:[%s9437_s4 + $0x6c8] sm:$0xff]  ;;  %v4570_v62 = vld [vmem:[%s9437_s4 + $0x850] sm:$0xff] }
 0x1da   : > { %1720 = vmatpush.msra.mxu2 %v4421_v26  ;;  %1823 = vmatpush.msrb.mxu1 %v4500_v27  ;;  %v4598_v26 = vld [vmem:[%s9437_s4 + $0x930] sm:$0xff]  ;;  %v4485_v27 = vld [vmem:[%s9437_s4 + $0x5b8] sm:$0xff] }
 0x1db   : > { %1721 = vmatmul.f32.vlgmr.msra.gmra.mxu2 %v6546_v51  ;;  %1843 = vmatpush.msrb.mxu3 %v4532_v28  ;;  %v4517_v28 = vld [vmem:[%s9437_s4 + $0x6b8] sm:$0xff] }
 0x1dc   : > { %1859 = vmatpush.msra.mxu0 %v4509_v29  ;;  %1879 = vmatpush.msrb.mxu2 %v4541_v21  ;;  %v4568_v29 = vld [vmem:[%s9437_s4 + $0x840] sm:$0xff] }
 0x1dd   : > { %1824 = vmatpush.msrb.mxu1 %v4498_v30  ;;  %1844 = vmatpush.msrb.mxu3 %v4530_v31  ;;  %v4596_v21 = vld [vmem:[%s9437_s4 + $0x920] sm:$0xff]  ;;  %v4483_v30 = vld [vmem:[%s9437_s4 + $0x5a8] sm:$0xff] }
 0x1de   : > { %1860 = vmatpush.msra.mxu0 %v4507_v32  ;;  %1880 = vmatpush.msrb.mxu2 %v4539_v35  ;;  %v4515_v31 = vld [vmem:[%s9437_s4 + $0x6a8] sm:$0xff]  ;;  %v4566_v32 = vld [vmem:[%s9437_s4 + $0x830] sm:$0xff] }
 0x1df   : > { %1825 = vmatpush.msrb.mxu1 %v4496_v63  ;;  %1845 = vmatpush.msrb.mxu3 %v4528_v36  ;;  %v4594_v35 = vld [vmem:[%s9437_s4 + $0x910] sm:$0xff]  ;;  %v4575_v63 = vld [vmem:[%s9437_s4 + $0x878] sm:$0xff] }
 0x1e0   : > { %1861 = vmatpush.msra.mxu0 %v4505_v7  ;;  %1881 = vmatpush.msrb.mxu2 %v4537_v37  ;;  %v4603_v36 = vld [vmem:[%s9437_s4 + $0x958] sm:$0xff]  ;;  %v4564_v7 = vld [vmem:[%s9437_s4 + $0x820] sm:$0xff] }
 0x1e1   : > { %1826 = vmatpush.msrb.mxu1 %v4494_v38  ;;  %1846 = vmatpush.msrb.mxu3 %v4526_v33  ;;  %v4592_v37 = vld [vmem:[%s9437_s4 + $0x900] sm:$0xff]  ;;  %v4573_v38 = vld [vmem:[%s9437_s4 + $0x868] sm:$0xff] }
 0x1e2   : > { %1862 = vmatpush.msra.mxu0 %v4503_v40  ;;  %1882 = vmatpush.msrb.mxu2 %v4535_v41  ;;  %v4601_v33 = vld [vmem:[%s9437_s4 + $0x948] sm:$0xff]  ;;  %v4562_v40 = vld [vmem:[%s9437_s4 + $0x810] sm:$0xff] }
 0x1e3   : > { %1827 = vmatpush.msrb.mxu1 %v4492_v42  ;;  %1847 = vmatpush.msrb.mxu3 %v4524_v23  ;;  %v4590_v41 = vld [vmem:[%s9437_s4 + $0x8f0] sm:$0xff]  ;;  %v4571_v42 = vld [vmem:[%s9437_s4 + $0x858] sm:$0xff] }
 0x1e4   : > { %1863 = vmatpush.msra.mxu0 %v4501_v2  ;;  %1883 = vmatpush.msrb.mxu2 %v4533_v34  ;;  %v4599_v23 = vld [vmem:[%s9437_s4 + $0x938] sm:$0xff]  ;;  %v4560_v2 = vld [vmem:[%s9437_s4 + $0x800] sm:$0xff] }
 0x1e5   : > { %1828 = vmatpush.msrb.mxu1 %v4490_v43  ;;  %1848 = vmatpush.msrb.mxu3 %v4522_v44  ;;  %v4588_v34 = vld [vmem:[%s9437_s4 + $0x8e0] sm:$0xff]  ;;  %v4569_v43 = vld [vmem:[%s9437_s4 + $0x848] sm:$0xff] }
 0x1e6   : > { %1864 = vmatpush.msra.mxu0 %v4499_v45  ;;  %1884 = vmatpush.msrb.mxu2 %v4531_v46  ;;  %v4597_v44 = vld [vmem:[%s9437_s4 + $0x928] sm:$0xff]  ;;  %v4558_v45 = vld [vmem:[%s9437_s4 + $0x7f0] sm:$0xff] }
 0x1e7   : > { %1829 = vmatpush.msrb.mxu1 %v4488_v39  ;;  %1849 = vmatpush.msrb.mxu3 %v4520_v47  ;;  %v4586_v46 = vld [vmem:[%s9437_s4 + $0x8d0] sm:$0xff]  ;;  %v4567_v39 = vld [vmem:[%s9437_s4 + $0x838] sm:$0xff] }
 0x1e8   : > { %1865 = vmatpush.msra.mxu0 %v4497_v48  ;;  %1885 = vmatpush.msrb.mxu2 %v4529_v49  ;;  %v4595_v47 = vld [vmem:[%s9437_s4 + $0x918] sm:$0xff]  ;;  %v4556_v48 = vld [vmem:[%s9437_s4 + $0x7e0] sm:$0xff] }
 0x1e9   : > { %1830 = vmatpush.msrb.mxu1 %v4486_v50  ;;  %1850 = vmatpush.msrb.mxu3 %v4518_v9  ;;  %v4584_v49 = vld [vmem:[%s9437_s4 + $0x8c0] sm:$0xff]  ;;  %v4565_v50 = vld [vmem:[%s9437_s4 + $0x828] sm:$0xff] }
 0x1ea   : > { %1866 = vmatpush.msra.mxu0 %v4495_v59  ;;  %1886 = vmatpush.msrb.mxu2 %v4527_v13  ;;  %v4593_v9 = vld [vmem:[%s9437_s4 + $0x908] sm:$0xff]  ;;  %v4554_v59 = vld [vmem:[%s9437_s4 + $0x7d0] sm:$0xff] }
 0x1eb   : > { %1831 = vmatpush.msrb.mxu1 %v4484_v53  ;;  %1851 = vmatpush.msrb.mxu3 %v4516_v57  ;;  %v4582_v13 = vld [vmem:[%s9437_s4 + $0x8b0] sm:$0xff]  ;;  %v4563_v53 = vld [vmem:[%s9437_s4 + $0x818] sm:$0xff] }
 0x1ec   : > { %1867 = vmatpush.msra.mxu0 %v4493_v60  ;;  %1887 = vmatpush.msrb.mxu2 %v4525_v4  ;;  %v4591_v57 = vld [vmem:[%s9437_s4 + $0x8f8] sm:$0xff]  ;;  %v4552_v60 = vld [vmem:[%s9437_s4 + $0x7c0] sm:$0xff] }
 0x1ed   : > { %1832 = vmatpush.msrb.mxu1 %v4482_v14  ;;  %1852 = vmatpush.msrb.mxu3 %v4514_v24  ;;  %v4580_v4 = vld [vmem:[%s9437_s4 + $0x8a0] sm:$0xff]  ;;  %v4589_v14 = vld [vmem:[%s9437_s4 + $0x8e8] sm:$0xff]  ;;  %v4550_v24 = vld [vmem:[%s9437_s4 + $0x7b0] sm:$0xff] }
 0x1ee   : > { %1868 = vmatpush.msra.mxu0 %v4491_v20  ;;  %1888 = vmatpush.msrb.mxu2 %v4523_v25  ;;  %v4559_v20 = vld [vmem:[%s9437_s4 + $0x7f8] sm:$0xff] }
 0x1ef   : > { %1833 = vmatmul.f32.vlgmr.msrb.gmra.mxu1 %v6725_v11  ;;  %4542 = vmatmul.msk.f32.vlgmr.msrb.gmra.mxu3 %vm1430_vm6, %v6728_v6  ;;  %v4587_v25 = vld [vmem:[%s9437_s4 + $0x8d8] sm:$0xff] }
 0x1f0   : > { %1969 = vmatpush.msra.mxu3 %v4574_v61  ;;  %1991 = vmatpush.msra.mxu1 %v4602_v5  ;;  %v4576_v61 = vld [vmem:[%s9437_s4 + $0x880] sm:$0xff]  ;;  %v4557_v5 = vld [vmem:[%s9437_s4 + $0x7e8] sm:$0xff] }
 0x1f1   : > { %1869 = vmatpush.msra.mxu0 %v4489_v12  ;;  %1889 = vmatpush.msrb.mxu2 %v4521_v17  ;;  %v1963_v12 = vrot.slane %v6332_v16, 4  ;;  %v4546_v17 = vld [vmem:[%s9437_s4 + $0x790] sm:$0xff] }
 0x1f2   : > { %1970 = vmatpush.msra.mxu3 %v4572_v22  ;;  %1992 = vmatpush.msra.mxu1 %v4600_v3  ;;  %v4696_v22 = vld [vmem:[%s9437_s4 + $0xc30] sm:$0xff]  ;;  %v4555_v3 = vld [vmem:[%s9437_s4 + $0x7d8] sm:$0xff] }
 0x1f3   : > { %1870 = vmatpush.msra.mxu0 %v4487_v8  ;;  %1890 = vmatpush.msrb.mxu2 %v4519_v18  ;;  %v6910_v8 = vsel %vm424_vm0, %v1963_v12, %v1964_v54  ;;  %v4583_v18 = vld [vmem:[%s9437_s4 + $0x8b8] sm:$0xff]  ;;  %v4683_v54 = vld [vmem:[%s9437_s4 + $0xbc8] sm:$0xff] }
 0x1f4   : > { %1971 = vmatpush.msra.mxu3 %v4570_v62  ;;  %1993 = vmatpush.msra.mxu1 %v4598_v26  ;;  %v4544_v62 = vld [vmem:[%s9437_s4 + $0x780] sm:$0xff]  ;;  %v1961_v26 = vrot.slane %v6365_v1, 4  ;;  %v1960_v1 = vrot.slane %v6357_v19, 4  ;;  %v4713_v12 = vld [vmem:[%s9437_s4 + $0xcb8] sm:$0xff] }
 0x1f5   : > { %1871 = vmatpush.msra.mxu0 %v4485_v27  ;;  %1891 = vmatpush.msrb.mxu2 %v4517_v28  ;;  %v4694_v27 = vld [vmem:[%s9437_s4 + $0xc20] sm:$0xff]  ;;  %v4553_v28 = vld [vmem:[%s9437_s4 + $0x7c8] sm:$0xff] }
 0x1f6   : > { %1972 = vmatpush.msra.mxu3 %v4568_v29  ;;  %1994 = vmatpush.msra.mxu1 %v4596_v21  ;;  %v4581_v29 = vld [vmem:[%s9437_s4 + $0x8a8] sm:$0xff]  ;;  %v4692_v21 = vld [vmem:[%s9437_s4 + $0xc10] sm:$0xff] }
 0x1f7   : > { %1872 = vmatpush.msra.mxu0 %v4483_v30  ;;  %1892 = vmatpush.msrb.mxu2 %v4515_v31  ;;  %v4724_v30 = vld [vmem:[%s9437_s4 + $0xd10] sm:$0xff]  ;;  %v6938_v31 = vsel %vm424_vm0, %v1960_v1, %v1961_v26  ;;  %v4698_v1 = vld [vmem:[%s9437_s4 + $0xc40] sm:$0xff] }
 0x1f8   : > { %1873 = vmatmul.f32.vlgmr.msra.gmra.mxu0 %v6725_v11  ;;  %4543 = vmatmul.msk.f32.vlgmr.msrb.gmra.mxu2 %vm1430_vm6, %v6728_v6  ;;  %v4700_v26 = vld [vmem:[%s9437_s4 + $0xc50] sm:$0xff] }
 0x1f9   : > { %1973 = vmatpush.msra.mxu3 %v4566_v32  ;;  %1995 = vmatpush.msra.mxu1 %v4594_v35  ;;  %v4551_v32 = vld [vmem:[%s9437_s4 + $0x7b8] sm:$0xff] }
 0x1fa   : > { %2009 = vmatpush.msra.mxu2 %v4575_v63  ;;  %2031 = vmatpush.msrb.mxu0 %v4603_v36  ;;  %v4579_v35 = vld [vmem:[%s9437_s4 + $0x898] sm:$0xff]  ;;  %v4690_v63 = vld [vmem:[%s9437_s4 + $0xc00] sm:$0xff] }
 0x1fb   : > { %1974 = vmatpush.msra.mxu3 %v4564_v7  ;;  %1996 = vmatpush.msra.mxu1 %v4592_v37  ;;  %v4722_v36 = vld [vmem:[%s9437_s4 + $0xd00] sm:$0xff]  ;;  %v4549_v7 = vld [vmem:[%s9437_s4 + $0x7a8] sm:$0xff] }
 0x1fc   : > { %2010 = vmatpush.msra.mxu2 %v4573_v38  ;;  %2032 = vmatpush.msrb.mxu0 %v4601_v33  ;;  %v4577_v37 = vld [vmem:[%s9437_s4 + $0x888] sm:$0xff]  ;;  %v4688_v38 = vld [vmem:[%s9437_s4 + $0xbf0] sm:$0xff] }
 0x1fd   : > { %1975 = vmatpush.msra.mxu3 %v4562_v40  ;;  %1997 = vmatpush.msra.mxu1 %v4590_v41  ;;  %v4720_v33 = vld [vmem:[%s9437_s4 + $0xcf0] sm:$0xff]  ;;  %v4697_v40 = vld [vmem:[%s9437_s4 + $0xc38] sm:$0xff] }
 0x1fe   : > { %2011 = vmatpush.msra.mxu2 %v4571_v42  ;;  %2033 = vmatpush.msrb.mxu0 %v4599_v23  ;;  %v4547_v41 = vld [vmem:[%s9437_s4 + $0x798] sm:$0xff]  ;;  %v4686_v42 = vld [vmem:[%s9437_s4 + $0xbe0] sm:$0xff] }
 0x1ff   : > { %1976 = vmatpush.msra.mxu3 %v4560_v2  ;;  %1998 = vmatpush.msra.mxu1 %v4588_v34  ;;  %v4718_v23 = vld [vmem:[%s9437_s4 + $0xce0] sm:$0xff]  ;;  %v4695_v2 = vld [vmem:[%s9437_s4 + $0xc28] sm:$0xff] }
 0x200   : > { %2012 = vmatpush.msra.mxu2 %v4569_v43  ;;  %2034 = vmatpush.msrb.mxu0 %v4597_v44  ;;  %v4545_v34 = vld [vmem:[%s9437_s4 + $0x788] sm:$0xff]  ;;  %v4684_v43 = vld [vmem:[%s9437_s4 + $0xbd0] sm:$0xff] }
 0x201   : > { %1977 = vmatpush.msra.mxu3 %v4558_v45  ;;  %1999 = vmatpush.msra.mxu1 %v4586_v46  ;;  %v4716_v44 = vld [vmem:[%s9437_s4 + $0xcd0] sm:$0xff]  ;;  %v4693_v45 = vld [vmem:[%s9437_s4 + $0xc18] sm:$0xff] }
 0x202   : > { %2013 = vmatpush.msra.mxu2 %v4567_v39  ;;  %2035 = vmatpush.msrb.mxu0 %v4595_v47  ;;  %v4725_v46 = vld [vmem:[%s9437_s4 + $0xd18] sm:$0xff]  ;;  %v4682_v39 = vld [vmem:[%s9437_s4 + $0xbc0] sm:$0xff] }
 0x203   : > { %1978 = vmatpush.msra.mxu3 %v4556_v48  ;;  %2000 = vmatpush.msra.mxu1 %v4584_v49  ;;  %v4714_v47 = vld [vmem:[%s9437_s4 + $0xcc0] sm:$0xff]  ;;  %v4691_v48 = vld [vmem:[%s9437_s4 + $0xc08] sm:$0xff] }
 0x204   : > { %2014 = vmatpush.msra.mxu2 %v4565_v50  ;;  %2036 = vmatpush.msrb.mxu0 %v4593_v9  ;;  %v4723_v49 = vld [vmem:[%s9437_s4 + $0xd08] sm:$0xff]  ;;  %v4680_v50 = vld [vmem:[%s9437_s4 + $0xbb0] sm:$0xff] }
 0x205   : > { %1979 = vmatpush.msra.mxu3 %v4554_v59  ;;  %2001 = vmatpush.msra.mxu1 %v4582_v13  ;;  %v4712_v9 = vld [vmem:[%s9437_s4 + $0xcb0] sm:$0xff]  ;;  %v4689_v59 = vld [vmem:[%s9437_s4 + $0xbf8] sm:$0xff] }
 0x206   : > { %2015 = vmatpush.msra.mxu2 %v4563_v53  ;;  %2037 = vmatpush.msrb.mxu0 %v4591_v57  ;;  %v4721_v13 = vld [vmem:[%s9437_s4 + $0xcf8] sm:$0xff]  ;;  %v4678_v53 = vld [vmem:[%s9437_s4 + $0xba0] sm:$0xff] }
 0x207   : > { %1980 = vmatpush.msra.mxu3 %v4552_v60  ;;  %2002 = vmatpush.msra.mxu1 %v4580_v4  ;;  %v4710_v57 = vld [vmem:[%s9437_s4 + $0xca0] sm:$0xff]  ;;  %v4687_v60 = vld [vmem:[%s9437_s4 + $0xbe8] sm:$0xff] }
 0x208   : > { %2016 = vmatpush.msra.mxu2 %v4561_v10  ;;  %2038 = vmatpush.msrb.mxu0 %v4589_v14  ;;  %v4719_v4 = vld [vmem:[%s9437_s4 + $0xce8] sm:$0xff]  ;;  %v4676_v10 = vld [vmem:[%s9437_s4 + $0xb90] sm:$0xff] }
 0x209   : > { %1981 = vmatpush.msra.mxu3 %v4550_v24  ;;  %2003 = vmatpush.msra.mxu1 %v4578_v15  ;;  %v4708_v14 = vld [vmem:[%s9437_s4 + $0xc90] sm:$0xff]  ;;  %v4685_v24 = vld [vmem:[%s9437_s4 + $0xbd8] sm:$0xff] }
 0x20a   : > { %2017 = vmatpush.msra.mxu2 %v4559_v20  ;;  %2039 = vmatpush.msrb.mxu0 %v4587_v25  ;;  %v4717_v15 = vld [vmem:[%s9437_s4 + $0xcd8] sm:$0xff]  ;;  %v4674_v20 = vld [vmem:[%s9437_s4 + $0xb80] sm:$0xff] }
 0x20b   : > { %1982 = vmatpush.msra.mxu3 %v4548_v55  ;;  %2004 = vmatpush.msra.mxu1 %v4576_v61  ;;  %v4706_v25 = vld [vmem:[%s9437_s4 + $0xc80] sm:$0xff]  ;;  %v4715_v55 = vld [vmem:[%s9437_s4 + $0xcc8] sm:$0xff]  ;;  %v4672_v61 = vld [vmem:[%s9437_s4 + $0xb70] sm:$0xff] }
 0x20c   : > { %2018 = vmatpush.msra.mxu2 %v4557_v5  ;;  %2040 = vmatpush.msrb.mxu0 %v4585_v52  ;;  %v4704_v5 = vld [vmem:[%s9437_s4 + $0xc70] sm:$0xff]  ;;  %v4681_v52 = vld [vmem:[%s9437_s4 + $0xbb8] sm:$0xff] }
 0x20d   : > { %4604 = vmatmul.msk.f32.vlgmr.msra.gmra.mxu1 %vm1430_vm6, %v6910_v8  ;;  %1983 = vmatpush.msra.mxu3 %v4546_v17  ;;  %v4670_v17 = vld [vmem:[%s9437_s4 + $0xb60] sm:$0xff] }
 0x20e   : > { %2173 = vmatpush.msrb.mxu1 %v4696_v22  ;;  %2019 = vmatpush.msra.mxu2 %v4555_v3  ;;  %v4702_v22 = vld [vmem:[%s9437_s4 + $0xc60] sm:$0xff]  ;;  %v4679_v3 = vld [vmem:[%s9437_s4 + $0xba8] sm:$0xff] }
 0x20f   : > { %2041 = vmatpush.msrb.mxu0 %v4583_v18  ;;  %1984 = vmatpush.msra.mxu3 %v4544_v62  ;;  %v4711_v18 = vld [vmem:[%s9437_s4 + $0xca8] sm:$0xff]  ;;  %v4668_v62 = vld [vmem:[%s9437_s4 + $0xb50] sm:$0xff] }
 0x210   : > { %2174 = vmatpush.msrb.mxu1 %v4694_v27  ;;  %2020 = vmatpush.msra.mxu2 %v4553_v28  ;;  %v4677_v27 = vld [vmem:[%s9437_s4 + $0xb98] sm:$0xff] }
 0x211   : > { %2042 = vmatpush.msrb.mxu0 %v4581_v29  ;;  %1985 = vmatmul.f32.vlgmr.msra.gmra.mxu3 %v6938_v31  ;;  %v4709_v28 = vld [vmem:[%s9437_s4 + $0xc98] sm:$0xff]  ;;  %v4666_v29 = vld [vmem:[%s9437_s4 + $0xb40] sm:$0xff] }
 0x212   : > { %2175 = vmatpush.msrb.mxu1 %v4692_v21  ;;  %2195 = vmatpush.msrb.mxu3 %v4724_v30  ;;  %v4675_v21 = vld [vmem:[%s9437_s4 + $0xb88] sm:$0xff] }
 0x213   : > { %2021 = vmatpush.msra.mxu2 %v4551_v32  ;;  %2043 = vmatpush.msrb.mxu0 %v4579_v35  ;;  %v4707_v30 = vld [vmem:[%s9437_s4 + $0xc88] sm:$0xff]  ;;  %v4636_v32 = vld [vmem:[%s9437_s4 + $0xa50] sm:$0xff] }
 0x214   : > { %2176 = vmatpush.msrb.mxu1 %v4690_v63  ;;  %2196 = vmatpush.msrb.mxu3 %v4722_v36  ;;  %v4664_v35 = vld [vmem:[%s9437_s4 + $0xb30] sm:$0xff]  ;;  %v4673_v63 = vld [vmem:[%s9437_s4 + $0xb78] sm:$0xff] }
 0x215   : > { %2022 = vmatpush.msra.mxu2 %v4549_v7  ;;  %2044 = vmatpush.msrb.mxu0 %v4577_v37  ;;  %v4705_v36 = vld [vmem:[%s9437_s4 + $0xc78] sm:$0xff]  ;;  %v4634_v7 = vld [vmem:[%s9437_s4 + $0xa40] sm:$0xff] }
 0x216   : > { %4605 = vmatmul.msk.f32.vlgmr.msrb.gmra.mxu0 %vm1430_vm6, %v6910_v8  ;;  %2177 = vmatpush.msrb.mxu1 %v4688_v38  ;;  %v4662_v37 = vld [vmem:[%s9437_s4 + $0xb20] sm:$0xff]  ;;  %v4671_v38 = vld [vmem:[%s9437_s4 + $0xb68] sm:$0xff] }
 0x217   : > { %2197 = vmatpush.msrb.mxu3 %v4720_v33  ;;  %2213 = vmatpush.msra.mxu0 %v4697_v40  ;;  %v4703_v33 = vld [vmem:[%s9437_s4 + $0xc68] sm:$0xff]  ;;  %v4632_v40 = vld [vmem:[%s9437_s4 + $0xa30] sm:$0xff] }
 0x218   : > { %2023 = vmatpush.msra.mxu2 %v4547_v41  ;;  %2178 = vmatpush.msrb.mxu1 %v4686_v42  ;;  %v4660_v41 = vld [vmem:[%s9437_s4 + $0xb10] sm:$0xff]  ;;  %v4669_v42 = vld [vmem:[%s9437_s4 + $0xb58] sm:$0xff] }
 0x219   : > { %2198 = vmatpush.msrb.mxu3 %v4718_v23  ;;  %2214 = vmatpush.msra.mxu0 %v4695_v2  ;;  %v4701_v23 = vld [vmem:[%s9437_s4 + $0xc58] sm:$0xff]  ;;  %v4630_v2 = vld [vmem:[%s9437_s4 + $0xa20] sm:$0xff] }
 0x21a   : > { %2024 = vmatpush.msra.mxu2 %v4545_v34  ;;  %2179 = vmatpush.msrb.mxu1 %v4684_v43  ;;  %v4658_v34 = vld [vmem:[%s9437_s4 + $0xb00] sm:$0xff]  ;;  %v4667_v43 = vld [vmem:[%s9437_s4 + $0xb48] sm:$0xff] }
 0x21b   : > { %2025 = vmatmul.f32.vlgmr.msra.gmra.mxu2 %v6938_v31  ;;  %2199 = vmatpush.msrb.mxu3 %v4716_v44  ;;  %v4699_v44 = vld [vmem:[%s9437_s4 + $0xc48] sm:$0xff] }
 0x21c   : > { %2215 = vmatpush.msra.mxu0 %v4693_v45  ;;  %2235 = vmatpush.msrb.mxu2 %v4725_v46  ;;  %v4628_v45 = vld [vmem:[%s9437_s4 + $0xa10] sm:$0xff] }
 0x21d   : > { %2180 = vmatpush.msrb.mxu1 %v4682_v39  ;;  %2200 = vmatpush.msrb.mxu3 %v4714_v47  ;;  %v4656_v46 = vld [vmem:[%s9437_s4 + $0xaf0] sm:$0xff]  ;;  %v4637_v39 = vld [vmem:[%s9437_s4 + $0xa58] sm:$0xff] }
 0x21e   : > { %2216 = vmatpush.msra.mxu0 %v4691_v48  ;;  %2236 = vmatpush.msrb.mxu2 %v4723_v49  ;;  %v4665_v47 = vld [vmem:[%s9437_s4 + $0xb38] sm:$0xff]  ;;  %v4626_v48 = vld [vmem:[%s9437_s4 + $0xa00] sm:$0xff] }
 0x21f   : > { %2181 = vmatpush.msrb.mxu1 %v4680_v50  ;;  %2201 = vmatpush.msrb.mxu3 %v4712_v9  ;;  %v4654_v49 = vld [vmem:[%s9437_s4 + $0xae0] sm:$0xff]  ;;  %v4635_v50 = vld [vmem:[%s9437_s4 + $0xa48] sm:$0xff] }
 0x220   : > { %2217 = vmatpush.msra.mxu0 %v4689_v59  ;;  %2237 = vmatpush.msrb.mxu2 %v4721_v13  ;;  %v4624_v59 = vld [vmem:[%s9437_s4 + $0x9f0] sm:$0xff] }
 0x221   : > { %2182 = vmatpush.msrb.mxu1 %v4678_v53  ;;  %2202 = vmatpush.msrb.mxu3 %v4710_v57  ;;  %v4652_v13 = vld [vmem:[%s9437_s4 + $0xad0] sm:$0xff]  ;;  %v4633_v57 = vld [vmem:[%s9437_s4 + $0xa38] sm:$0xff] }
 0x222   : > { %2218 = vmatpush.msra.mxu0 %v4687_v60  ;;  %2238 = vmatpush.msrb.mxu2 %v4719_v4  ;;  %v4661_v60 = vld [vmem:[%s9437_s4 + $0xb18] sm:$0xff]  ;;  %v4622_v4 = vld [vmem:[%s9437_s4 + $0x9e0] sm:$0xff] }
 0x223   : > { %2183 = vmatpush.msrb.mxu1 %v4676_v10  ;;  %2203 = vmatpush.msrb.mxu3 %v4708_v14  ;;  %v4650_v10 = vld [vmem:[%s9437_s4 + $0xac0] sm:$0xff]  ;;  %v4631_v14 = vld [vmem:[%s9437_s4 + $0xa28] sm:$0xff] }
 0x224   : > { %2219 = vmatpush.msra.mxu0 %v4685_v24  ;;  %2239 = vmatpush.msrb.mxu2 %v4717_v15  ;;  %v4659_v24 = vld [vmem:[%s9437_s4 + $0xb08] sm:$0xff]  ;;  %v4620_v15 = vld [vmem:[%s9437_s4 + $0x9d0] sm:$0xff] }
 0x225   : > { %2184 = vmatpush.msrb.mxu1 %v4674_v20  ;;  %2204 = vmatpush.msrb.mxu3 %v4706_v25  ;;  %v4648_v20 = vld [vmem:[%s9437_s4 + $0xab0] sm:$0xff]  ;;  %v4629_v25 = vld [vmem:[%s9437_s4 + $0xa18] sm:$0xff] }
 0x226   : > { %2220 = vmatpush.msra.mxu0 %v4683_v54  ;;  %2240 = vmatpush.msrb.mxu2 %v4715_v55  ;;  %v4657_v54 = vld [vmem:[%s9437_s4 + $0xaf8] sm:$0xff]  ;;  %v4618_v55 = vld [vmem:[%s9437_s4 + $0x9c0] sm:$0xff] }
 0x227   : > { %2185 = vmatpush.msrb.mxu1 %v4672_v61  ;;  %2205 = vmatpush.msrb.mxu3 %v4704_v5  ;;  %v4646_v61 = vld [vmem:[%s9437_s4 + $0xaa0] sm:$0xff]  ;;  %v4627_v5 = vld [vmem:[%s9437_s4 + $0xa08] sm:$0xff] }
 0x228   : > { %2221 = vmatpush.msra.mxu0 %v4681_v52  ;;  %2241 = vmatpush.msrb.mxu2 %v4713_v12  ;;  %v4655_v52 = vld [vmem:[%s9437_s4 + $0xae8] sm:$0xff]  ;;  %v4616_v12 = vld [vmem:[%s9437_s4 + $0x9b0] sm:$0xff] }
 0x229   : > { %2186 = vmatpush.msrb.mxu1 %v4670_v17  ;;  %2206 = vmatpush.msrb.mxu3 %v4702_v22  ;;  %v4644_v17 = vld [vmem:[%s9437_s4 + $0xa90] sm:$0xff]  ;;  %v4625_v22 = vld [vmem:[%s9437_s4 + $0x9f8] sm:$0xff] }
 0x22a   : > { %2222 = vmatpush.msra.mxu0 %v4679_v3  ;;  %2242 = vmatpush.msrb.mxu2 %v4711_v18  ;;  %v4653_v3 = vld [vmem:[%s9437_s4 + $0xad8] sm:$0xff]  ;;  %v4614_v18 = vld [vmem:[%s9437_s4 + $0x9a0] sm:$0xff] }
 0x22b   : > { %2187 = vmatpush.msrb.mxu1 %v4668_v62  ;;  %2207 = vmatpush.msrb.mxu3 %v4700_v26  ;;  %v4642_v62 = vld [vmem:[%s9437_s4 + $0xa80] sm:$0xff]  ;;  %v4623_v26 = vld [vmem:[%s9437_s4 + $0x9e8] sm:$0xff] }
 0x22c   : > { %2223 = vmatpush.msra.mxu0 %v4677_v27  ;;  %2243 = vmatpush.msrb.mxu2 %v4709_v28  ;;  %v4651_v27 = vld [vmem:[%s9437_s4 + $0xac8] sm:$0xff]  ;;  %v4612_v28 = vld [vmem:[%s9437_s4 + $0x990] sm:$0xff] }
 0x22d   : > { %2188 = vmatpush.msrb.mxu1 %v4666_v29  ;;  %2208 = vmatpush.msrb.mxu3 %v4698_v1  ;;  %v4640_v29 = vld [vmem:[%s9437_s4 + $0xa70] sm:$0xff]  ;;  %v4621_v1 = vld [vmem:[%s9437_s4 + $0x9d8] sm:$0xff] }
 0x22e   : > { %2224 = vmatpush.msra.mxu0 %v4675_v21  ;;  %2244 = vmatpush.msrb.mxu2 %v4707_v30  ;;  %v4649_v21 = vld [vmem:[%s9437_s4 + $0xab8] sm:$0xff]  ;;  %v4610_v30 = vld [vmem:[%s9437_s4 + $0x980] sm:$0xff] }
 0x22f   : > { %2189 = vmatmul.f32.vlgmr.msrb.gmra.mxu1 %v6376_v58  ;;  %4726 = vmatmul.msk.f32.vlgmr.msrb.gmra.mxu3 %vm1430_vm6, %v6345_v0 }
 0x230   : > { %2253 = vmatpush.msra.mxu3 %v4636_v32  ;;  %2275 = vmatpush.msra.mxu1 %v4664_v35  ;;  %v4638_v32 = vld [vmem:[%s9437_s4 + $0xa60] sm:$0xff]  ;;  %v4619_v35 = vld [vmem:[%s9437_s4 + $0x9c8] sm:$0xff] }
 0x231   : > { %2225 = vmatpush.msra.mxu0 %v4673_v63  ;;  %2245 = vmatpush.msrb.mxu2 %v4705_v36  ;;  %v1510_v9 = vpop.f32.mrf.mxu3  ;;  %v4647_v63 = vld [vmem:[%s9437_s4 + $0xaa8] sm:$0xff]  ;;  %v4608_v36 = vld [vmem:[%s9437_s4 + $0x970] sm:$0xff] }
 0x232   : > { %2254 = vmatpush.msra.mxu3 %v4634_v7  ;;  %2276 = vmatpush.msra.mxu1 %v4662_v37  ;;  %v4760_v7 = vld [vmem:[%s9437_s4 + $0xe10] sm:$0xff]  ;;  %v4617_v37 = vld [vmem:[%s9437_s4 + $0x9b8] sm:$0xff] }
 0x233   : > { %2226 = vmatpush.msra.mxu0 %v4671_v38  ;;  %2246 = vmatpush.msrb.mxu2 %v4703_v33  ;;  %v4645_v38 = vld [vmem:[%s9437_s4 + $0xa98] sm:$0xff]  ;;  %v4606_v33 = vld [vmem:[%s9437_s4 + $0x960] sm:$0xff] }
 0x234   : > { %2255 = vmatpush.msra.mxu3 %v4632_v40  ;;  %2277 = vmatpush.msra.mxu1 %v4660_v41  ;;  %v4758_v40 = vld [vmem:[%s9437_s4 + $0xe00] sm:$0xff]  ;;  %v4615_v41 = vld [vmem:[%s9437_s4 + $0x9a8] sm:$0xff] }
 0x235   : > { %2227 = vmatpush.msra.mxu0 %v4669_v42  ;;  %2247 = vmatpush.msrb.mxu2 %v4701_v23  ;;  %v4643_v42 = vld [vmem:[%s9437_s4 + $0xa88] sm:$0xff]  ;;  %v4756_v23 = vld [vmem:[%s9437_s4 + $0xdf0] sm:$0xff] }
 0x236   : > { %2256 = vmatpush.msra.mxu3 %v4630_v2  ;;  %2278 = vmatpush.msra.mxu1 %v4658_v34  ;;  %v4788_v2 = vld [vmem:[%s9437_s4 + $0xef0] sm:$0xff]  ;;  %v4613_v34 = vld [vmem:[%s9437_s4 + $0x998] sm:$0xff] }
 0x237   : > { %2228 = vmatpush.msra.mxu0 %v4667_v43  ;;  %2248 = vmatpush.msrb.mxu2 %v4699_v44  ;;  %v4641_v43 = vld [vmem:[%s9437_s4 + $0xa78] sm:$0xff]  ;;  %v4754_v44 = vld [vmem:[%s9437_s4 + $0xde0] sm:$0xff] }
 0x238   : > { %2229 = vmatmul.f32.vlgmr.msra.gmra.mxu0 %v6376_v58  ;;  %4727 = vmatmul.msk.f32.vlgmr.msrb.gmra.mxu2 %vm1430_vm6, %v6345_v0  ;;  %v4663_v58 = vld [vmem:[%s9437_s4 + $0xb28] sm:$0xff] }
 0x239   : > { %2257 = vmatpush.msra.mxu3 %v4628_v45  ;;  %2279 = vmatpush.msra.mxu1 %v4656_v46  ;;  %v1490_v0 = vpop.f32.mrf.mxu2  ;;  %v4786_v45 = vld [vmem:[%s9437_s4 + $0xee0] sm:$0xff]  ;;  %v4611_v46 = vld [vmem:[%s9437_s4 + $0x988] sm:$0xff] }
 0x23a   : > { %2293 = vmatpush.msra.mxu2 %v4637_v39  ;;  %2315 = vmatpush.msrb.mxu0 %v4665_v47  ;;  %v7190_v53 = vadd.f32 %v1510_v9, %v1490_v0  ;;  %v4639_v39 = vld [vmem:[%s9437_s4 + $0xa68] sm:$0xff]  ;;  %v4752_v47 = vld [vmem:[%s9437_s4 + $0xdd0] sm:$0xff]  ;;  %v4782_v9 = vld [vmem:[%s9437_s4 + $0xec0] sm:$0xff] }
 0x23b   : > { %2258 = vmatpush.msra.mxu3 %v4626_v48  ;;  %2280 = vmatpush.msra.mxu1 %v4654_v49  ;;  %v4784_v48 = vld [vmem:[%s9437_s4 + $0xed0] sm:$0xff]  ;;  %v4761_v49 = vld [vmem:[%s9437_s4 + $0xe18] sm:$0xff]  ;;  %v4759_v0 = vld [vmem:[%s9437_s4 + $0xe08] sm:$0xff] }
 0x23c   : > { %2294 = vmatpush.msra.mxu2 %v4635_v50  ;;  %2316 = vmatpush.msrb.mxu0 %v4663_v58  ;;  %v4609_v50 = vld [vmem:[%s9437_s4 + $0x978] sm:$0xff]  ;;  %v4750_v58 = vld [vmem:[%s9437_s4 + $0xdc0] sm:$0xff] }
 0x23d   : > { %2259 = vmatpush.msra.mxu3 %v4624_v59  ;;  %2281 = vmatpush.msra.mxu1 %v4652_v13  ;;  %v4607_v59 = vld [vmem:[%s9437_s4 + $0x968] sm:$0xff]  ;;  %v4748_v13 = vld [vmem:[%s9437_s4 + $0xdb0] sm:$0xff] }
 0x23e   : > { %2295 = vmatpush.msra.mxu2 %v4633_v57  ;;  %2317 = vmatpush.msrb.mxu0 %v4661_v60  ;;  %v4757_v57 = vld [vmem:[%s9437_s4 + $0xdf8] sm:$0xff] }
 0x23f   : > { %2260 = vmatpush.msra.mxu3 %v4622_v4  ;;  %2282 = vmatpush.msra.mxu1 %v4650_v10  ;;  %v4789_v60 = vld [vmem:[%s9437_s4 + $0xef8] sm:$0xff]  ;;  %v4746_v4 = vld [vmem:[%s9437_s4 + $0xda0] sm:$0xff] }
 0x240   : > { %2296 = vmatpush.msra.mxu2 %v4631_v14  ;;  %2318 = vmatpush.msrb.mxu0 %v4659_v24  ;;  %v4778_v10 = vld [vmem:[%s9437_s4 + $0xea0] sm:$0xff]  ;;  %v4755_v14 = vld [vmem:[%s9437_s4 + $0xde8] sm:$0xff] }
 0x241   : > { %2261 = vmatpush.msra.mxu3 %v4620_v15  ;;  %2283 = vmatpush.msra.mxu1 %v4648_v20  ;;  %v4787_v24 = vld [vmem:[%s9437_s4 + $0xee8] sm:$0xff]  ;;  %v4744_v15 = vld [vmem:[%s9437_s4 + $0xd90] sm:$0xff] }
 0x242   : > { %2297 = vmatpush.msra.mxu2 %v4629_v25  ;;  %2319 = vmatpush.msrb.mxu0 %v4657_v54  ;;  %v4776_v20 = vld [vmem:[%s9437_s4 + $0xe90] sm:$0xff]  ;;  %v4785_v25 = vld [vmem:[%s9437_s4 + $0xed8] sm:$0xff]  ;;  %v4742_v54 = vld [vmem:[%s9437_s4 + $0xd80] sm:$0xff] }
 0x243   : > { %2262 = vmatpush.msra.mxu3 %v4618_v55  ;;  %2284 = vmatpush.msra.mxu1 %v4646_v61  ;;  %v4774_v55 = vld [vmem:[%s9437_s4 + $0xe80] sm:$0xff]  ;;  %v4751_v61 = vld [vmem:[%s9437_s4 + $0xdc8] sm:$0xff] }
 0x244   : > { %2298 = vmatpush.msra.mxu2 %v4627_v5  ;;  %2320 = vmatpush.msrb.mxu0 %v4655_v52  ;;  %v4783_v5 = vld [vmem:[%s9437_s4 + $0xec8] sm:$0xff]  ;;  %v4740_v52 = vld [vmem:[%s9437_s4 + $0xd70] sm:$0xff] }
 0x245   : > { %2263 = vmatpush.msra.mxu3 %v4616_v12  ;;  %2285 = vmatpush.msra.mxu1 %v4644_v17  ;;  %v4772_v12 = vld [vmem:[%s9437_s4 + $0xe70] sm:$0xff]  ;;  %v4749_v17 = vld [vmem:[%s9437_s4 + $0xdb8] sm:$0xff] }
 0x246   : > { %2299 = vmatpush.msra.mxu2 %v4625_v22  ;;  %2321 = vmatpush.msrb.mxu0 %v4653_v3  ;;  %v4781_v22 = vld [vmem:[%s9437_s4 + $0xeb8] sm:$0xff]  ;;  %v4738_v3 = vld [vmem:[%s9437_s4 + $0xd60] sm:$0xff] }
 0x247   : > { %2264 = vmatpush.msra.mxu3 %v4614_v18  ;;  %2286 = vmatpush.msra.mxu1 %v4642_v62  ;;  %v4770_v18 = vld [vmem:[%s9437_s4 + $0xe60] sm:$0xff]  ;;  %v4747_v62 = vld [vmem:[%s9437_s4 + $0xda8] sm:$0xff] }
 0x248   : > { %2300 = vmatpush.msra.mxu2 %v4623_v26  ;;  %2322 = vmatpush.msrb.mxu0 %v4651_v27  ;;  %v4779_v26 = vld [vmem:[%s9437_s4 + $0xea8] sm:$0xff]  ;;  %v4736_v27 = vld [vmem:[%s9437_s4 + $0xd50] sm:$0xff] }
 0x249   : > { %2265 = vmatpush.msra.mxu3 %v4612_v28  ;;  %2287 = vmatpush.msra.mxu1 %v4640_v29  ;;  %v4768_v28 = vld [vmem:[%s9437_s4 + $0xe50] sm:$0xff]  ;;  %v4745_v29 = vld [vmem:[%s9437_s4 + $0xd98] sm:$0xff] }
 0x24a   : > { %2301 = vmatpush.msra.mxu2 %v4621_v1  ;;  %2323 = vmatpush.msrb.mxu0 %v4649_v21  ;;  %v4777_v1 = vld [vmem:[%s9437_s4 + $0xe98] sm:$0xff]  ;;  %v4734_v21 = vld [vmem:[%s9437_s4 + $0xd40] sm:$0xff] }
 0x24b   : > { %2266 = vmatpush.msra.mxu3 %v4610_v30  ;;  %2288 = vmatpush.msra.mxu1 %v4638_v32  ;;  %v4766_v30 = vld [vmem:[%s9437_s4 + $0xe40] sm:$0xff]  ;;  %v4743_v32 = vld [vmem:[%s9437_s4 + $0xd88] sm:$0xff] }
 0x24c   : > { %2302 = vmatpush.msra.mxu2 %v4619_v35  ;;  %2324 = vmatpush.msrb.mxu0 %v4647_v63  ;;  %v4775_v35 = vld [vmem:[%s9437_s4 + $0xe88] sm:$0xff]  ;;  %v4732_v63 = vld [vmem:[%s9437_s4 + $0xd30] sm:$0xff] }
 0x24d   : > { %4728 = vmatmul.msk.f32.vlgmr.msra.gmra.mxu1 %vm1430_vm6, %v6332_v16  ;;  %2267 = vmatpush.msra.mxu3 %v4608_v36  ;;  %v4764_v36 = vld [vmem:[%s9437_s4 + $0xe30] sm:$0xff] }
 0x24e   : > { %2394 = vmatpush.msrb.mxu1 %v4760_v7  ;;  %2303 = vmatpush.msra.mxu2 %v4617_v37  ;;  %v4741_v7 = vld [vmem:[%s9437_s4 + $0xd78] sm:$0xff] }
 0x24f   : > { %2325 = vmatpush.msrb.mxu0 %v4645_v38  ;;  %2268 = vmatpush.msra.mxu3 %v4606_v33  ;;  %v4773_v37 = vld [vmem:[%s9437_s4 + $0xe78] sm:$0xff]  ;;  %v4730_v38 = vld [vmem:[%s9437_s4 + $0xd20] sm:$0xff] }
 0x250   : > { %2395 = vmatpush.msrb.mxu1 %v4758_v40  ;;  %2304 = vmatpush.msra.mxu2 %v4615_v41  ;;  %v4762_v33 = vld [vmem:[%s9437_s4 + $0xe20] sm:$0xff]  ;;  %v4739_v40 = vld [vmem:[%s9437_s4 + $0xd68] sm:$0xff] }
 0x251   : > { %2326 = vmatpush.msrb.mxu0 %v4643_v42  ;;  %2269 = vmatmul.f32.vlgmr.msra.gmra.mxu3 %v6357_v19  ;;  %v4771_v41 = vld [vmem:[%s9437_s4 + $0xe68] sm:$0xff]  ;;  %v4822_v42 = vld [vmem:[%s9437_s4 + $0xff0] sm:$0xff] }
 0x252   : > { %2396 = vmatpush.msrb.mxu1 %v4756_v23  ;;  %2416 = vmatpush.msrb.mxu3 %v4788_v2  ;;  %v4850_v23 = vld [vmem:[%s9437_s4 + $0x10d0] sm:$0xff]  ;;  %v4737_v2 = vld [vmem:[%s9437_s4 + $0xd58] sm:$0xff] }
 0x253   : > { %2305 = vmatpush.msra.mxu2 %v4613_v34  ;;  %2327 = vmatpush.msrb.mxu0 %v4641_v43  ;;  %v4769_v34 = vld [vmem:[%s9437_s4 + $0xe58] sm:$0xff]  ;;  %v4820_v43 = vld [vmem:[%s9437_s4 + $0xfe0] sm:$0xff] }
 0x254   : > { %2397 = vmatpush.msrb.mxu1 %v4754_v44  ;;  %2417 = vmatpush.msrb.mxu3 %v4786_v45  ;;  %v4848_v44 = vld [vmem:[%s9437_s4 + $0x10c0] sm:$0xff]  ;;  %v4735_v45 = vld [vmem:[%s9437_s4 + $0xd48] sm:$0xff] }
 0x255   : > { %2306 = vmatpush.msra.mxu2 %v4611_v46  ;;  %2328 = vmatpush.msrb.mxu0 %v4639_v39  ;;  %v4767_v46 = vld [vmem:[%s9437_s4 + $0xe48] sm:$0xff]  ;;  %v4818_v39 = vld [vmem:[%s9437_s4 + $0xfd0] sm:$0xff] }
 0x256   : > { %4729 = vmatmul.msk.f32.vlgmr.msrb.gmra.mxu0 %vm1430_vm6, %v6332_v16  ;;  %2398 = vmatpush.msrb.mxu1 %v4752_v47  ;;  %v4780_v16 = vld [vmem:[%s9437_s4 + $0xeb0] sm:$0xff] }
 0x257   : > { %2418 = vmatpush.msrb.mxu3 %v4784_v48  ;;  %2434 = vmatpush.msra.mxu0 %v4761_v49  ;;  %v4846_v47 = vld [vmem:[%s9437_s4 + $0x10b0] sm:$0xff]  ;;  %v4733_v48 = vld [vmem:[%s9437_s4 + $0xd38] sm:$0xff] }
 0x258   : > { %2307 = vmatpush.msra.mxu2 %v4609_v50  ;;  %2399 = vmatpush.msrb.mxu1 %v4750_v58  ;;  %v4765_v49 = vld [vmem:[%s9437_s4 + $0xe38] sm:$0xff]  ;;  %v4816_v50 = vld [vmem:[%s9437_s4 + $0xfc0] sm:$0xff] }
 0x259   : > { %2419 = vmatpush.msrb.mxu3 %v4782_v9  ;;  %2435 = vmatpush.msra.mxu0 %v4759_v0  ;;  %v4844_v58 = vld [vmem:[%s9437_s4 + $0x10a0] sm:$0xff]  ;;  %v4731_v9 = vld [vmem:[%s9437_s4 + $0xd28] sm:$0xff] }
 0x25a   : > { %2308 = vmatpush.msra.mxu2 %v4607_v59  ;;  %2400 = vmatpush.msrb.mxu1 %v4748_v13  ;;  %v4763_v0 = vld [vmem:[%s9437_s4 + $0xe28] sm:$0xff]  ;;  %v4814_v59 = vld [vmem:[%s9437_s4 + $0xfb0] sm:$0xff] }
 0x25b   : > { %2309 = vmatmul.f32.vlgmr.msra.gmra.mxu2 %v6357_v19  ;;  %2420 = vmatpush.msrb.mxu3 %v4780_v16  ;;  %v4753_v19 = vld [vmem:[%s9437_s4 + $0xdd8] sm:$0xff]  ;;  %v4842_v13 = vld [vmem:[%s9437_s4 + $0x1090] sm:$0xff] }
 0x25c   : > { %2436 = vmatpush.msra.mxu0 %v4757_v57  ;;  %2456 = vmatpush.msrb.mxu2 %v4789_v60  ;;  %v4823_v16 = vld [vmem:[%s9437_s4 + $0xff8] sm:$0xff]  ;;  %v4812_v60 = vld [vmem:[%s9437_s4 + $0xfa0] sm:$0xff] }
 0x25d   : > { %2401 = vmatpush.msrb.mxu1 %v4746_v4  ;;  %2421 = vmatpush.msrb.mxu3 %v4778_v10  ;;  %v4851_v57 = vld [vmem:[%s9437_s4 + $0x10d8] sm:$0xff]  ;;  %v4840_v4 = vld [vmem:[%s9437_s4 + $0x1080] sm:$0xff]  ;;  %v4821_v10 = vld [vmem:[%s9437_s4 + $0xfe8] sm:$0xff] }
 0x25e   : > { %2437 = vmatpush.msra.mxu0 %v4755_v14  ;;  %2457 = vmatpush.msrb.mxu2 %v4787_v24  ;;  %v4838_v14 = vld [vmem:[%s9437_s4 + $0x1070] sm:$0xff]  ;;  %v4819_v24 = vld [vmem:[%s9437_s4 + $0xfd8] sm:$0xff] }
 0x25f   : > { %2402 = vmatpush.msrb.mxu1 %v4744_v15  ;;  %2422 = vmatpush.msrb.mxu3 %v4776_v20  ;;  %v4847_v15 = vld [vmem:[%s9437_s4 + $0x10b8] sm:$0xff]  ;;  %v4808_v20 = vld [vmem:[%s9437_s4 + $0xf80] sm:$0xff] }
 0x260   : > { %2438 = vmatpush.msra.mxu0 %v4753_v19  ;;  %2458 = vmatpush.msrb.mxu2 %v4785_v25  ;;  %v4836_v19 = vld [vmem:[%s9437_s4 + $0x1060] sm:$0xff]  ;;  %v4817_v25 = vld [vmem:[%s9437_s4 + $0xfc8] sm:$0xff] }
 0x261   : > { %2403 = vmatpush.msrb.mxu1 %v4742_v54  ;;  %2423 = vmatpush.msrb.mxu3 %v4774_v55  ;;  %v4845_v54 = vld [vmem:[%s9437_s4 + $0x10a8] sm:$0xff]  ;;  %v4806_v55 = vld [vmem:[%s9437_s4 + $0xf70] sm:$0xff] }
 0x262   : > { %2439 = vmatpush.msra.mxu0 %v4751_v61  ;;  %2459 = vmatpush.msrb.mxu2 %v4783_v5  ;;  %v4834_v61 = vld [vmem:[%s9437_s4 + $0x1050] sm:$0xff]  ;;  %v4815_v5 = vld [vmem:[%s9437_s4 + $0xfb8] sm:$0xff] }
 0x263   : > { %2404 = vmatpush.msrb.mxu1 %v4740_v52  ;;  %2424 = vmatpush.msrb.mxu3 %v4772_v12  ;;  %v4843_v52 = vld [vmem:[%s9437_s4 + $0x1098] sm:$0xff]  ;;  %v4804_v12 = vld [vmem:[%s9437_s4 + $0xf60] sm:$0xff] }
 0x264   : > { %2440 = vmatpush.msra.mxu0 %v4749_v17  ;;  %2460 = vmatpush.msrb.mxu2 %v4781_v22  ;;  %v4832_v17 = vld [vmem:[%s9437_s4 + $0x1040] sm:$0xff]  ;;  %v4813_v22 = vld [vmem:[%s9437_s4 + $0xfa8] sm:$0xff] }
 0x265   : > { %2405 = vmatpush.msrb.mxu1 %v4738_v3  ;;  %2425 = vmatpush.msrb.mxu3 %v4770_v18  ;;  %v4841_v3 = vld [vmem:[%s9437_s4 + $0x1088] sm:$0xff]  ;;  %v4802_v18 = vld [vmem:[%s9437_s4 + $0xf50] sm:$0xff] }
 0x266   : > { %2441 = vmatpush.msra.mxu0 %v4747_v62  ;;  %2461 = vmatpush.msrb.mxu2 %v4779_v26  ;;  %v4830_v62 = vld [vmem:[%s9437_s4 + $0x1030] sm:$0xff]  ;;  %v4811_v26 = vld [vmem:[%s9437_s4 + $0xf98] sm:$0xff] }
 0x267   : > { %2406 = vmatpush.msrb.mxu1 %v4736_v27  ;;  %2426 = vmatpush.msrb.mxu3 %v4768_v28  ;;  %v4839_v27 = vld [vmem:[%s9437_s4 + $0x1078] sm:$0xff]  ;;  %v4800_v28 = vld [vmem:[%s9437_s4 + $0xf40] sm:$0xff] }
 0x268   : > { %2442 = vmatpush.msra.mxu0 %v4745_v29  ;;  %2462 = vmatpush.msrb.mxu2 %v4777_v1  ;;  %v4828_v29 = vld [vmem:[%s9437_s4 + $0x1020] sm:$0xff]  ;;  %v4809_v1 = vld [vmem:[%s9437_s4 + $0xf88] sm:$0xff] }
 0x269   : > { %2407 = vmatpush.msrb.mxu1 %v4734_v21  ;;  %2427 = vmatpush.msrb.mxu3 %v4766_v30  ;;  %v4837_v21 = vld [vmem:[%s9437_s4 + $0x1068] sm:$0xff]  ;;  %v4798_v30 = vld [vmem:[%s9437_s4 + $0xf30] sm:$0xff] }
 0x26a   : > { %2443 = vmatpush.msra.mxu0 %v4743_v32  ;;  %2463 = vmatpush.msrb.mxu2 %v4775_v35  ;;  %v4826_v32 = vld [vmem:[%s9437_s4 + $0x1010] sm:$0xff]  ;;  %v4807_v35 = vld [vmem:[%s9437_s4 + $0xf78] sm:$0xff] }
 0x26b   : > { %2408 = vmatpush.msrb.mxu1 %v4732_v63  ;;  %2428 = vmatpush.msrb.mxu3 %v4764_v36  ;;  %v4835_v63 = vld [vmem:[%s9437_s4 + $0x1058] sm:$0xff]  ;;  %v4796_v36 = vld [vmem:[%s9437_s4 + $0xf20] sm:$0xff] }
 0x26c   : > { %2444 = vmatpush.msra.mxu0 %v4741_v7  ;;  %2464 = vmatpush.msrb.mxu2 %v4773_v37  ;;  %v4824_v7 = vld [vmem:[%s9437_s4 + $0x1000] sm:$0xff]  ;;  %v4805_v37 = vld [vmem:[%s9437_s4 + $0xf68] sm:$0xff] }
 0x26d   : > { %2409 = vmatpush.msrb.mxu1 %v4730_v38  ;;  %2429 = vmatpush.msrb.mxu3 %v4762_v33  ;;  %v4833_v38 = vld [vmem:[%s9437_s4 + $0x1048] sm:$0xff]  ;;  %v4794_v33 = vld [vmem:[%s9437_s4 + $0xf10] sm:$0xff] }
 0x26e   : > { %2445 = vmatpush.msra.mxu0 %v4739_v40  ;;  %2465 = vmatpush.msrb.mxu2 %v4771_v41  ;;  %v4884_v40 = vld [vmem:[%s9437_s4 + $0x11d0] sm:$0xff]  ;;  %v4803_v41 = vld [vmem:[%s9437_s4 + $0xf58] sm:$0xff] }
 0x26f   : > { %2410 = vmatmul.f32.vlgmr.msrb.gmra.mxu1 %v6546_v51  ;;  %4790 = vmatmul.msk.f32.vlgmr.msrb.gmra.mxu3 %vm1430_vm6, %v6518_v56 }
 0x270   : > { %2537 = vmatpush.msra.mxu3 %v4822_v42  ;;  %2559 = vmatpush.msra.mxu1 %v4850_v23  ;;  %v4831_v42 = vld [vmem:[%s9437_s4 + $0x1038] sm:$0xff]  ;;  %v4792_v23 = vld [vmem:[%s9437_s4 + $0xf00] sm:$0xff] }
 0x271   : > { %2446 = vmatpush.msra.mxu0 %v4737_v2  ;;  %2466 = vmatpush.msrb.mxu2 %v4769_v34  ;;  %v4882_v2 = vld [vmem:[%s9437_s4 + $0x11c0] sm:$0xff]  ;;  %v4801_v34 = vld [vmem:[%s9437_s4 + $0xf48] sm:$0xff] }
 0x272   : > { %2538 = vmatpush.msra.mxu3 %v4820_v43  ;;  %2560 = vmatpush.msra.mxu1 %v4848_v44  ;;  %v4829_v43 = vld [vmem:[%s9437_s4 + $0x1028] sm:$0xff]  ;;  %v4880_v44 = vld [vmem:[%s9437_s4 + $0x11b0] sm:$0xff] }
 0x273   : > { %2447 = vmatpush.msra.mxu0 %v4735_v45  ;;  %2467 = vmatpush.msrb.mxu2 %v4767_v46  ;;  %v4912_v45 = vld [vmem:[%s9437_s4 + $0x12b0] sm:$0xff]  ;;  %v4799_v46 = vld [vmem:[%s9437_s4 + $0xf38] sm:$0xff] }
 0x274   : > { %2539 = vmatpush.msra.mxu3 %v4818_v39  ;;  %2561 = vmatpush.msra.mxu1 %v4846_v47  ;;  %v4827_v39 = vld [vmem:[%s9437_s4 + $0x1018] sm:$0xff]  ;;  %v4878_v47 = vld [vmem:[%s9437_s4 + $0x11a0] sm:$0xff] }
 0x275   : > { %2448 = vmatpush.msra.mxu0 %v4733_v48  ;;  %2468 = vmatpush.msrb.mxu2 %v4765_v49  ;;  %v4910_v48 = vld [vmem:[%s9437_s4 + $0x12a0] sm:$0xff]  ;;  %v4797_v49 = vld [vmem:[%s9437_s4 + $0xf28] sm:$0xff] }
 0x276   : > { %2540 = vmatpush.msra.mxu3 %v4816_v50  ;;  %2562 = vmatpush.msra.mxu1 %v4844_v58  ;;  %v4825_v50 = vld [vmem:[%s9437_s4 + $0x1008] sm:$0xff]  ;;  %v4876_v58 = vld [vmem:[%s9437_s4 + $0x1190] sm:$0xff] }
 0x277   : > { %2449 = vmatpush.msra.mxu0 %v4731_v9  ;;  %2469 = vmatpush.msrb.mxu2 %v4763_v0  ;;  %v4908_v9 = vld [vmem:[%s9437_s4 + $0x1290] sm:$0xff]  ;;  %v4885_v0 = vld [vmem:[%s9437_s4 + $0x11d8] sm:$0xff] }
 0x278   : > { %2450 = vmatmul.f32.vlgmr.msra.gmra.mxu0 %v6546_v51  ;;  %4791 = vmatmul.msk.f32.vlgmr.msrb.gmra.mxu2 %vm1430_vm6, %v6518_v56  ;;  %v4849_v51 = vld [vmem:[%s9437_s4 + $0x10c8] sm:$0xff]  ;;  %v4810_v56 = vld [vmem:[%s9437_s4 + $0xf90] sm:$0xff] }
 0x279   : > { %2541 = vmatpush.msra.mxu3 %v4814_v59  ;;  %2563 = vmatpush.msra.mxu1 %v4842_v13  ;;  %v4795_v59 = vld [vmem:[%s9437_s4 + $0xf18] sm:$0xff]  ;;  %v4874_v13 = vld [vmem:[%s9437_s4 + $0x1180] sm:$0xff] }
 0x27a   : > { %2577 = vmatpush.msra.mxu2 %v4823_v16  ;;  %2599 = vmatpush.msrb.mxu0 %v4851_v57  ;;  %v4906_v16 = vld [vmem:[%s9437_s4 + $0x1280] sm:$0xff]  ;;  %v4883_v57 = vld [vmem:[%s9437_s4 + $0x11c8] sm:$0xff] }
 0x27b   : > { %2542 = vmatpush.msra.mxu3 %v4812_v60  ;;  %2564 = vmatpush.msra.mxu1 %v4840_v4  ;;  %v4793_v60 = vld [vmem:[%s9437_s4 + $0xf08] sm:$0xff]  ;;  %v4872_v4 = vld [vmem:[%s9437_s4 + $0x1170] sm:$0xff] }
 0x27c   : > { %2578 = vmatpush.msra.mxu2 %v4821_v10  ;;  %2600 = vmatpush.msrb.mxu0 %v4849_v51  ;;  %v4881_v10 = vld [vmem:[%s9437_s4 + $0x11b8] sm:$0xff] }
 0x27d   : > { %2543 = vmatpush.msra.mxu3 %v4810_v56  ;;  %2565 = vmatpush.msra.mxu1 %v4838_v14  ;;  %v4913_v51 = vld [vmem:[%s9437_s4 + $0x12b8] sm:$0xff]  ;;  %v4870_v56 = vld [vmem:[%s9437_s4 + $0x1160] sm:$0xff] }
 0x27e   : > { %2579 = vmatpush.msra.mxu2 %v4819_v24  ;;  %2601 = vmatpush.msrb.mxu0 %v4847_v15  ;;  %v4902_v14 = vld [vmem:[%s9437_s4 + $0x1260] sm:$0xff]  ;;  %v4879_v24 = vld [vmem:[%s9437_s4 + $0x11a8] sm:$0xff] }
 0x27f   : > { %2544 = vmatpush.msra.mxu3 %v4808_v20  ;;  %2566 = vmatpush.msra.mxu1 %v4836_v19  ;;  %v4911_v15 = vld [vmem:[%s9437_s4 + $0x12a8] sm:$0xff]  ;;  %v4868_v20 = vld [vmem:[%s9437_s4 + $0x1150] sm:$0xff] }
 0x280   : > { %2580 = vmatpush.msra.mxu2 %v4817_v25  ;;  %2602 = vmatpush.msrb.mxu0 %v4845_v54  ;;  %v4900_v19 = vld [vmem:[%s9437_s4 + $0x1250] sm:$0xff]  ;;  %v4909_v25 = vld [vmem:[%s9437_s4 + $0x1298] sm:$0xff]  ;;  %v4866_v54 = vld [vmem:[%s9437_s4 + $0x1140] sm:$0xff] }
 0x281   : > { %2545 = vmatpush.msra.mxu3 %v4806_v55  ;;  %2567 = vmatpush.msra.mxu1 %v4834_v61  ;;  %v4898_v55 = vld [vmem:[%s9437_s4 + $0x1240] sm:$0xff]  ;;  %v4875_v61 = vld [vmem:[%s9437_s4 + $0x1188] sm:$0xff] }
 0x282   : > { %2581 = vmatpush.msra.mxu2 %v4815_v5  ;;  %2603 = vmatpush.msrb.mxu0 %v4843_v52  ;;  %v4907_v5 = vld [vmem:[%s9437_s4 + $0x1288] sm:$0xff]  ;;  %v4864_v52 = vld [vmem:[%s9437_s4 + $0x1130] sm:$0xff] }
 0x283   : > { %2546 = vmatpush.msra.mxu3 %v4804_v12  ;;  %2568 = vmatpush.msra.mxu1 %v4832_v17  ;;  %v4896_v12 = vld [vmem:[%s9437_s4 + $0x1230] sm:$0xff]  ;;  %v4873_v17 = vld [vmem:[%s9437_s4 + $0x1178] sm:$0xff] }
 0x284   : > { %2582 = vmatpush.msra.mxu2 %v4813_v22  ;;  %2604 = vmatpush.msrb.mxu0 %v4841_v3  ;;  %v4905_v22 = vld [vmem:[%s9437_s4 + $0x1278] sm:$0xff]  ;;  %v4862_v3 = vld [vmem:[%s9437_s4 + $0x1120] sm:$0xff] }
 0x285   : > { %2547 = vmatpush.msra.mxu3 %v4802_v18  ;;  %2569 = vmatpush.msra.mxu1 %v4830_v62  ;;  %v4894_v18 = vld [vmem:[%s9437_s4 + $0x1220] sm:$0xff]  ;;  %v4871_v62 = vld [vmem:[%s9437_s4 + $0x1168] sm:$0xff] }
 0x286   : > { %2583 = vmatpush.msra.mxu2 %v4811_v26  ;;  %2605 = vmatpush.msrb.mxu0 %v4839_v27  ;;  %v4903_v26 = vld [vmem:[%s9437_s4 + $0x1268] sm:$0xff]  ;;  %v4860_v27 = vld [vmem:[%s9437_s4 + $0x1110] sm:$0xff] }
 0x287   : > { %2548 = vmatpush.msra.mxu3 %v4800_v28  ;;  %2570 = vmatpush.msra.mxu1 %v4828_v29  ;;  %v4892_v28 = vld [vmem:[%s9437_s4 + $0x1210] sm:$0xff]  ;;  %v4869_v29 = vld [vmem:[%s9437_s4 + $0x1158] sm:$0xff] }
 0x288   : > { %2584 = vmatpush.msra.mxu2 %v4809_v1  ;;  %2606 = vmatpush.msrb.mxu0 %v4837_v21  ;;  %v4901_v1 = vld [vmem:[%s9437_s4 + $0x1258] sm:$0xff]  ;;  %v4858_v21 = vld [vmem:[%s9437_s4 + $0x1100] sm:$0xff] }
 0x289   : > { %2549 = vmatpush.msra.mxu3 %v4798_v30  ;;  %2571 = vmatpush.msra.mxu1 %v4826_v32  ;;  %v4890_v30 = vld [vmem:[%s9437_s4 + $0x1200] sm:$0xff]  ;;  %v4867_v32 = vld [vmem:[%s9437_s4 + $0x1148] sm:$0xff] }
 0x28a   : > { %2585 = vmatpush.msra.mxu2 %v4807_v35  ;;  %2607 = vmatpush.msrb.mxu0 %v4835_v63  ;;  %v4899_v35 = vld [vmem:[%s9437_s4 + $0x1248] sm:$0xff]  ;;  %v4856_v63 = vld [vmem:[%s9437_s4 + $0x10f0] sm:$0xff] }
 0x28b   : > { %2550 = vmatpush.msra.mxu3 %v4796_v36  ;;  %2572 = vmatpush.msra.mxu1 %v4824_v7  ;;  %v4888_v36 = vld [vmem:[%s9437_s4 + $0x11f0] sm:$0xff]  ;;  %v4865_v7 = vld [vmem:[%s9437_s4 + $0x1138] sm:$0xff] }
 0x28c   : > { %2586 = vmatpush.msra.mxu2 %v4805_v37  ;;  %2608 = vmatpush.msrb.mxu0 %v4833_v38  ;;  %v4897_v37 = vld [vmem:[%s9437_s4 + $0x1238] sm:$0xff]  ;;  %v4854_v38 = vld [vmem:[%s9437_s4 + $0x10e0] sm:$0xff] }
 0x28d   : > { %4852 = vmatmul.msk.f32.vlgmr.msra.gmra.mxu1 %vm1430_vm6, %v6728_v6  ;;  %2551 = vmatpush.msra.mxu3 %v4794_v33  ;;  %v4886_v33 = vld [vmem:[%s9437_s4 + $0x11e0] sm:$0xff] }
 0x28e   : > { %2680 = vmatpush.msrb.mxu1 %v4884_v40  ;;  %2587 = vmatpush.msra.mxu2 %v4803_v41  ;;  %v4863_v40 = vld [vmem:[%s9437_s4 + $0x1128] sm:$0xff] }
 0x28f   : > { %2609 = vmatpush.msrb.mxu0 %v4831_v42  ;;  %2552 = vmatpush.msra.mxu3 %v4792_v23  ;;  %v4895_v41 = vld [vmem:[%s9437_s4 + $0x1228] sm:$0xff]  ;;  %v4861_v42 = vld [vmem:[%s9437_s4 + $0x1118] sm:$0xff] }
 0x290   : > { %2681 = vmatpush.msrb.mxu1 %v4882_v2  ;;  %2588 = vmatpush.msra.mxu2 %v4801_v34  ;;  %v4893_v23 = vld [vmem:[%s9437_s4 + $0x1218] sm:$0xff]  ;;  %v4859_v2 = vld [vmem:[%s9437_s4 + $0x1108] sm:$0xff] }
 0x291   : > { %2610 = vmatpush.msrb.mxu0 %v4829_v43  ;;  %2553 = vmatmul.f32.vlgmr.msra.gmra.mxu3 %v6725_v11  ;;  %v4891_v34 = vld [vmem:[%s9437_s4 + $0x1208] sm:$0xff]  ;;  %v4857_v43 = vld [vmem:[%s9437_s4 + $0x10f8] sm:$0xff] }
 0x292   : > { %2682 = vmatpush.msrb.mxu1 %v4880_v44  ;;  %2702 = vmatpush.msrb.mxu3 %v4912_v45  ;;  %v4889_v44 = vld [vmem:[%s9437_s4 + $0x11f8] sm:$0xff]  ;;  %v4855_v45 = vld [vmem:[%s9437_s4 + $0x10e8] sm:$0xff] }
 0x293   : > { %2589 = vmatpush.msra.mxu2 %v4799_v46  ;;  %2611 = vmatpush.msrb.mxu0 %v4827_v39  ;;  %v4887_v46 = vld [vmem:[%s9437_s4 + $0x11e8] sm:$0xff]  ;;  %v1470_v39 = vpop.f32.mrf.mxu1 }
 0x294   : > { %2683 = vmatpush.msrb.mxu1 %v4878_v47  ;;  %2703 = vmatpush.msrb.mxu3 %v4910_v48  ;;  %v1450_v47 = vpop.f32.mrf.mxu0 }
 0x295   : > { %2590 = vmatpush.msra.mxu2 %v4797_v49  ;;  %2612 = vmatpush.msrb.mxu0 %v4825_v50  ;;  %v1552_v49 = vpop.f32.mrf.mxu3 }
 0x296   : > { %4853 = vmatmul.msk.f32.vlgmr.msrb.gmra.mxu0 %vm1430_vm6, %v6728_v6  ;;  %2684 = vmatpush.msrb.mxu1 %v4876_v58  ;;  %v4904_v6 = vld [vmem:[%s9437_s4 + $0x1270] sm:$0xff]  ;;  %v1592_v58 = vpop.f32.mrf.mxu2 }
 0x297   : > { %2704 = vmatpush.msrb.mxu3 %v4908_v9  ;;  %2720 = vmatpush.msra.mxu0 %v4885_v0 }
 0x298   : > { %2591 = vmatpush.msra.mxu2 %v4795_v59  ;;  %2685 = vmatpush.msrb.mxu1 %v4874_v13 }
 0x299   : > { %2705 = vmatpush.msrb.mxu3 %v4906_v16  ;;  %2721 = vmatpush.msra.mxu0 %v4883_v57 }
 0x29a   : > { %2592 = vmatpush.msra.mxu2 %v4793_v60  ;;  %2686 = vmatpush.msrb.mxu1 %v4872_v4 }
 0x29b   : > { %2593 = vmatmul.f32.vlgmr.msra.gmra.mxu2 %v6725_v11  ;;  %2706 = vmatpush.msrb.mxu3 %v4904_v6  ;;  %v4877_v11 = vld [vmem:[%s9437_s4 + $0x1198] sm:$0xff]  ;;  %v1532_v48 = vpop.f32.mrf.mxu1 }
 0x29c   : > { %2722 = vmatpush.msra.mxu0 %v4881_v10  ;;  %2742 = vmatpush.msrb.mxu2 %v4913_v51  ;;  %v1572_v50 = vpop.f32.mrf.mxu0 }
 0x29d   : > { %2687 = vmatpush.msrb.mxu1 %v4870_v56  ;;  %2707 = vmatpush.msrb.mxu3 %v4902_v14  ;;  %v1682_v0 = vpop.f32.mrf.mxu3 }
 0x29e   : > { %2723 = vmatpush.msra.mxu0 %v4879_v24  ;;  %2743 = vmatpush.msrb.mxu2 %v4911_v15  ;;  %v1722_v13 = vpop.f32.mrf.mxu2 }
 0x29f   : > { %2688 = vmatpush.msrb.mxu1 %v4868_v20  ;;  %2708 = vmatpush.msrb.mxu3 %v4900_v19 }
 0x2a0   : > { %2724 = vmatpush.msra.mxu0 %v4877_v11  ;;  %2744 = vmatpush.msrb.mxu2 %v4909_v25 }
 0x2a1   : > { %2689 = vmatpush.msrb.mxu1 %v4866_v54  ;;  %2709 = vmatpush.msrb.mxu3 %v4898_v55  ;;  %v1471_v55 = vadd.f32 %v1470_v39, %v1450_v47 }
 0x2a2   : > { %2725 = vmatpush.msra.mxu0 %v4875_v61  ;;  %2745 = vmatpush.msrb.mxu2 %v4907_v5 }
 0x2a3   : > { %2690 = vmatpush.msrb.mxu1 %v4864_v52  ;;  %2710 = vmatpush.msrb.mxu3 %v4896_v12  ;;  %v1702_v9 = vpop.f32.mrf.mxu1 }
 0x2a4   : > { %2726 = vmatpush.msra.mxu0 %v4873_v17  ;;  %2746 = vmatpush.msrb.mxu2 %v4905_v22  ;;  %v1742_v59 = vpop.f32.mrf.mxu0 }
 0x2a5   : > { %2691 = vmatpush.msrb.mxu1 %v4862_v3  ;;  %2711 = vmatpush.msrb.mxu3 %v4894_v18  ;;  %v1854_v57 = vpop.f32.mrf.mxu3  ;;  %v1533_v3 = vadd.f32 %v1532_v48, %v1471_v55  ;;  %v1703_v18 = vadd.f32 %v1702_v9, %v1682_v0  ;;  %v4970_v55 = vld [vmem:[%s9440_s7 + $0x4a8] sm:$0xff] }
 0x2a6   : > { %2727 = vmatpush.msra.mxu0 %v4871_v62  ;;  %2747 = vmatpush.msrb.mxu2 %v4903_v26  ;;  %v1894_v4 = vpop.f32.mrf.mxu2 }
 0x2a7   : > { %2692 = vmatpush.msrb.mxu1 %v4860_v27  ;;  %2712 = vmatpush.msrb.mxu3 %v4892_v28  ;;  %v1553_v26 = vadd.f32 %v1552_v49, %v1533_v3  ;;  %v5009_v3 = vld [vmem:[%s9440_s7 + $0x5e0] sm:$0xff] }
 0x2a8   : > { %2728 = vmatpush.msra.mxu0 %v4869_v29  ;;  %2748 = vmatpush.msrb.mxu2 %v4901_v1 }
 0x2a9   : > { %2693 = vmatpush.msrb.mxu1 %v4858_v21  ;;  %2713 = vmatpush.msrb.mxu3 %v4890_v30  ;;  %v1745_v1 = vadd.f32 %v1703_v18, %v1553_v26  ;;  %v4962_v18 = vld [vmem:[%s9440_s7 + $0x468] sm:$0xff]  ;;  %v4957_v26 = vld [vmem:[%s9440_s7 + $0x440] sm:$0xff] }
 0x2aa   : > { %2729 = vmatpush.msra.mxu0 %v4867_v32  ;;  %2749 = vmatpush.msrb.mxu2 %v4899_v35 }
 0x2ab   : > { %2694 = vmatpush.msrb.mxu1 %v4856_v63  ;;  %2714 = vmatpush.msrb.mxu3 %v4888_v36  ;;  %v1834_v16 = vpop.f32.mrf.mxu1 }
 0x2ac   : > { %2730 = vmatpush.msra.mxu0 %v4865_v7  ;;  %2750 = vmatpush.msrb.mxu2 %v4897_v37  ;;  %v1874_v60 = vpop.f32.mrf.mxu0  ;;  %v1855_v27 = vadd.f32 %v1854_v57, %v1834_v16  ;;  %v2764_v37 = vld [vmem:[%s9438_s5] sm:$0x3] }
 0x2ad   : > { %2695 = vmatpush.msrb.mxu1 %v4854_v38  ;;  %2715 = vmatpush.msrb.mxu3 %v4886_v33  ;;  %v1986_v10 = vpop.f32.mrf.mxu3 }
 0x2ae   : > { %2731 = vmatpush.msra.mxu0 %v4863_v40  ;;  %2751 = vmatpush.msrb.mxu2 %v4895_v41  ;;  %v2026_v51 = vpop.f32.mrf.mxu2  ;;  %v1897_v38 = vadd.f32 %v1855_v27, %v1745_v1  ;;  %v5005_v27 = vld [vmem:[%s9440_s7 + $0x5c0] sm:$0xff] }
 0x2af   : > { %2696 = vmatmul.f32.vlgmr.msrb.gmra.mxu1 %v6938_v31  ;;  %4914 = vmatmul.msk.f32.vlgmr.msrb.gmra.mxu3 %vm1430_vm6, %v6910_v8  ;;  %v4953_v1 = vld [vmem:[%s9440_s7 + $0x420] sm:$0xff] }
 0x2b0   : > { %2732 = vmatpush.msra.mxu0 %v4861_v42  ;;  %2752 = vmatpush.msrb.mxu2 %v4893_v23  ;;  %v1573_v42 = vadd.f32 %v1572_v50, %v7190_v53  ;;  %v1743_v23 = vadd.f32 %v1742_v59, %v1722_v13  ;;  %v2774_v50 = vld [vmem:[%s9439_s6] sm:$0xf]  ;;  %v4982_v13 = vld [vmem:[%s9440_s7 + $0x508] sm:$0xff] }
 0x2b1   : > { %v4981_v59 = vld [vmem:[%s9440_s7 + $0x500] sm:$0xff] }
 0x2b2   : > { %2733 = vmatpush.msra.mxu0 %v4859_v2  ;;  %2753 = vmatpush.msrb.mxu2 %v4891_v34 }
 0x2b3   : > { %v2006_v6 = vpop.f32.mrf.mxu1 }
 0x2b4   : > { %2734 = vmatpush.msra.mxu0 %v4857_v43  ;;  %2754 = vmatpush.msrb.mxu2 %v4889_v44  ;;  %v2007_v21 = vadd.f32 %v2006_v6, %v1986_v10  ;;  %v2766_v44 = vperm.slane %v2764_v37, 0 }
 0x2b6   : > { %2735 = vmatpush.msra.mxu0 %v4855_v45  ;;  %2755 = vmatpush.msrb.mxu2 %v4887_v46  ;;  %v2049_v2 = vadd.f32 %v2007_v21, %v1897_v38  ;;  %v1593_v45 = vadd.f32 %v1592_v58, %v1573_v42  ;;  %v1895_v46 = vadd.f32 %v1894_v4, %v1874_v60  ;;  %v4918_v58 = vld [vmem:[%s9439_s6 + $0x4] sm:$0xf] }
 0x2b7   : > { %2736 = vmatmul.f32.vlgmr.msra.gmra.mxu0 %v6938_v31  ;;  %4915 = vmatmul.msk.f32.vlgmr.msrb.gmra.mxu2 %vm1430_vm6, %v6910_v8  ;;  %v2046_v31 = vpop.f32.mrf.mxu0  ;;  %v2210_v8 = vpop.f32.mrf.mxu3  ;;  %v5001_v21 = vld [vmem:[%s9440_s7 + $0x5a0] sm:$0xff] }
 0x2b8   : > { %v1746_v49 = vadd.f32 %v1743_v23, %v1593_v45  ;;  %v2047_v9 = vadd.f32 %v2046_v31, %v2026_v51  ;;  %v2767_v31 = vperm.slane %v2764_v37, 1  ;;  %v4977_v51 = vld [vmem:[%s9440_s7 + $0x4e0] sm:$0xff]  ;;  %v4942_v23 = vld [vmem:[%s9440_s7 + $0x3c8] sm:$0xff] }
 0x2b9   : > { %v4945_v37 = vld [vmem:[%s9440_s7 + $0x3e0] sm:$0xff]  ;;  %v4938_v45 = vld [vmem:[%s9440_s7 + $0x3a8] sm:$0xff] }
 0x2ba   : > { %v1898_v57 = vadd.f32 %v1895_v46, %v1746_v49  ;;  %v4993_v38 = vld [vmem:[%s9440_s7 + $0x560] sm:$0xff] }
 0x2bb   : > { %v2190_v56 = vpop.f32.mrf.mxu1  ;;  %v2250_v24 = vpop.f32.mrf.mxu2  ;;  %v4989_v42 = vld [vmem:[%s9440_s7 + $0x540] sm:$0xff] }
 0x2bc   : > { %v2211_v61 = vadd.f32 %v2210_v8, %v2190_v56  ;;  %v2050_v60 = vadd.f32 %v2047_v9, %v1898_v57  ;;  %v4933_v46 = vld [vmem:[%s9440_s7 + $0x380] sm:$0xff]  ;;  %v5019_v9 = vld [vmem:[%s9440_s7 + $0x630] sm:$0xff] }
 0x2bd   : > { %v4929_v49 = vld [vmem:[%s9440_s7 + $0x360] sm:$0xff] }
 0x2be   : > { %v4925_v57 = vld [vmem:[%s9440_s7 + $0x340] sm:$0xff] }
 0x2bf   : > { %v2230_v14 = vpop.f32.mrf.mxu0 }
 0x2c0   : > { %v2251_v30 = vadd.f32 %v2250_v24, %v2230_v14  ;;  %v4978_v14 = vld [vmem:[%s9440_s7 + $0x4e8] sm:$0xff] }
 0x2ca   : > { %v2290_v15 = vpop.f32.mrf.mxu1 }
 0x2d3   : > { %v2330_v19 = vpop.f32.mrf.mxu0 }
 0x2d4   : > { %v2270_v20 = vpop.f32.mrf.mxu3 }
 0x2d5   : > { %v2271_v22 = vadd.f32 %v2270_v20, %v2211_v61  ;;  %v4974_v20 = vld [vmem:[%s9440_s7 + $0x4c8] sm:$0xff] }
 0x2d6   : > { %v5018_v61 = vld [vmem:[%s9440_s7 + $0x628] sm:$0xff] }
 0x2d7   : > { %v2291_v28 = vadd.f32 %v2290_v15, %v2271_v22  ;;  %v4973_v15 = vld [vmem:[%s9440_s7 + $0x4c0] sm:$0xff] }
 0x2d8   : > { %v4961_v22 = vld [vmem:[%s9440_s7 + $0x460] sm:$0xff] }
 0x2de   : > { %v2310_v11 = vpop.f32.mrf.mxu2 }
 0x2df   : > { %v2311_v33 = vadd.f32 %v2310_v11, %v2251_v30  ;;  %v4954_v30 = vld [vmem:[%s9440_s7 + $0x428] sm:$0xff] }
 0x2e1   : > { %v2331_v39 = vadd.f32 %v2330_v19, %v2311_v33  ;;  %v4946_v33 = vld [vmem:[%s9440_s7 + $0x3e8] sm:$0xff] }
 0x2ec   : > { %v2411_v25 = vpop.f32.mrf.mxu1 }
 0x2f2   : > { %v2431_v54 = vpop.f32.mrf.mxu3 }
 0x2f3   : > { %v2432_v62 = vadd.f32 %v2431_v54, %v2411_v25  ;;  %v4969_v25 = vld [vmem:[%s9440_s7 + $0x4a0] sm:$0xff] }
 0x2f4   : > { %v5017_v54 = vld [vmem:[%s9440_s7 + $0x620] sm:$0xff] }
 0x2f5   : > { %v2451_v5 = vpop.f32.mrf.mxu0  ;;  %v2474_v32 = vadd.f32 %v2432_v62, %v2291_v28  ;;  %v5010_v62 = vld [vmem:[%s9440_s7 + $0x5e8] sm:$0xff] }
 0x2f6   : > { %v4958_v28 = vld [vmem:[%s9440_s7 + $0x448] sm:$0xff] }
 0x2fb   : > { %v2471_v52 = vpop.f32.mrf.mxu2 }
 0x2fc   : > { %v2472_v34 = vadd.f32 %v2471_v52, %v2451_v5  ;;  %v4965_v5 = vld [vmem:[%s9440_s7 + $0x480] sm:$0xff] }
 0x2fd   : > { %v5013_v52 = vld [vmem:[%s9440_s7 + $0x600] sm:$0xff] }
 0x2fe   : > { %v2475_v0 = vadd.f32 %v2472_v34, %v2331_v39  ;;  %v4937_v34 = vld [vmem:[%s9440_s7 + $0x3a0] sm:$0xff]  ;;  %v4986_v39 = vld [vmem:[%s9440_s7 + $0x528] sm:$0xff] }
 0x30a   : > { %v2574_v12 = vpop.f32.mrf.mxu1 }
 0x313   : > { %v2614_v35 = vpop.f32.mrf.mxu0 }
 0x314   : > { %v2554_v17 = vpop.f32.mrf.mxu3 }
 0x315   : > { %v2575_v29 = vadd.f32 %v2574_v12, %v2554_v17  ;;  %v4966_v12 = vld [vmem:[%s9440_s7 + $0x488] sm:$0xff] }
 0x316   : > { %v5014_v17 = vld [vmem:[%s9440_s7 + $0x608] sm:$0xff] }
 0x317   : > { %v2617_v40 = vadd.f32 %v2575_v29, %v2474_v32  ;;  %v5006_v29 = vld [vmem:[%s9440_s7 + $0x5c8] sm:$0xff] }
 0x318   : > { %v5002_v32 = vld [vmem:[%s9440_s7 + $0x5a8] sm:$0xff] }
 0x31e   : > { %v2594_v63 = vpop.f32.mrf.mxu2 }
 0x31f   : > { %v2615_v47 = vadd.f32 %v2614_v35, %v2594_v63  ;;  %v4949_v35 = vld [vmem:[%s9440_s7 + $0x400] sm:$0xff] }
 0x320   : > { %v4997_v63 = vld [vmem:[%s9440_s7 + $0x580] sm:$0xff] }
 0x321   : > { %v2618_v56 = vadd.f32 %v2615_v47, %v2475_v0  ;;  %v4979_v47 = vld [vmem:[%s9440_s7 + $0x4f0] sm:$0xff] }
 0x322   : > { %v4975_v0 = vld [vmem:[%s9440_s7 + $0x4d0] sm:$0xff] }
 0x32c   : > { %v2697_v36 = vpop.f32.mrf.mxu1 }
 0x332   : > { %v2717_v7 = vpop.f32.mrf.mxu3 }
 0x333   : > { %v2718_v41 = vadd.f32 %v2717_v7, %v2697_v36  ;;  %v4950_v36 = vld [vmem:[%s9440_s7 + $0x408] sm:$0xff] }
 0x334   : > { %v2737_v6 = vpop.f32.mrf.mxu0  ;;  %v4998_v7 = vld [vmem:[%s9440_s7 + $0x588] sm:$0xff] }
 0x335   : > { %v2760_v43 = vadd.f32 %v2718_v41, %v2617_v40  ;;  %v4994_v40 = vld [vmem:[%s9440_s7 + $0x568] sm:$0xff]  ;;  %v4941_v41 = vld [vmem:[%s9440_s7 + $0x3c0] sm:$0xff] }
 0x337   : > { %v2762_v48 = vmax.f32 %v2049_v2, %v2760_v43  ;;  %v4990_v2 = vld [vmem:[%s9440_s7 + $0x548] sm:$0xff]  ;;  %v4985_v43 = vld [vmem:[%s9440_s7 + $0x520] sm:$0xff] }
 0x339   : > { %v2770_v16 = vadd.f32 %v2766_v44, %v2762_v48  ;;  %v4983_v44 = vld [vmem:[%s9440_s7 + $0x510] sm:$0xff]  ;;  %v4934_v48 = vld [vmem:[%s9440_s7 + $0x388] sm:$0xff] }
 0x33a   : > { %v2757_v10 = vpop.f32.mrf.mxu2 }
 0x33b   : > { %v2772_v8 = vmax.f32 %v2770_v16, 0.0  ;;  %v2758_v53 = vadd.f32 %v2757_v10, %v2737_v6  ;;  %v4930_v16 = vld [vmem:[%s9440_s7 + $0x368] sm:$0xff]  ;;  %v5015_v6 = vld [vmem:[%s9440_s7 + $0x610] sm:$0xff] }
 0x33c   : > { %v4971_v10 = vld [vmem:[%s9440_s7 + $0x4b0] sm:$0xff] }
 0x33d   : > { %v2761_v4 = vadd.f32 %v2758_v53, %v2618_v56  ;;  %2794 = vmatpush.msra.mxu3 %v2772_v8  ;;  %2839 = vmatpush.msra.mxu2 %v2772_v8  ;;  %v4926_v56 = vld [vmem:[%s9440_s7 + $0x348] sm:$0xff]  ;;  %v4921_v8 = vld [vmem:[%s9440_s7 + $0x320] sm:$0xff]  ;;  %v5011_v53 = vld [vmem:[%s9440_s7 + $0x5f0] sm:$0xff] }
 0x33e   : > { %4916 = vmatmul.msk.f32.vlgmr.msra.gmra.mxu3 %vm2775_vm7, %v2774_v50  ;;  %4919 = vmatmul.msk.f32.vlgmr.msra.gmra.mxu2 %vm2775_vm7, %v4918_v58 }
 0x33f   : > { %v2763_v24 = vmax.f32 %v2050_v60, %v2761_v4  ;;  %3075 = vmatpush.msrb.mxu3 %v4981_v59  ;;  %3115 = vmatpush.msrb.mxu2 %v4982_v13  ;;  %v4922_v59 = vld [vmem:[%s9440_s7 + $0x328] sm:$0xff]  ;;  %v5007_v13 = vld [vmem:[%s9440_s7 + $0x5d0] sm:$0xff]  ;;  %v4980_v60 = vld [vmem:[%s9440_s7 + $0x4f8] sm:$0xff] }
 0x340   : > { %v4963_v4 = vld [vmem:[%s9440_s7 + $0x470] sm:$0xff] }
 0x341   : > { %v2771_v19 = vadd.f32 %v2767_v31, %v2763_v24  ;;  %3076 = vmatpush.msrb.mxu3 %v4977_v51  ;;  %3116 = vmatpush.msrb.mxu2 %v4978_v14  ;;  %v5020_v31 = vld [vmem:[%s9440_s7 + $0x638] sm:$0xff]  ;;  %v5003_v51 = vld [vmem:[%s9440_s7 + $0x5b0] sm:$0xff] }
 0x342   : > { %v4976_v14 = vld [vmem:[%s9440_s7 + $0x4d8] sm:$0xff]  ;;  %v4959_v24 = vld [vmem:[%s9440_s7 + $0x450] sm:$0xff] }
 0x343   : > { %v2773_v11 = vmax.f32 %v2771_v19, 0.0  ;;  %3077 = vmatpush.msrb.mxu3 %v4973_v15  ;;  %3117 = vmatpush.msrb.mxu2 %v4974_v20  ;;  %v5016_v15 = vld [vmem:[%s9440_s7 + $0x618] sm:$0xff]  ;;  %v4955_v19 = vld [vmem:[%s9440_s7 + $0x430] sm:$0xff] }
 0x344   : > { %v4972_v20 = vld [vmem:[%s9440_s7 + $0x4b8] sm:$0xff] }
 0x345   : > { %2814 = vmatpush.msra.mxu1 %v2773_v11  ;;  %2859 = vmatpush.msrb.mxu0 %v2773_v11  ;;  %v5012_v11 = vld [vmem:[%s9440_s7 + $0x5f8] sm:$0xff] }
 0x346   : > { %4917 = vmatmul.msk.f32.vlgmr.msra.gmra.mxu1 %vm2775_vm7, %v2774_v50  ;;  %4920 = vmatmul.msk.f32.vlgmr.msrb.gmra.mxu0 %vm2775_vm7, %v4918_v58  ;;  %v4984_v50 = vld [vmem:[%s9440_s7 + $0x518] sm:$0xff]  ;;  %v4967_v58 = vld [vmem:[%s9440_s7 + $0x490] sm:$0xff] }
 0x347   : > { %3078 = vmatpush.msrb.mxu3 %v4969_v25  ;;  %3102 = vmatpush.msrb.mxu1 %v5017_v54  ;;  %v4968_v25 = vld [vmem:[%s9440_s7 + $0x498] sm:$0xff]  ;;  %v4951_v54 = vld [vmem:[%s9440_s7 + $0x410] sm:$0xff] }
 0x348   : > { %3118 = vmatpush.msrb.mxu2 %v4970_v55  ;;  %3142 = vmatpush.msra.mxu0 %v5018_v61  ;;  %v5008_v55 = vld [vmem:[%s9440_s7 + $0x5d8] sm:$0xff] }
 0x349   : > { %3079 = vmatpush.msrb.mxu3 %v4965_v5  ;;  %3103 = vmatpush.msrb.mxu1 %v5013_v52  ;;  %v4964_v61 = vld [vmem:[%s9440_s7 + $0x478] sm:$0xff]  ;;  %v4947_v5 = vld [vmem:[%s9440_s7 + $0x3f0] sm:$0xff] }
 0x34a   : > { %3119 = vmatpush.msrb.mxu2 %v4966_v12  ;;  %3143 = vmatpush.msra.mxu0 %v5014_v17  ;;  %v5004_v52 = vld [vmem:[%s9440_s7 + $0x5b8] sm:$0xff]  ;;  %v4943_v17 = vld [vmem:[%s9440_s7 + $0x3d0] sm:$0xff] }
 0x34b   : > { %3080 = vmatpush.msrb.mxu3 %v4961_v22  ;;  %3104 = vmatpush.msrb.mxu1 %v5009_v3  ;;  %v4960_v12 = vld [vmem:[%s9440_s7 + $0x458] sm:$0xff] }
 0x34c   : > { %3120 = vmatpush.msrb.mxu2 %v4962_v18  ;;  %3144 = vmatpush.msra.mxu0 %v5010_v62  ;;  %v5000_v22 = vld [vmem:[%s9440_s7 + $0x598] sm:$0xff]  ;;  %v4939_v18 = vld [vmem:[%s9440_s7 + $0x3b0] sm:$0xff] }
 0x34d   : > { %3081 = vmatpush.msrb.mxu3 %v4957_v26  ;;  %3105 = vmatpush.msrb.mxu1 %v5005_v27  ;;  %v4956_v3 = vld [vmem:[%s9440_s7 + $0x438] sm:$0xff] }
 0x34e   : > { %3121 = vmatpush.msrb.mxu2 %v4958_v28  ;;  %3145 = vmatpush.msra.mxu0 %v5006_v29  ;;  %v4952_v62 = vld [vmem:[%s9440_s7 + $0x418] sm:$0xff] }
 0x34f   : > { %3082 = vmatpush.msrb.mxu3 %v4953_v1  ;;  %3106 = vmatpush.msrb.mxu1 %v5001_v21  ;;  %v4948_v26 = vld [vmem:[%s9440_s7 + $0x3f8] sm:$0xff]  ;;  %v4935_v1 = vld [vmem:[%s9440_s7 + $0x390] sm:$0xff] }
 0x350   : > { %3122 = vmatpush.msrb.mxu2 %v4954_v30  ;;  %3146 = vmatpush.msra.mxu0 %v5002_v32  ;;  %v4944_v27 = vld [vmem:[%s9440_s7 + $0x3d8] sm:$0xff]  ;;  %v4999_v21 = vld [vmem:[%s9440_s7 + $0x590] sm:$0xff] }
 0x351   : > { %3083 = vmatpush.msrb.mxu3 %v4949_v35  ;;  %3107 = vmatpush.msrb.mxu1 %v4997_v63  ;;  %v4940_v28 = vld [vmem:[%s9440_s7 + $0x3b8] sm:$0xff]  ;;  %v4931_v35 = vld [vmem:[%s9440_s7 + $0x370] sm:$0xff] }
 0x352   : > { %3123 = vmatpush.msrb.mxu2 %v4950_v36  ;;  %3147 = vmatpush.msra.mxu0 %v4998_v7  ;;  %v4936_v29 = vld [vmem:[%s9440_s7 + $0x398] sm:$0xff]  ;;  %v4995_v63 = vld [vmem:[%s9440_s7 + $0x570] sm:$0xff] }
 0x353   : > { %3084 = vmatpush.msrb.mxu3 %v4945_v37  ;;  %3108 = vmatpush.msrb.mxu1 %v4993_v38  ;;  %v4932_v30 = vld [vmem:[%s9440_s7 + $0x378] sm:$0xff]  ;;  %v4927_v37 = vld [vmem:[%s9440_s7 + $0x350] sm:$0xff] }
 0x354   : > { %3124 = vmatpush.msrb.mxu2 %v4946_v33  ;;  %3148 = vmatpush.msra.mxu0 %v4994_v40  ;;  %v4996_v32 = vld [vmem:[%s9440_s7 + $0x578] sm:$0xff]  ;;  %v4991_v38 = vld [vmem:[%s9440_s7 + $0x550] sm:$0xff] }
 0x355   : > { %3085 = vmatpush.msrb.mxu3 %v4941_v41  ;;  %3109 = vmatpush.msrb.mxu1 %v4989_v42  ;;  %v4928_v36 = vld [vmem:[%s9440_s7 + $0x358] sm:$0xff]  ;;  %v4923_v41 = vld [vmem:[%s9440_s7 + $0x330] sm:$0xff] }
 0x356   : > { %3125 = vmatpush.msrb.mxu2 %v4942_v23  ;;  %3149 = vmatpush.msra.mxu0 %v4990_v2  ;;  %v4992_v7 = vld [vmem:[%s9440_s7 + $0x558] sm:$0xff]  ;;  %v4987_v42 = vld [vmem:[%s9440_s7 + $0x530] sm:$0xff] }
 0x357   : > { %3086 = vmatpush.msrb.mxu3 %v4937_v34  ;;  %3110 = vmatpush.msrb.mxu1 %v4985_v43  ;;  %v4924_v33 = vld [vmem:[%s9440_s7 + $0x338] sm:$0xff] }
 0x358   : > { %3126 = vmatpush.msrb.mxu2 %v4938_v45  ;;  %3150 = vmatpush.msra.mxu0 %v4986_v39  ;;  %v4988_v40 = vld [vmem:[%s9440_s7 + $0x538] sm:$0xff]  ;;  %v2927_v39 = vld [vmem:[%s9440_s7 + $0x1e8] sm:$0xff] }
 0x359   : > { %3155 = vmatpush.msra.mxu1 %v4983_v44  ;;  %3087 = vmatpush.msrb.mxu3 %v4933_v46 }
 0x35a   : > { %3127 = vmatpush.msrb.mxu2 %v4934_v48  ;;  %3182 = vmatpush.msrb.mxu0 %v5019_v9  ;;  %v2962_v9 = vld [vmem:[%s9440_s7 + $0x300] sm:$0xff] }
 0x35b   : > { %3156 = vmatpush.msra.mxu1 %v4979_v47  ;;  %3088 = vmatpush.msrb.mxu3 %v4929_v49  ;;  %v2963_v47 = vld [vmem:[%s9440_s7 + $0x308] sm:$0xff]  ;;  %v2926_v49 = vld [vmem:[%s9440_s7 + $0x1e0] sm:$0xff] }
 0x35c   : > { %3128 = vmatpush.msrb.mxu2 %v4930_v16  ;;  %3183 = vmatpush.msrb.mxu0 %v5015_v6  ;;  %v2959_v16 = vld [vmem:[%s9440_s7 + $0x2e8] sm:$0xff]  ;;  %v2958_v6 = vld [vmem:[%s9440_s7 + $0x2e0] sm:$0xff] }
 0x35d   : > { %3157 = vmatpush.msra.mxu1 %v4975_v0  ;;  %3089 = vmatpush.msrb.mxu3 %v4925_v57  ;;  %v2923_v0 = vld [vmem:[%s9440_s7 + $0x1c8] sm:$0xff]  ;;  %v2922_v57 = vld [vmem:[%s9440_s7 + $0x1c0] sm:$0xff] }
 0x35e   : > { %3129 = vmatpush.msrb.mxu2 %v4926_v56  ;;  %3184 = vmatpush.msrb.mxu0 %v5011_v53  ;;  %v2955_v56 = vld [vmem:[%s9440_s7 + $0x2c8] sm:$0xff]  ;;  %v2954_v53 = vld [vmem:[%s9440_s7 + $0x2c0] sm:$0xff] }
 0x35f   : > { %3158 = vmatpush.msra.mxu1 %v4971_v10  ;;  %3090 = vmatpush.msrb.mxu3 %v4921_v8  ;;  %v2919_v10 = vld [vmem:[%s9440_s7 + $0x1a8] sm:$0xff]  ;;  %v2918_v8 = vld [vmem:[%s9440_s7 + $0x1a0] sm:$0xff] }
 0x360   : > { %3130 = vmatpush.msrb.mxu2 %v4922_v59  ;;  %3185 = vmatpush.msrb.mxu0 %v5007_v13  ;;  %v2914_v59 = vld [vmem:[%s9440_s7 + $0x180] sm:$0xff] }
 0x361   : > { %3195 = vmatpush.msra.mxu3 %v4984_v50  ;;  %3159 = vmatpush.msra.mxu1 %v4967_v58  ;;  %v2915_v50 = vld [vmem:[%s9440_s7 + $0x188] sm:$0xff]  ;;  %v2950_v13 = vld [vmem:[%s9440_s7 + $0x2a0] sm:$0xff] }
 0x362   : > { %3222 = vmatpush.msra.mxu2 %v5020_v31  ;;  %3186 = vmatpush.msrb.mxu0 %v5003_v51  ;;  %v2951_v58 = vld [vmem:[%s9440_s7 + $0x2a8] sm:$0xff]  ;;  %v2910_v31 = vld [vmem:[%s9440_s7 + $0x160] sm:$0xff] }
 0x363   : > { %3196 = vmatpush.msra.mxu3 %v4980_v60  ;;  %3160 = vmatpush.msra.mxu1 %v4963_v4  ;;  %v2911_v60 = vld [vmem:[%s9440_s7 + $0x168] sm:$0xff]  ;;  %v2946_v51 = vld [vmem:[%s9440_s7 + $0x280] sm:$0xff] }
 0x364   : > { %3223 = vmatpush.msra.mxu2 %v5016_v15  ;;  %3187 = vmatpush.msrb.mxu0 %v4999_v21  ;;  %v2947_v4 = vld [vmem:[%s9440_s7 + $0x288] sm:$0xff]  ;;  %v2906_v15 = vld [vmem:[%s9440_s7 + $0x140] sm:$0xff]  ;;  %v2921_v21 = vld [vmem:[%s9440_s7 + $0x1b8] sm:$0xff] }
 0x365   : > { %3197 = vmatpush.msra.mxu3 %v4976_v14  ;;  %3161 = vmatpush.msra.mxu1 %v4959_v24  ;;  %v2907_v14 = vld [vmem:[%s9440_s7 + $0x148] sm:$0xff] }
 0x366   : > { %3224 = vmatpush.msra.mxu2 %v5012_v11  ;;  %3188 = vmatpush.msrb.mxu0 %v4995_v63  ;;  %v2943_v24 = vld [vmem:[%s9440_s7 + $0x268] sm:$0xff]  ;;  %v2917_v63 = vld [vmem:[%s9440_s7 + $0x198] sm:$0xff] }
 0x367   : > { %3198 = vmatpush.msra.mxu3 %v4972_v20  ;;  %3162 = vmatpush.msra.mxu1 %v4955_v19  ;;  %v2942_v20 = vld [vmem:[%s9440_s7 + $0x260] sm:$0xff]  ;;  %v2903_v19 = vld [vmem:[%s9440_s7 + $0x128] sm:$0xff] }
 0x368   : > { %3225 = vmatpush.msra.mxu2 %v5008_v55  ;;  %3189 = vmatpush.msrb.mxu0 %v4991_v38  ;;  %v2939_v11 = vld [vmem:[%s9440_s7 + $0x248] sm:$0xff]  ;;  %v2913_v38 = vld [vmem:[%s9440_s7 + $0x178] sm:$0xff] }
 0x369   : > { %3199 = vmatpush.msra.mxu3 %v4968_v25  ;;  %3163 = vmatpush.msra.mxu1 %v4951_v54  ;;  %v2902_v25 = vld [vmem:[%s9440_s7 + $0x120] sm:$0xff]  ;;  %v2899_v55 = vld [vmem:[%s9440_s7 + $0x108] sm:$0xff] }
 0x36a   : > { %3226 = vmatpush.msra.mxu2 %v5004_v52  ;;  %3190 = vmatpush.msrb.mxu0 %v4987_v42  ;;  %v2938_v54 = vld [vmem:[%s9440_s7 + $0x240] sm:$0xff]  ;;  %v2909_v42 = vld [vmem:[%s9440_s7 + $0x158] sm:$0xff] }
 0x36b   : > { %3200 = vmatpush.msra.mxu3 %v4964_v61  ;;  %3164 = vmatpush.msra.mxu1 %v4947_v5  ;;  %v2935_v61 = vld [vmem:[%s9440_s7 + $0x228] sm:$0xff]  ;;  %v2898_v5 = vld [vmem:[%s9440_s7 + $0x100] sm:$0xff] }
 0x36c   : > { %3227 = vmatpush.msra.mxu2 %v5000_v22  ;;  %v2934_v52 = vld [vmem:[%s9440_s7 + $0x220] sm:$0xff] }
 0x36d   : > { %3201 = vmatpush.msra.mxu3 %v4960_v12  ;;  %3165 = vmatpush.msra.mxu1 %v4943_v17  ;;  %v2895_v12 = vld [vmem:[%s9440_s7 + $0xe8] sm:$0xff]  ;;  %v2894_v22 = vld [vmem:[%s9440_s7 + $0xe0] sm:$0xff] }
 0x36e   : > { %3228 = vmatpush.msra.mxu2 %v4996_v32  ;;  %v2931_v17 = vld [vmem:[%s9440_s7 + $0x208] sm:$0xff] }
 0x36f   : > { %3202 = vmatpush.msra.mxu3 %v4956_v3  ;;  %3166 = vmatpush.msra.mxu1 %v4939_v18  ;;  %v2929_v3 = vld [vmem:[%s9440_s7 + $0x1f8] sm:$0xff]  ;;  %v2930_v18 = vld [vmem:[%s9440_s7 + $0x200] sm:$0xff]  ;;  %v2883_v32 = vld [vmem:[%s9440_s7 + $0x88] sm:$0xff] }
 0x370   : > { %3229 = vmatpush.msra.mxu2 %v4992_v7  ;;  %v2879_v7 = vld [vmem:[%s9440_s7 + $0x68] sm:$0xff] }
 0x371   : > { %3203 = vmatpush.msra.mxu3 %v4952_v62  ;;  %3167 = vmatpush.msra.mxu1 %v4935_v1  ;;  %v2891_v62 = vld [vmem:[%s9440_s7 + $0xc8] sm:$0xff]  ;;  %v2924_v1 = vld [vmem:[%s9440_s7 + $0x1d0] sm:$0xff] }
 0x372   : > { %3230 = vmatpush.msra.mxu2 %v4988_v40  ;;  %v2875_v40 = vld [vmem:[%s9440_s7 + $0x48] sm:$0xff] }
 0x373   : > { %3204 = vmatpush.msra.mxu3 %v4948_v26  ;;  %3168 = vmatpush.msra.mxu1 %v4931_v35  ;;  %v2928_v26 = vld [vmem:[%s9440_s7 + $0x1f0] sm:$0xff] }
 0x374   : > { %v2920_v35 = vld [vmem:[%s9440_s7 + $0x1b0] sm:$0xff] }
 0x375   : > { %3205 = vmatpush.msra.mxu3 %v4944_v27  ;;  %3169 = vmatpush.msra.mxu1 %v4927_v37  ;;  %v2925_v27 = vld [vmem:[%s9440_s7 + $0x1d8] sm:$0xff]  ;;  %v2916_v37 = vld [vmem:[%s9440_s7 + $0x190] sm:$0xff] }
 0x377   : > { %3206 = vmatpush.msra.mxu3 %v4940_v28  ;;  %3170 = vmatpush.msra.mxu1 %v4923_v41  ;;  %v2890_v28 = vld [vmem:[%s9440_s7 + $0xc0] sm:$0xff]  ;;  %v2912_v41 = vld [vmem:[%s9440_s7 + $0x170] sm:$0xff] }
 0x379   : > { %3207 = vmatpush.msra.mxu3 %v4936_v29  ;;  %v2887_v29 = vld [vmem:[%s9440_s7 + $0xa8] sm:$0xff] }
 0x37b   : > { %3208 = vmatpush.msra.mxu3 %v4932_v30  ;;  %v2886_v30 = vld [vmem:[%s9440_s7 + $0xa0] sm:$0xff] }
 0x37d   : > { %3209 = vmatpush.msra.mxu3 %v4928_v36  ;;  %v2882_v36 = vld [vmem:[%s9440_s7 + $0x80] sm:$0xff] }
 0x37f   : > { %3210 = vmatpush.msra.mxu3 %v4924_v33  ;;  %v2878_v33 = vld [vmem:[%s9440_s7 + $0x60] sm:$0xff] }
 0x3c1   : > { %v2796_v23 = vpop.f32.mrf.mxu3  ;;  %v2841_v2 = vpop.f32.mrf.mxu2 }
 0x3c2   : > { %v8196_v34 = vmax.f32 %v2796_v23, %v2841_v2  ;;  %v2874_v23 = vld [vmem:[%s9440_s7 + $0x40] sm:$0xff]  ;;  %v2871_v2 = vld [vmem:[%s9440_s7 + $0x28] sm:$0xff] }
 0x3c3   : > { %v2816_v43 = vpop.f32.mrf.mxu1  ;;  %v2861_v44 = vpop.f32.mrf.mxu0 }
 0x3c4   : > { %v8198_v45 = vmax.f32 %v2816_v43, %v2861_v44  ;;  %v3069_v46 = vrot.slane %v8196_v34, 1  ;;  %v2908_v43 = vld [vmem:[%s9440_s7 + $0x150] sm:$0xff]  ;;  %v2905_v44 = vld [vmem:[%s9440_s7 + $0x138] sm:$0xff] }
 0x3c6   : > { %3091 = vmatmul.f32.vlgmr.msrb.gmra.mxu3 %v3069_v46  ;;  %3131 = vmatmul.f32.vlgmr.msrb.gmra.mxu2 %v3069_v46  ;;  %v3070_v48 = vrot.slane %v8198_v45, 1 }
 0x3c7   : > { %3277 = vmatpush.msrb.mxu2 %v2927_v39  ;;  %3304 = vmatpush.msrb.mxu3 %v2963_v47  ;;  %v2867_v39 = vld [vmem:[%s9440_s7 + $0x8] sm:$0xff]  ;;  %v2904_v47 = vld [vmem:[%s9440_s7 + $0x130] sm:$0xff] }
 0x3c8   : > { %5021 = vmatmul.msk.f32.vlgmr.msrb.gmra.mxu1 %vm3072_vm8, %v3070_v48  ;;  %5022 = vmatmul.msk.f32.vlgmr.msra.gmra.mxu0 %vm3072_vm8, %v3070_v48 }
 0x3c9   : > { %3237 = vmatpush.msra.mxu0 %v2926_v49  ;;  %3264 = vmatpush.msrb.mxu1 %v2962_v9  ;;  %v2965_v49 = vld [vmem:[%s9440_s7 + $0x318] sm:$0xff]  ;;  %v2866_v9 = vld [vmem:[%s9440_s7] sm:$0xff] }
 0x3ca   : > { %3278 = vmatpush.msrb.mxu2 %v2923_v0  ;;  %3305 = vmatpush.msrb.mxu3 %v2959_v16  ;;  %v2900_v0 = vld [vmem:[%s9440_s7 + $0x110] sm:$0xff]  ;;  %v2897_v16 = vld [vmem:[%s9440_s7 + $0xf8] sm:$0xff] }
 0x3cb   : > { %3238 = vmatpush.msra.mxu0 %v2922_v57  ;;  %3265 = vmatpush.msrb.mxu1 %v2958_v6  ;;  %v2964_v57 = vld [vmem:[%s9440_s7 + $0x310] sm:$0xff]  ;;  %v2961_v6 = vld [vmem:[%s9440_s7 + $0x2f8] sm:$0xff] }
 0x3cc   : > { %3279 = vmatpush.msrb.mxu2 %v2919_v10  ;;  %3306 = vmatpush.msrb.mxu3 %v2955_v56  ;;  %v2896_v10 = vld [vmem:[%s9440_s7 + $0xf0] sm:$0xff]  ;;  %v2893_v56 = vld [vmem:[%s9440_s7 + $0xd8] sm:$0xff] }
 0x3cd   : > { %3239 = vmatpush.msra.mxu0 %v2918_v8  ;;  %3266 = vmatpush.msrb.mxu1 %v2954_v53  ;;  %v2960_v8 = vld [vmem:[%s9440_s7 + $0x2f0] sm:$0xff]  ;;  %v2957_v53 = vld [vmem:[%s9440_s7 + $0x2d8] sm:$0xff] }
 0x3ce   : > { %3280 = vmatpush.msrb.mxu2 %v2915_v50  ;;  %3307 = vmatpush.msrb.mxu3 %v2951_v58  ;;  %v2892_v50 = vld [vmem:[%s9440_s7 + $0xd0] sm:$0xff]  ;;  %v2889_v58 = vld [vmem:[%s9440_s7 + $0xb8] sm:$0xff] }
 0x3cf   : > { %3211 = vmatmul.f32.vlgmr.msra.gmra.mxu3 %v3069_v46  ;;  %5024 = vmatmul.msk.f32.vlgmr.msra.gmra.mxu2 %vm3072_vm8, %v3070_v48 }
 0x3d0   : > { %3240 = vmatpush.msra.mxu0 %v2914_v59  ;;  %3267 = vmatpush.msrb.mxu1 %v2950_v13  ;;  %v2956_v59 = vld [vmem:[%s9440_s7 + $0x2d0] sm:$0xff]  ;;  %v2953_v13 = vld [vmem:[%s9440_s7 + $0x2b8] sm:$0xff] }
 0x3d1   : > { %3281 = vmatpush.msrb.mxu2 %v2911_v60  ;;  %3308 = vmatpush.msrb.mxu3 %v2947_v4  ;;  %v2888_v60 = vld [vmem:[%s9440_s7 + $0xb0] sm:$0xff]  ;;  %v2885_v4 = vld [vmem:[%s9440_s7 + $0x98] sm:$0xff] }
 0x3d2   : > { %3171 = vmatmul.f32.vlgmr.msra.gmra.mxu1 %v3069_v46  ;;  %5023 = vmatmul.msk.f32.vlgmr.msrb.gmra.mxu0 %vm3072_vm8, %v3070_v48  ;;  %v2870_v46 = vld [vmem:[%s9440_s7 + $0x20] sm:$0xff]  ;;  %v2901_v48 = vld [vmem:[%s9440_s7 + $0x118] sm:$0xff] }
 0x3d3   : > { %3241 = vmatpush.msra.mxu0 %v2910_v31  ;;  %3268 = vmatpush.msrb.mxu1 %v2946_v51  ;;  %v2952_v31 = vld [vmem:[%s9440_s7 + $0x2b0] sm:$0xff]  ;;  %v2949_v51 = vld [vmem:[%s9440_s7 + $0x298] sm:$0xff] }
 0x3d4   : > { %3282 = vmatpush.msrb.mxu2 %v2907_v14  ;;  %3309 = vmatpush.msrb.mxu3 %v2943_v24  ;;  %v2884_v14 = vld [vmem:[%s9440_s7 + $0x90] sm:$0xff]  ;;  %v2881_v24 = vld [vmem:[%s9440_s7 + $0x78] sm:$0xff] }
 0x3d5   : > { %3242 = vmatpush.msra.mxu0 %v2906_v15  ;;  %3269 = vmatpush.msrb.mxu1 %v2942_v20  ;;  %v2948_v15 = vld [vmem:[%s9440_s7 + $0x290] sm:$0xff]  ;;  %v2945_v20 = vld [vmem:[%s9440_s7 + $0x278] sm:$0xff] }
 0x3d6   : > { %3283 = vmatpush.msrb.mxu2 %v2903_v19  ;;  %3310 = vmatpush.msrb.mxu3 %v2939_v11  ;;  %v2880_v19 = vld [vmem:[%s9440_s7 + $0x70] sm:$0xff]  ;;  %v2877_v11 = vld [vmem:[%s9440_s7 + $0x58] sm:$0xff] }
 0x3d7   : > { %3243 = vmatpush.msra.mxu0 %v2902_v25  ;;  %3270 = vmatpush.msrb.mxu1 %v2938_v54  ;;  %v2944_v25 = vld [vmem:[%s9440_s7 + $0x270] sm:$0xff]  ;;  %v2941_v54 = vld [vmem:[%s9440_s7 + $0x258] sm:$0xff] }
 0x3d8   : > { %3284 = vmatpush.msrb.mxu2 %v2899_v55  ;;  %3311 = vmatpush.msrb.mxu3 %v2935_v61  ;;  %v2876_v55 = vld [vmem:[%s9440_s7 + $0x50] sm:$0xff]  ;;  %v2873_v61 = vld [vmem:[%s9440_s7 + $0x38] sm:$0xff] }
 0x3d9   : > { %3244 = vmatpush.msra.mxu0 %v2898_v5  ;;  %3271 = vmatpush.msrb.mxu1 %v2934_v52  ;;  %v2940_v5 = vld [vmem:[%s9440_s7 + $0x250] sm:$0xff]  ;;  %v2937_v52 = vld [vmem:[%s9440_s7 + $0x238] sm:$0xff] }
 0x3da   : > { %3285 = vmatpush.msrb.mxu2 %v2895_v12  ;;  %3312 = vmatpush.msrb.mxu3 %v2931_v17  ;;  %v2872_v12 = vld [vmem:[%s9440_s7 + $0x30] sm:$0xff]  ;;  %v2869_v17 = vld [vmem:[%s9440_s7 + $0x18] sm:$0xff] }
 0x3db   : > { %5026 = vmatmul.msk.f32.vlgmr.msrb.gmra.mxu3 %vm3072_vm8, %v8198_v45  ;;  %3245 = vmatpush.msra.mxu0 %v2894_v22  ;;  %v2936_v22 = vld [vmem:[%s9440_s7 + $0x230] sm:$0xff] }
 0x3dc   : > { %3357 = vmatpush.msra.mxu3 %v2929_v3  ;;  %3272 = vmatpush.msrb.mxu1 %v2930_v18  ;;  %v2933_v3 = vld [vmem:[%s9440_s7 + $0x218] sm:$0xff]  ;;  %v5090_v18 = vld [vmem:[%s9440_s7 + $0x828] sm:$0xff] }
 0x3dd   : > { %3286 = vmatpush.msrb.mxu2 %v2891_v62  ;;  %5025 = vmatmul.msk.f32.vlgmr.msrb.gmra.mxu1 %vm3072_vm8, %v8198_v45  ;;  %v5126_v62 = vld [vmem:[%s9440_s7 + $0x948] sm:$0xff] }
 0x3de   : > { %3317 = vmatpush.msra.mxu1 %v2928_v26  ;;  %3358 = vmatpush.msra.mxu3 %v2925_v27  ;;  %v2868_v26 = vld [vmem:[%s9440_s7 + $0x10] sm:$0xff] }
 0x3df   : > { %3246 = vmatpush.msra.mxu0 %v2890_v28  ;;  %3287 = vmatpush.msrb.mxu2 %v2887_v29  ;;  %v2932_v27 = vld [vmem:[%s9440_s7 + $0x210] sm:$0xff]  ;;  %v5089_v28 = vld [vmem:[%s9440_s7 + $0x820] sm:$0xff] }
 0x3e0   : > { %3318 = vmatpush.msra.mxu1 %v2924_v1  ;;  %3359 = vmatpush.msra.mxu3 %v2921_v21  ;;  %v5125_v29 = vld [vmem:[%s9440_s7 + $0x940] sm:$0xff]  ;;  %v5086_v1 = vld [vmem:[%s9440_s7 + $0x808] sm:$0xff] }
 0x3e1   : > { %3247 = vmatpush.msra.mxu0 %v2886_v30  ;;  %3288 = vmatpush.msrb.mxu2 %v2883_v32  ;;  %v5122_v21 = vld [vmem:[%s9440_s7 + $0x928] sm:$0xff]  ;;  %v5085_v30 = vld [vmem:[%s9440_s7 + $0x800] sm:$0xff] }
 0x3e2   : > { %3319 = vmatpush.msra.mxu1 %v2920_v35  ;;  %3360 = vmatpush.msra.mxu3 %v2917_v63  ;;  %v5121_v32 = vld [vmem:[%s9440_s7 + $0x920] sm:$0xff]  ;;  %v5082_v35 = vld [vmem:[%s9440_s7 + $0x7e8] sm:$0xff] }
 0x3e3   : > { %3248 = vmatpush.msra.mxu0 %v2882_v36  ;;  %3289 = vmatpush.msrb.mxu2 %v2879_v7  ;;  %v5118_v63 = vld [vmem:[%s9440_s7 + $0x908] sm:$0xff]  ;;  %v5081_v36 = vld [vmem:[%s9440_s7 + $0x7e0] sm:$0xff] }
 0x3e4   : > { %3320 = vmatpush.msra.mxu1 %v2916_v37  ;;  %3361 = vmatpush.msra.mxu3 %v2913_v38  ;;  %v5117_v7 = vld [vmem:[%s9440_s7 + $0x900] sm:$0xff]  ;;  %v5078_v37 = vld [vmem:[%s9440_s7 + $0x7c8] sm:$0xff] }
 0x3e5   : > { %3249 = vmatpush.msra.mxu0 %v2878_v33  ;;  %3290 = vmatpush.msrb.mxu2 %v2875_v40  ;;  %v5114_v38 = vld [vmem:[%s9440_s7 + $0x8e8] sm:$0xff]  ;;  %v5077_v33 = vld [vmem:[%s9440_s7 + $0x7c0] sm:$0xff] }
 0x3e6   : > { %3321 = vmatpush.msra.mxu1 %v2912_v41  ;;  %3362 = vmatpush.msra.mxu3 %v2909_v42  ;;  %v5113_v40 = vld [vmem:[%s9440_s7 + $0x8e0] sm:$0xff]  ;;  %v5074_v41 = vld [vmem:[%s9440_s7 + $0x7a8] sm:$0xff] }
 0x3e7   : > { %3250 = vmatpush.msra.mxu0 %v2874_v23  ;;  %3291 = vmatpush.msrb.mxu2 %v2871_v2  ;;  %v5110_v42 = vld [vmem:[%s9440_s7 + $0x8c8] sm:$0xff]  ;;  %v5073_v23 = vld [vmem:[%s9440_s7 + $0x7a0] sm:$0xff] }
 0x3e8   : > { %3322 = vmatpush.msra.mxu1 %v2908_v43  ;;  %3363 = vmatpush.msra.mxu3 %v2905_v44  ;;  %v5109_v2 = vld [vmem:[%s9440_s7 + $0x8c0] sm:$0xff]  ;;  %v5070_v43 = vld [vmem:[%s9440_s7 + $0x788] sm:$0xff] }
 0x3e9   : > { %3251 = vmatpush.msra.mxu0 %v2870_v46  ;;  %3292 = vmatpush.msrb.mxu2 %v2867_v39  ;;  %v5106_v44 = vld [vmem:[%s9440_s7 + $0x8a8] sm:$0xff]  ;;  %v5069_v46 = vld [vmem:[%s9440_s7 + $0x780] sm:$0xff] }
 0x3ea   : > { %3293 = vmatmul.f32.vlgmr.msrb.gmra.mxu2 %v8196_v34  ;;  %3323 = vmatpush.msra.mxu1 %v2904_v47  ;;  %v5105_v39 = vld [vmem:[%s9440_s7 + $0x8a0] sm:$0xff]  ;;  %v5066_v47 = vld [vmem:[%s9440_s7 + $0x768] sm:$0xff] }
 0x3eb   : > { %3364 = vmatpush.msra.mxu3 %v2901_v48  ;;  %3384 = vmatpush.msra.mxu2 %v2965_v49  ;;  %v5102_v48 = vld [vmem:[%s9440_s7 + $0x888] sm:$0xff]  ;;  %v5065_v49 = vld [vmem:[%s9440_s7 + $0x760] sm:$0xff] }
 0x3ec   : > { %3252 = vmatpush.msra.mxu0 %v2866_v9  ;;  %3324 = vmatpush.msra.mxu1 %v2900_v0  ;;  %v5101_v9 = vld [vmem:[%s9440_s7 + $0x880] sm:$0xff]  ;;  %v5062_v0 = vld [vmem:[%s9440_s7 + $0x748] sm:$0xff] }
 0x3ed   : > { %3253 = vmatmul.f32.vlgmr.msra.gmra.mxu0 %v8196_v34  ;;  %3365 = vmatpush.msra.mxu3 %v2897_v16  ;;  %v5098_v16 = vld [vmem:[%s9440_s7 + $0x868] sm:$0xff] }
 0x3ee   : > { %3344 = vmatpush.msrb.mxu0 %v2964_v57  ;;  %3385 = vmatpush.msra.mxu2 %v2961_v6  ;;  %v5061_v57 = vld [vmem:[%s9440_s7 + $0x740] sm:$0xff] }
 0x3ef   : > { %3325 = vmatpush.msra.mxu1 %v2896_v10  ;;  %3366 = vmatpush.msra.mxu3 %v2893_v56  ;;  %v5097_v6 = vld [vmem:[%s9440_s7 + $0x860] sm:$0xff]  ;;  %v5058_v10 = vld [vmem:[%s9440_s7 + $0x728] sm:$0xff] }
 0x3f0   : > { %3345 = vmatpush.msrb.mxu0 %v2960_v8  ;;  %3386 = vmatpush.msra.mxu2 %v2957_v53  ;;  %v5094_v56 = vld [vmem:[%s9440_s7 + $0x848] sm:$0xff]  ;;  %v5057_v8 = vld [vmem:[%s9440_s7 + $0x720] sm:$0xff]  ;;  %v8624_v53 = vrot.slane %v8198_v45, 2 }
 0x3f1   : > { %3326 = vmatpush.msra.mxu1 %v2892_v50  ;;  %3367 = vmatpush.msra.mxu3 %v2889_v58  ;;  %v5092_v50 = vld [vmem:[%s9440_s7 + $0x838] sm:$0xff]  ;;  %v5093_v58 = vld [vmem:[%s9440_s7 + $0x840] sm:$0xff] }
 0x3f2   : > { %3346 = vmatpush.msrb.mxu0 %v2956_v59  ;;  %3387 = vmatpush.msra.mxu2 %v2953_v13  ;;  %v5054_v59 = vld [vmem:[%s9440_s7 + $0x708] sm:$0xff]  ;;  %v5091_v13 = vld [vmem:[%s9440_s7 + $0x830] sm:$0xff] }
 0x3f3   : > { %3327 = vmatpush.msra.mxu1 %v2888_v60  ;;  %3368 = vmatpush.msra.mxu3 %v2885_v4  ;;  %v5088_v60 = vld [vmem:[%s9440_s7 + $0x818] sm:$0xff]  ;;  %v5053_v4 = vld [vmem:[%s9440_s7 + $0x700] sm:$0xff] }
 0x3f4   : > { %3347 = vmatpush.msrb.mxu0 %v2952_v31  ;;  %3388 = vmatpush.msra.mxu2 %v2949_v51  ;;  %v5050_v31 = vld [vmem:[%s9440_s7 + $0x6e8] sm:$0xff]  ;;  %v5087_v51 = vld [vmem:[%s9440_s7 + $0x810] sm:$0xff] }
 0x3f5   : > { %3328 = vmatpush.msra.mxu1 %v2884_v14  ;;  %3369 = vmatpush.msra.mxu3 %v2881_v24  ;;  %v5084_v14 = vld [vmem:[%s9440_s7 + $0x7f8] sm:$0xff]  ;;  %v5049_v24 = vld [vmem:[%s9440_s7 + $0x6e0] sm:$0xff] }
 0x3f6   : > { %3348 = vmatpush.msrb.mxu0 %v2948_v15  ;;  %3389 = vmatpush.msra.mxu2 %v2945_v20  ;;  %v5046_v15 = vld [vmem:[%s9440_s7 + $0x6c8] sm:$0xff]  ;;  %v5083_v20 = vld [vmem:[%s9440_s7 + $0x7f0] sm:$0xff] }
 0x3f7   : > { %3329 = vmatpush.msra.mxu1 %v2880_v19  ;;  %3370 = vmatpush.msra.mxu3 %v2877_v11  ;;  %v5080_v19 = vld [vmem:[%s9440_s7 + $0x7d8] sm:$0xff]  ;;  %v5045_v11 = vld [vmem:[%s9440_s7 + $0x6c0] sm:$0xff] }
 0x3f8   : > { %3349 = vmatpush.msrb.mxu0 %v2944_v25  ;;  %3390 = vmatpush.msra.mxu2 %v2941_v54  ;;  %v5042_v25 = vld [vmem:[%s9440_s7 + $0x6a8] sm:$0xff]  ;;  %v5079_v54 = vld [vmem:[%s9440_s7 + $0x7d0] sm:$0xff] }
 0x3f9   : > { %3330 = vmatpush.msra.mxu1 %v2876_v55  ;;  %3371 = vmatpush.msra.mxu3 %v2873_v61  ;;  %v5076_v55 = vld [vmem:[%s9440_s7 + $0x7b8] sm:$0xff]  ;;  %v5041_v61 = vld [vmem:[%s9440_s7 + $0x6a0] sm:$0xff] }
 0x3fa   : > { %3350 = vmatpush.msrb.mxu0 %v2940_v5  ;;  %3391 = vmatpush.msra.mxu2 %v2937_v52  ;;  %v5038_v5 = vld [vmem:[%s9440_s7 + $0x688] sm:$0xff]  ;;  %v5075_v52 = vld [vmem:[%s9440_s7 + $0x7b0] sm:$0xff] }
 0x3fb   : > { %3331 = vmatpush.msra.mxu1 %v2872_v12  ;;  %3372 = vmatpush.msra.mxu3 %v2869_v17  ;;  %v5072_v12 = vld [vmem:[%s9440_s7 + $0x798] sm:$0xff]  ;;  %v5037_v17 = vld [vmem:[%s9440_s7 + $0x680] sm:$0xff] }
 0x3fc   : > { %3351 = vmatpush.msrb.mxu0 %v2936_v22  ;;  %3392 = vmatpush.msra.mxu2 %v2933_v3  ;;  %v5034_v22 = vld [vmem:[%s9440_s7 + $0x668] sm:$0xff]  ;;  %v5071_v3 = vld [vmem:[%s9440_s7 + $0x790] sm:$0xff] }
 0x3fd   : > { %3373 = vmatmul.f32.vlgmr.msra.gmra.mxu3 %v8196_v34  ;;  %5028 = vmatmul.msk.f32.vlgmr.msra.gmra.mxu2 %vm3072_vm8, %v8198_v45 }
 0x3fe   : > { %3543 = vmatpush.msrb.mxu2 %v5090_v18  ;;  %3570 = vmatpush.msrb.mxu3 %v5126_v62  ;;  %v5068_v18 = vld [vmem:[%s9440_s7 + $0x778] sm:$0xff]  ;;  %v5033_v62 = vld [vmem:[%s9440_s7 + $0x660] sm:$0xff] }
 0x3ff   : > { %3332 = vmatpush.msra.mxu1 %v2868_v26  ;;  %3352 = vmatpush.msrb.mxu0 %v2932_v27  ;;  %v5030_v26 = vld [vmem:[%s9440_s7 + $0x648] sm:$0xff]  ;;  %v5067_v27 = vld [vmem:[%s9440_s7 + $0x770] sm:$0xff] }
 0x400   : > { %3333 = vmatmul.f32.vlgmr.msra.gmra.mxu1 %v8196_v34  ;;  %5027 = vmatmul.msk.f32.vlgmr.msrb.gmra.mxu0 %vm3072_vm8, %v8198_v45 }
 0x401   : > { %3503 = vmatpush.msra.mxu0 %v5089_v28  ;;  %3530 = vmatpush.msrb.mxu1 %v5125_v29  ;;  %v8715_v28 = vrot.slane %v8196_v34, 2  ;;  %v5064_v29 = vld [vmem:[%s9440_s7 + $0x758] sm:$0xff] }
 0x402   : > { %3544 = vmatpush.msrb.mxu2 %v5086_v1  ;;  %3571 = vmatpush.msrb.mxu3 %v5122_v21  ;;  %v5128_v1 = vld [vmem:[%s9440_s7 + $0x958] sm:$0xff]  ;;  %v5029_v21 = vld [vmem:[%s9440_s7 + $0x640] sm:$0xff] }
 0x403   : > { %3504 = vmatpush.msra.mxu0 %v5085_v30  ;;  %3531 = vmatpush.msrb.mxu1 %v5121_v32  ;;  %v5063_v30 = vld [vmem:[%s9440_s7 + $0x750] sm:$0xff]  ;;  %v5060_v32 = vld [vmem:[%s9440_s7 + $0x738] sm:$0xff] }
 0x404   : > { %3545 = vmatpush.msrb.mxu2 %v5082_v35  ;;  %3572 = vmatpush.msrb.mxu3 %v5118_v63  ;;  %v5127_v35 = vld [vmem:[%s9440_s7 + $0x950] sm:$0xff]  ;;  %v5124_v63 = vld [vmem:[%s9440_s7 + $0x938] sm:$0xff] }
 0x405   : > { %3505 = vmatpush.msra.mxu0 %v5081_v36  ;;  %3532 = vmatpush.msrb.mxu1 %v5117_v7  ;;  %v5059_v36 = vld [vmem:[%s9440_s7 + $0x730] sm:$0xff]  ;;  %v5056_v7 = vld [vmem:[%s9440_s7 + $0x718] sm:$0xff] }
 0x406   : > { %3546 = vmatpush.msrb.mxu2 %v5078_v37  ;;  %3573 = vmatpush.msrb.mxu3 %v5114_v38  ;;  %v5123_v37 = vld [vmem:[%s9440_s7 + $0x930] sm:$0xff]  ;;  %v5120_v38 = vld [vmem:[%s9440_s7 + $0x918] sm:$0xff] }
 0x407   : > { %3506 = vmatpush.msra.mxu0 %v5077_v33  ;;  %3533 = vmatpush.msrb.mxu1 %v5113_v40  ;;  %v5055_v33 = vld [vmem:[%s9440_s7 + $0x710] sm:$0xff]  ;;  %v5052_v40 = vld [vmem:[%s9440_s7 + $0x6f8] sm:$0xff] }
 0x408   : > { %3547 = vmatpush.msrb.mxu2 %v5074_v41  ;;  %3574 = vmatpush.msrb.mxu3 %v5110_v42  ;;  %v5119_v41 = vld [vmem:[%s9440_s7 + $0x910] sm:$0xff]  ;;  %v5116_v42 = vld [vmem:[%s9440_s7 + $0x8f8] sm:$0xff] }
 0x409   : > { %3507 = vmatpush.msra.mxu0 %v5073_v23  ;;  %3534 = vmatpush.msrb.mxu1 %v5109_v2  ;;  %v5051_v23 = vld [vmem:[%s9440_s7 + $0x6f0] sm:$0xff]  ;;  %v5048_v2 = vld [vmem:[%s9440_s7 + $0x6d8] sm:$0xff] }
 0x40a   : > { %3548 = vmatpush.msrb.mxu2 %v5070_v43  ;;  %3575 = vmatpush.msrb.mxu3 %v5106_v44  ;;  %v5115_v43 = vld [vmem:[%s9440_s7 + $0x8f0] sm:$0xff]  ;;  %v5112_v44 = vld [vmem:[%s9440_s7 + $0x8d8] sm:$0xff] }
 0x40b   : > { %3508 = vmatpush.msra.mxu0 %v5069_v46  ;;  %3535 = vmatpush.msrb.mxu1 %v5105_v39  ;;  %v5047_v46 = vld [vmem:[%s9440_s7 + $0x6d0] sm:$0xff]  ;;  %v5044_v39 = vld [vmem:[%s9440_s7 + $0x6b8] sm:$0xff] }
 0x40c   : > { %3549 = vmatpush.msrb.mxu2 %v5066_v47  ;;  %3576 = vmatpush.msrb.mxu3 %v5102_v48  ;;  %v5111_v47 = vld [vmem:[%s9440_s7 + $0x8d0] sm:$0xff]  ;;  %v5108_v48 = vld [vmem:[%s9440_s7 + $0x8b8] sm:$0xff] }
 0x40d   : > { %3509 = vmatpush.msra.mxu0 %v5065_v49  ;;  %3536 = vmatpush.msrb.mxu1 %v5101_v9  ;;  %v5043_v49 = vld [vmem:[%s9440_s7 + $0x6b0] sm:$0xff]  ;;  %v5040_v9 = vld [vmem:[%s9440_s7 + $0x698] sm:$0xff] }
 0x40e   : > { %3550 = vmatpush.msrb.mxu2 %v5062_v0  ;;  %3577 = vmatpush.msrb.mxu3 %v5098_v16  ;;  %v5107_v0 = vld [vmem:[%s9440_s7 + $0x8b0] sm:$0xff]  ;;  %v5104_v16 = vld [vmem:[%s9440_s7 + $0x898] sm:$0xff] }
 0x40f   : > { %3510 = vmatpush.msra.mxu0 %v5061_v57  ;;  %3537 = vmatpush.msrb.mxu1 %v5097_v6  ;;  %v5039_v57 = vld [vmem:[%s9440_s7 + $0x690] sm:$0xff]  ;;  %v5036_v6 = vld [vmem:[%s9440_s7 + $0x678] sm:$0xff] }
 0x410   : > { %3551 = vmatpush.msrb.mxu2 %v5058_v10  ;;  %3578 = vmatpush.msrb.mxu3 %v5094_v56  ;;  %v5103_v10 = vld [vmem:[%s9440_s7 + $0x890] sm:$0xff]  ;;  %v5100_v56 = vld [vmem:[%s9440_s7 + $0x878] sm:$0xff] }
 0x411   : > { %5130 = vmatmul.msk.f32.vlgmr.msrb.gmra.mxu3 %vm3072_vm8, %v8624_v53  ;;  %3511 = vmatpush.msra.mxu0 %v5057_v8  ;;  %v5035_v8 = vld [vmem:[%s9440_s7 + $0x670] sm:$0xff] }
 0x412   : > { %3623 = vmatpush.msra.mxu3 %v5092_v50  ;;  %3538 = vmatpush.msrb.mxu1 %v5093_v58  ;;  %v5032_v50 = vld [vmem:[%s9440_s7 + $0x658] sm:$0xff]  ;;  %v5099_v58 = vld [vmem:[%s9440_s7 + $0x870] sm:$0xff] }
 0x413   : > { %3552 = vmatpush.msrb.mxu2 %v5054_v59  ;;  %5129 = vmatmul.msk.f32.vlgmr.msrb.gmra.mxu1 %vm3072_vm8, %v8624_v53  ;;  %v5096_v59 = vld [vmem:[%s9440_s7 + $0x858] sm:$0xff] }
 0x414   : > { %3583 = vmatpush.msra.mxu1 %v5091_v13  ;;  %3624 = vmatpush.msra.mxu3 %v5088_v60  ;;  %v5194_v13 = vld [vmem:[%s9440_s7 + $0xb48] sm:$0xff] }
 0x415   : > { %3512 = vmatpush.msra.mxu0 %v5053_v4  ;;  %3553 = vmatpush.msrb.mxu2 %v5050_v31  ;;  %v5230_v60 = vld [vmem:[%s9440_s7 + $0xc68] sm:$0xff]  ;;  %v5031_v4 = vld [vmem:[%s9440_s7 + $0x650] sm:$0xff] }
 0x416   : > { %3584 = vmatpush.msra.mxu1 %v5087_v51  ;;  %3625 = vmatpush.msra.mxu3 %v5084_v14  ;;  %v5095_v31 = vld [vmem:[%s9440_s7 + $0x850] sm:$0xff]  ;;  %v5193_v51 = vld [vmem:[%s9440_s7 + $0xb40] sm:$0xff] }
 0x417   : > { %3513 = vmatpush.msra.mxu0 %v5049_v24  ;;  %3554 = vmatpush.msrb.mxu2 %v5046_v15  ;;  %v5229_v14 = vld [vmem:[%s9440_s7 + $0xc60] sm:$0xff]  ;;  %v5190_v24 = vld [vmem:[%s9440_s7 + $0xb28] sm:$0xff] }
 0x418   : > { %3585 = vmatpush.msra.mxu1 %v5083_v20  ;;  %3626 = vmatpush.msra.mxu3 %v5080_v19  ;;  %v5226_v15 = vld [vmem:[%s9440_s7 + $0xc48] sm:$0xff]  ;;  %v5189_v20 = vld [vmem:[%s9440_s7 + $0xb20] sm:$0xff] }
 0x419   : > { %3514 = vmatpush.msra.mxu0 %v5045_v11  ;;  %3555 = vmatpush.msrb.mxu2 %v5042_v25  ;;  %v5225_v19 = vld [vmem:[%s9440_s7 + $0xc40] sm:$0xff]  ;;  %v5186_v11 = vld [vmem:[%s9440_s7 + $0xb08] sm:$0xff] }
 0x41a   : > { %3586 = vmatpush.msra.mxu1 %v5079_v54  ;;  %3627 = vmatpush.msra.mxu3 %v5076_v55  ;;  %v5222_v25 = vld [vmem:[%s9440_s7 + $0xc28] sm:$0xff]  ;;  %v5221_v54 = vld [vmem:[%s9440_s7 + $0xc20] sm:$0xff] }
 0x41b   : > { %3515 = vmatpush.msra.mxu0 %v5041_v61  ;;  %3556 = vmatpush.msrb.mxu2 %v5038_v5  ;;  %v5182_v55 = vld [vmem:[%s9440_s7 + $0xae8] sm:$0xff]  ;;  %v5181_v5 = vld [vmem:[%s9440_s7 + $0xae0] sm:$0xff] }
 0x41c   : > { %3587 = vmatpush.msra.mxu1 %v5075_v52  ;;  %3628 = vmatpush.msra.mxu3 %v5072_v12  ;;  %v5218_v61 = vld [vmem:[%s9440_s7 + $0xc08] sm:$0xff]  ;;  %v5217_v52 = vld [vmem:[%s9440_s7 + $0xc00] sm:$0xff] }
 0x41d   : > { %3516 = vmatpush.msra.mxu0 %v5037_v17  ;;  %3557 = vmatpush.msrb.mxu2 %v5034_v22  ;;  %v5178_v12 = vld [vmem:[%s9440_s7 + $0xac8] sm:$0xff]  ;;  %v5177_v22 = vld [vmem:[%s9440_s7 + $0xac0] sm:$0xff] }
 0x41e   : > { %3588 = vmatpush.msra.mxu1 %v5071_v3  ;;  %3629 = vmatpush.msra.mxu3 %v5068_v18  ;;  %v5214_v17 = vld [vmem:[%s9440_s7 + $0xbe8] sm:$0xff]  ;;  %v5213_v3 = vld [vmem:[%s9440_s7 + $0xbe0] sm:$0xff] }
 0x41f   : > { %3517 = vmatpush.msra.mxu0 %v5033_v62  ;;  %3558 = vmatpush.msrb.mxu2 %v5030_v26  ;;  %v5174_v18 = vld [vmem:[%s9440_s7 + $0xaa8] sm:$0xff]  ;;  %v5173_v26 = vld [vmem:[%s9440_s7 + $0xaa0] sm:$0xff] }
 0x420   : > { %3559 = vmatmul.f32.vlgmr.msrb.gmra.mxu2 %v8715_v28  ;;  %3589 = vmatpush.msra.mxu1 %v5067_v27  ;;  %v5210_v62 = vld [vmem:[%s9440_s7 + $0xbc8] sm:$0xff]  ;;  %v5209_v27 = vld [vmem:[%s9440_s7 + $0xbc0] sm:$0xff] }
 0x421   : > { %3630 = vmatpush.msra.mxu3 %v5064_v29  ;;  %3650 = vmatpush.msra.mxu2 %v5128_v1  ;;  %v5206_v29 = vld [vmem:[%s9440_s7 + $0xba8] sm:$0xff]  ;;  %v5169_v1 = vld [vmem:[%s9440_s7 + $0xa80] sm:$0xff] }
 0x422   : > { %3518 = vmatpush.msra.mxu0 %v5029_v21  ;;  %3590 = vmatpush.msra.mxu1 %v5063_v30  ;;  %v5205_v21 = vld [vmem:[%s9440_s7 + $0xba0] sm:$0xff]  ;;  %v5166_v30 = vld [vmem:[%s9440_s7 + $0xa68] sm:$0xff] }
 0x423   : > { %3519 = vmatmul.f32.vlgmr.msra.gmra.mxu0 %v8715_v28  ;;  %3631 = vmatpush.msra.mxu3 %v5060_v32  ;;  %v5202_v32 = vld [vmem:[%s9440_s7 + $0xb88] sm:$0xff] }
 0x424   : > { %3610 = vmatpush.msrb.mxu0 %v5127_v35  ;;  %3651 = vmatpush.msra.mxu2 %v5124_v63  ;;  %v5165_v35 = vld [vmem:[%s9440_s7 + $0xa60] sm:$0xff] }
 0x425   : > { %3591 = vmatpush.msra.mxu1 %v5059_v36  ;;  %3632 = vmatpush.msra.mxu3 %v5056_v7  ;;  %v5201_v63 = vld [vmem:[%s9440_s7 + $0xb80] sm:$0xff]  ;;  %v5162_v36 = vld [vmem:[%s9440_s7 + $0xa48] sm:$0xff] }
 0x426   : > { %3611 = vmatpush.msrb.mxu0 %v5123_v37  ;;  %3652 = vmatpush.msra.mxu2 %v5120_v38  ;;  %v5198_v7 = vld [vmem:[%s9440_s7 + $0xb68] sm:$0xff]  ;;  %v5161_v37 = vld [vmem:[%s9440_s7 + $0xa40] sm:$0xff]  ;;  %v8942_v38 = vrot.slane %v8198_v45, 3  ;;  %v5195_v45 = vld [vmem:[%s9440_s7 + $0xb50] sm:$0xff] }
 0x427   : > { %3592 = vmatpush.msra.mxu1 %v5055_v33  ;;  %3633 = vmatpush.msra.mxu3 %v5052_v40  ;;  %v5196_v33 = vld [vmem:[%s9440_s7 + $0xb58] sm:$0xff]  ;;  %v5197_v40 = vld [vmem:[%s9440_s7 + $0xb60] sm:$0xff] }
 0x428   : > { %3612 = vmatpush.msrb.mxu0 %v5119_v41  ;;  %3653 = vmatpush.msra.mxu2 %v5116_v42  ;;  %v5158_v41 = vld [vmem:[%s9440_s7 + $0xa28] sm:$0xff]  ;;  %v5192_v42 = vld [vmem:[%s9440_s7 + $0xb38] sm:$0xff] }
 0x429   : > { %3593 = vmatpush.msra.mxu1 %v5051_v23  ;;  %3634 = vmatpush.msra.mxu3 %v5048_v2  ;;  %v5157_v23 = vld [vmem:[%s9440_s7 + $0xa20] sm:$0xff]  ;;  %v5154_v2 = vld [vmem:[%s9440_s7 + $0xa08] sm:$0xff] }
 0x42a   : > { %3613 = vmatpush.msrb.mxu0 %v5115_v43  ;;  %3654 = vmatpush.msra.mxu2 %v5112_v44  ;;  %v5191_v43 = vld [vmem:[%s9440_s7 + $0xb30] sm:$0xff]  ;;  %v5188_v44 = vld [vmem:[%s9440_s7 + $0xb18] sm:$0xff] }
 0x42b   : > { %3594 = vmatpush.msra.mxu1 %v5047_v46  ;;  %3635 = vmatpush.msra.mxu3 %v5044_v39  ;;  %v5153_v46 = vld [vmem:[%s9440_s7 + $0xa00] sm:$0xff]  ;;  %v5150_v39 = vld [vmem:[%s9440_s7 + $0x9e8] sm:$0xff] }
 0x42c   : > { %3614 = vmatpush.msrb.mxu0 %v5111_v47  ;;  %3655 = vmatpush.msra.mxu2 %v5108_v48  ;;  %v5187_v47 = vld [vmem:[%s9440_s7 + $0xb10] sm:$0xff]  ;;  %v5184_v48 = vld [vmem:[%s9440_s7 + $0xaf8] sm:$0xff] }
 0x42d   : > { %3595 = vmatpush.msra.mxu1 %v5043_v49  ;;  %3636 = vmatpush.msra.mxu3 %v5040_v9  ;;  %v5149_v49 = vld [vmem:[%s9440_s7 + $0x9e0] sm:$0xff]  ;;  %v5146_v9 = vld [vmem:[%s9440_s7 + $0x9c8] sm:$0xff] }
 0x42e   : > { %3615 = vmatpush.msrb.mxu0 %v5107_v0  ;;  %3656 = vmatpush.msra.mxu2 %v5104_v16  ;;  %v5183_v0 = vld [vmem:[%s9440_s7 + $0xaf0] sm:$0xff]  ;;  %v5180_v16 = vld [vmem:[%s9440_s7 + $0xad8] sm:$0xff] }
 0x42f   : > { %3596 = vmatpush.msra.mxu1 %v5039_v57  ;;  %3637 = vmatpush.msra.mxu3 %v5036_v6  ;;  %v5145_v57 = vld [vmem:[%s9440_s7 + $0x9c0] sm:$0xff]  ;;  %v5142_v6 = vld [vmem:[%s9440_s7 + $0x9a8] sm:$0xff] }
 0x430   : > { %3616 = vmatpush.msrb.mxu0 %v5103_v10  ;;  %3657 = vmatpush.msra.mxu2 %v5100_v56  ;;  %v5179_v10 = vld [vmem:[%s9440_s7 + $0xad0] sm:$0xff]  ;;  %v5176_v56 = vld [vmem:[%s9440_s7 + $0xab8] sm:$0xff] }
 0x431   : > { %3597 = vmatpush.msra.mxu1 %v5035_v8  ;;  %3638 = vmatpush.msra.mxu3 %v5032_v50  ;;  %v5141_v8 = vld [vmem:[%s9440_s7 + $0x9a0] sm:$0xff]  ;;  %v5138_v50 = vld [vmem:[%s9440_s7 + $0x988] sm:$0xff] }
 0x432   : > { %3617 = vmatpush.msrb.mxu0 %v5099_v58  ;;  %3658 = vmatpush.msra.mxu2 %v5096_v59  ;;  %v5175_v58 = vld [vmem:[%s9440_s7 + $0xab0] sm:$0xff]  ;;  %v5172_v59 = vld [vmem:[%s9440_s7 + $0xa98] sm:$0xff] }
 0x433   : > { %3639 = vmatmul.f32.vlgmr.msra.gmra.mxu3 %v8715_v28  ;;  %5132 = vmatmul.msk.f32.vlgmr.msra.gmra.mxu2 %vm3072_vm8, %v8624_v53 }
 0x434   : > { %3813 = vmatpush.msrb.mxu2 %v5194_v13  ;;  %3840 = vmatpush.msrb.mxu3 %v5230_v60  ;;  %v5137_v13 = vld [vmem:[%s9440_s7 + $0x980] sm:$0xff]  ;;  %v5134_v60 = vld [vmem:[%s9440_s7 + $0x968] sm:$0xff] }
 0x435   : > { %3598 = vmatpush.msra.mxu1 %v5031_v4  ;;  %3618 = vmatpush.msrb.mxu0 %v5095_v31  ;;  %v5171_v4 = vld [vmem:[%s9440_s7 + $0xa90] sm:$0xff]  ;;  %v9033_v31 = vrot.slane %v8196_v34, 3  ;;  %v5164_v34 = vld [vmem:[%s9440_s7 + $0xa58] sm:$0xff] }
 0x436   : > { %3599 = vmatmul.f32.vlgmr.msra.gmra.mxu1 %v8715_v28  ;;  %5131 = vmatmul.msk.f32.vlgmr.msrb.gmra.mxu0 %vm3072_vm8, %v8624_v53  ;;  %v5185_v53 = vld [vmem:[%s9440_s7 + $0xb00] sm:$0xff]  ;;  %v5170_v28 = vld [vmem:[%s9440_s7 + $0xa88] sm:$0xff] }
 0x437   : > { %3773 = vmatpush.msra.mxu0 %v5193_v51  ;;  %3800 = vmatpush.msrb.mxu1 %v5229_v14  ;;  %v5168_v51 = vld [vmem:[%s9440_s7 + $0xa78] sm:$0xff] }
 0x438   : > { %3814 = vmatpush.msrb.mxu2 %v5190_v24  ;;  %3841 = vmatpush.msrb.mxu3 %v5226_v15  ;;  %v5232_v14 = vld [vmem:[%s9440_s7 + $0xc78] sm:$0xff]  ;;  %v5133_v24 = vld [vmem:[%s9440_s7 + $0x960] sm:$0xff]  ;;  %v5167_v15 = vld [vmem:[%s9440_s7 + $0xa70] sm:$0xff] }
 0x439   : > { %3774 = vmatpush.msra.mxu0 %v5189_v20  ;;  %3801 = vmatpush.msrb.mxu1 %v5225_v19  ;;  %v5231_v20 = vld [vmem:[%s9440_s7 + $0xc70] sm:$0xff]  ;;  %v5228_v19 = vld [vmem:[%s9440_s7 + $0xc58] sm:$0xff] }
 0x43a   : > { %3815 = vmatpush.msrb.mxu2 %v5186_v11  ;;  %3842 = vmatpush.msrb.mxu3 %v5222_v25  ;;  %v5163_v11 = vld [vmem:[%s9440_s7 + $0xa50] sm:$0xff]  ;;  %v5160_v25 = vld [vmem:[%s9440_s7 + $0xa38] sm:$0xff] }
 0x43b   : > { %3775 = vmatpush.msra.mxu0 %v5185_v53  ;;  %3802 = vmatpush.msrb.mxu1 %v5221_v54  ;;  %v5227_v53 = vld [vmem:[%s9440_s7 + $0xc50] sm:$0xff]  ;;  %v5224_v54 = vld [vmem:[%s9440_s7 + $0xc38] sm:$0xff] }
 0x43c   : > { %3816 = vmatpush.msrb.mxu2 %v5182_v55  ;;  %3843 = vmatpush.msrb.mxu3 %v5218_v61  ;;  %v5159_v55 = vld [vmem:[%s9440_s7 + $0xa30] sm:$0xff]  ;;  %v5156_v61 = vld [vmem:[%s9440_s7 + $0xa18] sm:$0xff] }
 0x43d   : > { %3776 = vmatpush.msra.mxu0 %v5181_v5  ;;  %3803 = vmatpush.msrb.mxu1 %v5217_v52  ;;  %v5223_v5 = vld [vmem:[%s9440_s7 + $0xc30] sm:$0xff]  ;;  %v5220_v52 = vld [vmem:[%s9440_s7 + $0xc18] sm:$0xff] }
 0x43e   : > { %3817 = vmatpush.msrb.mxu2 %v5178_v12  ;;  %3844 = vmatpush.msrb.mxu3 %v5214_v17  ;;  %v5155_v12 = vld [vmem:[%s9440_s7 + $0xa10] sm:$0xff]  ;;  %v5152_v17 = vld [vmem:[%s9440_s7 + $0x9f8] sm:$0xff] }
 0x43f   : > { %3777 = vmatpush.msra.mxu0 %v5177_v22  ;;  %3804 = vmatpush.msrb.mxu1 %v5213_v3  ;;  %v5219_v22 = vld [vmem:[%s9440_s7 + $0xc10] sm:$0xff]  ;;  %v5216_v3 = vld [vmem:[%s9440_s7 + $0xbf8] sm:$0xff] }
 0x440   : > { %3818 = vmatpush.msrb.mxu2 %v5174_v18  ;;  %3845 = vmatpush.msrb.mxu3 %v5210_v62  ;;  %v5151_v18 = vld [vmem:[%s9440_s7 + $0x9f0] sm:$0xff]  ;;  %v5148_v62 = vld [vmem:[%s9440_s7 + $0x9d8] sm:$0xff] }
 0x441   : > { %3778 = vmatpush.msra.mxu0 %v5173_v26  ;;  %3805 = vmatpush.msrb.mxu1 %v5209_v27  ;;  %v5215_v26 = vld [vmem:[%s9440_s7 + $0xbf0] sm:$0xff]  ;;  %v5212_v27 = vld [vmem:[%s9440_s7 + $0xbd8] sm:$0xff] }
 0x442   : > { %3819 = vmatpush.msrb.mxu2 %v5170_v28  ;;  %3846 = vmatpush.msrb.mxu3 %v5206_v29  ;;  %v5147_v28 = vld [vmem:[%s9440_s7 + $0x9d0] sm:$0xff]  ;;  %v5144_v29 = vld [vmem:[%s9440_s7 + $0x9b8] sm:$0xff] }
 0x443   : > { %3779 = vmatpush.msra.mxu0 %v5169_v1  ;;  %3806 = vmatpush.msrb.mxu1 %v5205_v21  ;;  %v5211_v1 = vld [vmem:[%s9440_s7 + $0xbd0] sm:$0xff]  ;;  %v5208_v21 = vld [vmem:[%s9440_s7 + $0xbb8] sm:$0xff] }
 0x444   : > { %3820 = vmatpush.msrb.mxu2 %v5166_v30  ;;  %3847 = vmatpush.msrb.mxu3 %v5202_v32  ;;  %v5143_v30 = vld [vmem:[%s9440_s7 + $0x9b0] sm:$0xff]  ;;  %v5140_v32 = vld [vmem:[%s9440_s7 + $0x998] sm:$0xff] }
 0x445   : > { %3780 = vmatpush.msra.mxu0 %v5165_v35  ;;  %3807 = vmatpush.msrb.mxu1 %v5201_v63  ;;  %v5207_v35 = vld [vmem:[%s9440_s7 + $0xbb0] sm:$0xff]  ;;  %v5204_v63 = vld [vmem:[%s9440_s7 + $0xb98] sm:$0xff] }
 0x446   : > { %3821 = vmatpush.msrb.mxu2 %v5162_v36  ;;  %3848 = vmatpush.msrb.mxu3 %v5198_v7  ;;  %v5139_v36 = vld [vmem:[%s9440_s7 + $0x990] sm:$0xff]  ;;  %v5136_v7 = vld [vmem:[%s9440_s7 + $0x978] sm:$0xff] }
 0x447   : > { %5234 = vmatmul.msk.f32.vlgmr.msrb.gmra.mxu3 %vm3072_vm8, %v8942_v38  ;;  %3781 = vmatpush.msra.mxu0 %v5161_v37  ;;  %v5203_v37 = vld [vmem:[%s9440_s7 + $0xb90] sm:$0xff] }
 0x448   : > { %3893 = vmatpush.msra.mxu3 %v5196_v33  ;;  %3808 = vmatpush.msrb.mxu1 %v5197_v40  ;;  %v5200_v33 = vld [vmem:[%s9440_s7 + $0xb78] sm:$0xff]  ;;  %v5135_v40 = vld [vmem:[%s9440_s7 + $0x970] sm:$0xff] }
 0x449   : > { %3822 = vmatpush.msrb.mxu2 %v5158_v41  ;;  %5233 = vmatmul.msk.f32.vlgmr.msrb.gmra.mxu1 %vm3072_vm8, %v8942_v38  ;;  %v5199_v41 = vld [vmem:[%s9440_s7 + $0xb70] sm:$0xff] }
 0x44a   : > { %3853 = vmatpush.msra.mxu1 %v5195_v45  ;;  %3894 = vmatpush.msra.mxu3 %v5192_v42  ;;  %v3970_v45 = vld [vmem:[%s9442_s9 + $0x78] sm:$0xff]  ;;  %v3969_v42 = vld [vmem:[%s9442_s9 + $0x70] sm:$0xff] }
 0x44b   : > { %3782 = vmatpush.msra.mxu0 %v5157_v23  ;;  %3823 = vmatpush.msrb.mxu2 %v5154_v2  ;;  %v3986_v23 = vld [vmem:[%s9442_s9 + $0xf8] sm:$0xff]  ;;  %v3985_v2 = vld [vmem:[%s9442_s9 + $0xf0] sm:$0xff] }
 0x44c   : > { %3854 = vmatpush.msra.mxu1 %v5191_v43  ;;  %3895 = vmatpush.msra.mxu3 %v5188_v44  ;;  %v3967_v43 = vld [vmem:[%s9442_s9 + $0x60] sm:$0xff]  ;;  %v9172_v44 = vpop.f32.mrf.mxu1 }
 0x44d   : > { %3783 = vmatpush.msra.mxu0 %v5153_v46  ;;  %3824 = vmatpush.msrb.mxu2 %v5150_v39  ;;  %v9174_v46 = vpop.f32.mrf.mxu0  ;;  %v9176_v39 = vpop.f32.mrf.mxu3 }
 0x44e   : > { %3855 = vmatpush.msra.mxu1 %v5187_v47  ;;  %3896 = vmatpush.msra.mxu3 %v5184_v48  ;;  %v3966_v47 = vld [vmem:[%s9442_s9 + $0x58] sm:$0xff]  ;;  %v3984_v48 = vld [vmem:[%s9442_s9 + $0xe8] sm:$0xff] }
 0x44f   : > { %3784 = vmatpush.msra.mxu0 %v5149_v49  ;;  %3825 = vmatpush.msrb.mxu2 %v5146_v9  ;;  %v3965_v49 = vld [vmem:[%s9442_s9 + $0x50] sm:$0xff]  ;;  %v9187_v9 = vpop.f32.mrf.mxu2 }
 0x450   : > { %3856 = vmatpush.msra.mxu1 %v5183_v0  ;;  %3897 = vmatpush.msra.mxu3 %v5180_v16  ;;  %v3983_v0 = vld [vmem:[%s9442_s9 + $0xe0] sm:$0xff]  ;;  %v3964_v16 = vld [vmem:[%s9442_s9 + $0x48] sm:$0xff] }
 0x451   : > { %3785 = vmatpush.msra.mxu0 %v5145_v57  ;;  %3826 = vmatpush.msrb.mxu2 %v5142_v6  ;;  %v3982_v57 = vld [vmem:[%s9442_s9 + $0xd8] sm:$0xff]  ;;  %v3963_v6 = vld [vmem:[%s9442_s9 + $0x40] sm:$0xff] }
 0x452   : > { %3857 = vmatpush.msra.mxu1 %v5179_v10  ;;  %3898 = vmatpush.msra.mxu3 %v5176_v56  ;;  %v3981_v10 = vld [vmem:[%s9442_s9 + $0xd0] sm:$0xff] }
 0x453   : > { %3786 = vmatpush.msra.mxu0 %v5141_v8  ;;  %3827 = vmatpush.msrb.mxu2 %v5138_v50  ;;  %v3962_v8 = vld [vmem:[%s9442_s9 + $0x38] sm:$0xff]  ;;  %v3980_v50 = vld [vmem:[%s9442_s9 + $0xc8] sm:$0xff] }
 0x454   : > { %3858 = vmatpush.msra.mxu1 %v5175_v58  ;;  %3899 = vmatpush.msra.mxu3 %v5172_v59  ;;  %v9204_v56 = vpop.f32.mrf.mxu1  ;;  %v4002_v58 = vld [vmem:[%s9442_s9 + $0x178] sm:$0xff]  ;;  %v4001_v59 = vld [vmem:[%s9442_s9 + $0x170] sm:$0xff] }
 0x455   : > { %3787 = vmatpush.msra.mxu0 %v5137_v13  ;;  %3828 = vmatpush.msrb.mxu2 %v5134_v60  ;;  %v9218_v13 = vpop.f32.mrf.mxu0  ;;  %v3961_v60 = vld [vmem:[%s9442_s9 + $0x30] sm:$0xff] }
 0x456   : > { %3829 = vmatmul.f32.vlgmr.msrb.gmra.mxu2 %v9033_v31  ;;  %3859 = vmatpush.msra.mxu1 %v5171_v4  ;;  %v3979_v4 = vld [vmem:[%s9442_s9 + $0xc0] sm:$0xff] }
 0x457   : > { %3900 = vmatpush.msra.mxu3 %v5168_v51  ;;  %3920 = vmatpush.msra.mxu2 %v5232_v14  ;;  %v4000_v51 = vld [vmem:[%s9442_s9 + $0x168] sm:$0xff] }
 0x458   : > { %3788 = vmatpush.msra.mxu0 %v5133_v24  ;;  %3860 = vmatpush.msra.mxu1 %v5167_v15  ;;  %v3960_v14 = vld [vmem:[%s9442_s9 + $0x28] sm:$0xff]  ;;  %v3978_v24 = vld [vmem:[%s9442_s9 + $0xb8] sm:$0xff]  ;;  %v9237_v15 = vpop.f32.mrf.mxu2 }
 0x459   : > { %3789 = vmatmul.f32.vlgmr.msra.gmra.mxu0 %v9033_v31  ;;  %3901 = vmatpush.msra.mxu3 %v5164_v34 }
 0x45a   : > { %3880 = vmatpush.msrb.mxu0 %v5231_v20  ;;  %3921 = vmatpush.msra.mxu2 %v5228_v19  ;;  %v3959_v19 = vld [vmem:[%s9442_s9 + $0x20] sm:$0xff] }
 0x45b   : > { %3861 = vmatpush.msra.mxu1 %v5163_v11  ;;  %3902 = vmatpush.msra.mxu3 %v5160_v25  ;;  %v3977_v11 = vld [vmem:[%s9442_s9 + $0xb0] sm:$0xff]  ;;  %v3999_v25 = vld [vmem:[%s9442_s9 + $0x160] sm:$0xff] }
 0x45c   : > { %3881 = vmatpush.msrb.mxu0 %v5227_v53  ;;  %3922 = vmatpush.msra.mxu2 %v5224_v54  ;;  %v9239_v34 = vpop.f32.mrf.mxu1  ;;  %v4017_v53 = vld [vmem:[%s9442_s9 + $0x1f0] sm:$0xf]  ;;  %v3958_v54 = vld [vmem:[%s9442_s9 + $0x18] sm:$0xff] }
 0x45d   : > { %3862 = vmatpush.msra.mxu1 %v5159_v55  ;;  %3903 = vmatpush.msra.mxu3 %v5156_v61  ;;  %v3976_v55 = vld [vmem:[%s9442_s9 + $0xa8] sm:$0xff] }
 0x45e   : > { %3882 = vmatpush.msrb.mxu0 %v5223_v5  ;;  %3923 = vmatpush.msra.mxu2 %v5220_v52  ;;  %v3998_v52 = vld [vmem:[%s9442_s9 + $0x158] sm:$0xff] }
 0x45f   : > { %3863 = vmatpush.msra.mxu1 %v5155_v12  ;;  %3904 = vmatpush.msra.mxu3 %v5152_v17  ;;  %v4016_v12 = vld [vmem:[%s9442_s9 + $0x1e8] sm:$0xff]  ;;  %v3957_v17 = vld [vmem:[%s9442_s9 + $0x10] sm:$0xff] }
 0x460   : > { %3883 = vmatpush.msrb.mxu0 %v5219_v22  ;;  %3924 = vmatpush.msra.mxu2 %v5216_v3  ;;  %v3975_v22 = vld [vmem:[%s9442_s9 + $0xa0] sm:$0xff]  ;;  %v3997_v3 = vld [vmem:[%s9442_s9 + $0x150] sm:$0xff] }
 0x461   : > { %3864 = vmatpush.msra.mxu1 %v5151_v18  ;;  %3905 = vmatpush.msra.mxu3 %v5148_v62  ;;  %v4015_v18 = vld [vmem:[%s9442_s9 + $0x1e0] sm:$0xff]  ;;  %v3956_v62 = vld [vmem:[%s9442_s9 + $0x8] sm:$0xff] }
 0x462   : > { %3884 = vmatpush.msrb.mxu0 %v5215_v26  ;;  %3925 = vmatpush.msra.mxu2 %v5212_v27  ;;  %v3974_v26 = vld [vmem:[%s9442_s9 + $0x98] sm:$0xff]  ;;  %v3996_v27 = vld [vmem:[%s9442_s9 + $0x148] sm:$0xff] }
 0x463   : > { %3865 = vmatpush.msra.mxu1 %v5147_v28  ;;  %3906 = vmatpush.msra.mxu3 %v5144_v29  ;;  %v4014_v28 = vld [vmem:[%s9442_s9 + $0x1d8] sm:$0xff] }
 0x464   : > { %3885 = vmatpush.msrb.mxu0 %v5211_v1  ;;  %3926 = vmatpush.msra.mxu2 %v5208_v21  ;;  %v3955_v21 = vld [vmem:[%s9442_s9] sm:$0xff] }
 0x465   : > { %3866 = vmatpush.msra.mxu1 %v5143_v30  ;;  %3907 = vmatpush.msra.mxu3 %v5140_v32  ;;  %v3973_v30 = vld [vmem:[%s9442_s9 + $0x90] sm:$0xff]  ;;  %v3995_v32 = vld [vmem:[%s9442_s9 + $0x140] sm:$0xff] }
 0x466   : > { %3886 = vmatpush.msrb.mxu0 %v5207_v35  ;;  %3927 = vmatpush.msra.mxu2 %v5204_v63  ;;  %v4013_v35 = vld [vmem:[%s9442_s9 + $0x1d0] sm:$0xff]  ;;  %v3972_v63 = vld [vmem:[%s9442_s9 + $0x88] sm:$0xff] }
 0x467   : > { %3867 = vmatpush.msra.mxu1 %v5139_v36  ;;  %3908 = vmatpush.msra.mxu3 %v5136_v7  ;;  %v3994_v36 = vld [vmem:[%s9442_s9 + $0x138] sm:$0xff]  ;;  %v4012_v7 = vld [vmem:[%s9442_s9 + $0x1c8] sm:$0xff] }
 0x468   : > { %3887 = vmatpush.msrb.mxu0 %v5203_v37  ;;  %3928 = vmatpush.msra.mxu2 %v5200_v33 }
 0x469   : > { %3909 = vmatmul.f32.vlgmr.msra.gmra.mxu3 %v9033_v31  ;;  %5236 = vmatmul.msk.f32.vlgmr.msra.gmra.mxu2 %vm3072_vm8, %v8942_v38 }
 0x46a   : > { %3868 = vmatpush.msra.mxu1 %v5135_v40  ;;  %3888 = vmatpush.msrb.mxu0 %v5199_v41  ;;  %v9241_v20 = vpop.f32.mrf.mxu0  ;;  %v3971_v40 = vld [vmem:[%s9442_s9 + $0x80] sm:$0xff]  ;;  %v3993_v41 = vld [vmem:[%s9442_s9 + $0x130] sm:$0xff] }
 0x46b   : > { %3869 = vmatmul.f32.vlgmr.msra.gmra.mxu1 %v9033_v31  ;;  %5235 = vmatmul.msk.f32.vlgmr.msrb.gmra.mxu0 %vm3072_vm8, %v8942_v38  ;;  %v3968_v38 = vld [vmem:[%s9442_s9 + $0x68] sm:$0xff]  ;;  %v9226_v31 = vpop.f32.mrf.mxu3 }
 0x46c   : > { %4026 = vmatpush.msra.mxu0 %v3970_v45  ;;  %4046 = vmatpush.msrb.mxu1 %v3986_v23  ;;  %v4011_v45 = vld [vmem:[%s9442_s9 + $0x1c0] sm:$0xff]  ;;  %v4010_v23 = vld [vmem:[%s9442_s9 + $0x1b8] sm:$0xff] }
 0x46d   : > { %4066 = vmatpush.msrb.mxu2 %v4002_v58  ;;  %5237 = vmatpush.msk.msrb.mxu3 %vm424_vm0, %v4017_v53  ;;  %v9264_v5 = vpop.f32.mrf.mxu2 }
 0x46e   : > { %4027 = vmatpush.msra.mxu0 %v3969_v42  ;;  %4047 = vmatpush.msrb.mxu1 %v3985_v2  ;;  %v3992_v42 = vld [vmem:[%s9442_s9 + $0x128] sm:$0xff] }
 0x46f   : > { %4067 = vmatpush.msrb.mxu2 %v4001_v59  ;;  %4088 = vmatpush.msrb.mxu3 %v4016_v12  ;;  %v3113_v59 = vadd.f32 %v9172_v44, %v9176_v39  ;;  %v3153_v44 = vadd.f32 %v9174_v46, %v9187_v9 }
 0x470   : > { %4028 = vmatpush.msra.mxu0 %v3968_v38  ;;  %4048 = vmatpush.msrb.mxu1 %v3984_v48 }
 0x471   : > { %4068 = vmatpush.msrb.mxu2 %v4000_v51  ;;  %4089 = vmatpush.msrb.mxu3 %v4015_v18  ;;  %v3255_v51 = vadd.f32 %v9241_v20, %v3113_v59  ;;  %v3937_v20 = vld [vmem:[%s9441_s8] sm:$0xf] }
 0x472   : > { %4029 = vmatpush.msra.mxu0 %v3967_v43  ;;  %4049 = vmatpush.msrb.mxu1 %v3983_v0  ;;  %v3991_v43 = vld [vmem:[%s9442_s9 + $0x120] sm:$0xff]  ;;  %v3990_v0 = vld [vmem:[%s9442_s9 + $0x118] sm:$0xff]  ;;  %v3939_v9 = vperm.slane %v3937_v20, 0 }
 0x473   : > { %4069 = vmatpush.msrb.mxu2 %v3999_v25  ;;  %v9262_v61 = vpop.f32.mrf.mxu3  ;;  %4090 = vmatpush.msrb.mxu3 %v4014_v28  ;;  %v3295_v25 = vadd.f32 %v9264_v5, %v3153_v44  ;;  %v3275_v53 = vadd.f32 %v9239_v34, %v3255_v51 }
 0x474   : > { %4030 = vmatpush.msra.mxu0 %v3966_v47  ;;  %4050 = vmatpush.msrb.mxu1 %v3982_v57  ;;  %v4009_v47 = vld [vmem:[%s9442_s9 + $0x1b0] sm:$0xff] }
 0x475   : > { %4070 = vmatpush.msrb.mxu2 %v3998_v52  ;;  %4091 = vmatpush.msrb.mxu3 %v4013_v35  ;;  %v3989_v57 = vld [vmem:[%s9442_s9 + $0x110] sm:$0xff] }
 0x476   : > { %4031 = vmatpush.msra.mxu0 %v3965_v49  ;;  %4051 = vmatpush.msrb.mxu1 %v3981_v10  ;;  %v3988_v10 = vld [vmem:[%s9442_s9 + $0x108] sm:$0xff] }
 0x477   : > { %4071 = vmatpush.msrb.mxu2 %v3997_v3  ;;  %4092 = vmatpush.msrb.mxu3 %v4012_v7 }
 0x478   : > { %4032 = vmatpush.msra.mxu0 %v3964_v16  ;;  %4052 = vmatpush.msrb.mxu1 %v3980_v50  ;;  %v4008_v16 = vld [vmem:[%s9442_s9 + $0x1a8] sm:$0xff] }
 0x479   : > { %4072 = vmatpush.msrb.mxu2 %v3996_v27  ;;  %4093 = vmatpush.msrb.mxu3 %v4011_v45 }
 0x47a   : > { %4033 = vmatpush.msra.mxu0 %v3963_v6  ;;  %4053 = vmatpush.msrb.mxu1 %v3979_v4  ;;  %v4007_v6 = vld [vmem:[%s9442_s9 + $0x1a0] sm:$0xff]  ;;  %v4005_v4 = vld [vmem:[%s9442_s9 + $0x190] sm:$0xff] }
 0x47b   : > { %4073 = vmatpush.msrb.mxu2 %v3995_v32  ;;  %4094 = vmatpush.msrb.mxu3 %v4010_v23  ;;  %v3193_v32 = vadd.f32 %v9218_v13, %v9204_v56 }
 0x47c   : > { %4034 = vmatpush.msra.mxu0 %v3962_v8  ;;  %4054 = vmatpush.msrb.mxu1 %v3978_v24  ;;  %v4006_v8 = vld [vmem:[%s9442_s9 + $0x198] sm:$0xff] }
 0x47d   : > { %v9296_v29 = vpop.f32.mrf.mxu1  ;;  %v9298_v1 = vpop.f32.mrf.mxu0  ;;  %4074 = vmatpush.msrb.mxu2 %v3994_v36  ;;  %4095 = vmatpush.msrb.mxu3 %v4009_v47 }
 0x47e   : > { %4035 = vmatpush.msra.mxu0 %v3961_v60  ;;  %4055 = vmatpush.msrb.mxu1 %v3977_v11  ;;  %v3987_v60 = vld [vmem:[%s9442_s9 + $0x100] sm:$0xff]  ;;  %v3335_v35 = vadd.f32 %v9296_v29, %v3193_v32 }
 0x47f   : > { %4075 = vmatpush.msrb.mxu2 %v3993_v41  ;;  %4096 = vmatpush.msrb.mxu3 %v4008_v16  ;;  %v4003_v11 = vld [vmem:[%s9442_s9 + $0x180] sm:$0xff] }
 0x480   : > { %4036 = vmatpush.msra.mxu0 %v3960_v14  ;;  %4056 = vmatpush.msrb.mxu1 %v3976_v55  ;;  %v9321_v37 = vpop.f32.mrf.mxu3  ;;  %v9323_v33 = vpop.f32.mrf.mxu2  ;;  %v3355_v36 = vadd.f32 %v9298_v1, %v3335_v35 }
 0x481   : > { %4076 = vmatpush.msrb.mxu2 %v3992_v42  ;;  %4097 = vmatpush.msrb.mxu3 %v4007_v6 }
 0x482   : > { %4037 = vmatpush.msra.mxu0 %v3959_v19  ;;  %4057 = vmatpush.msrb.mxu1 %v3975_v22  ;;  %v4004_v19 = vld [vmem:[%s9442_s9 + $0x188] sm:$0xff] }
 0x483   : > { %4077 = vmatpush.msrb.mxu2 %v3991_v43  ;;  %4098 = vmatpush.msrb.mxu3 %v4006_v8 }
 0x484   : > { %4038 = vmatpush.msra.mxu0 %v3958_v54  ;;  %4058 = vmatpush.msrb.mxu1 %v3974_v26  ;;  %v3940_v26 = vperm.slane %v3937_v20, 1 }
 0x485   : > { %4078 = vmatpush.msrb.mxu2 %v3990_v0  ;;  %4099 = vmatpush.msrb.mxu3 %v4005_v4  ;;  %v4018_v0 = vld [vmem:[%s9443_s10] sm:$0x1] }
 0x486   : > { %4039 = vmatpush.msra.mxu0 %v3957_v17  ;;  %4059 = vmatpush.msrb.mxu1 %v3973_v30  ;;  %v3315_v17 = vadd.f32 %v9262_v61, %v3295_v25  ;;  %v3233_v61 = vadd.f32 %v9237_v15, %v9226_v31  ;;  %v3942_v31 = vperm.slane %v3937_v20, 3 }
 0x487   : > { %4079 = vmatpush.msrb.mxu2 %v3989_v57  ;;  %4100 = vmatpush.msrb.mxu3 %v4004_v19 }
 0x488   : > { %4040 = vmatpush.msra.mxu0 %v3956_v62  ;;  %4060 = vmatpush.msrb.mxu1 %v3972_v63  ;;  %v3375_v7 = vadd.f32 %v9321_v37, %v3233_v61 }
 0x489   : > { %4080 = vmatpush.msrb.mxu2 %v3988_v10  ;;  %4101 = vmatpush.msrb.mxu3 %v4003_v11 }
 0x48a   : > { %4041 = vmatpush.msra.mxu0 %v3955_v21  ;;  %4061 = vmatpush.msrb.mxu1 %v3971_v40 }
 0x48b   : > { %4081 = vmatpush.msrb.mxu2 %v3987_v60 }
 0x490   : > { %v3540_v2 = vpop.f32.mrf.mxu1 }
 0x494   : > { %v3580_v48 = vpop.f32.mrf.mxu3 }
 0x4a0   : > { %v3520_v38 = vpop.f32.mrf.mxu0 }
 0x4a1   : > { %v3541_v39 = vadd.f32 %v3540_v2, %v3520_v38  ;;  %v3941_v2 = vperm.slane %v3937_v20, 2  ;;  %v3395_v38 = vadd.f32 %v9323_v33, %v3375_v7 }
 0x4a3   : > { %v3560_v49 = vpop.f32.mrf.mxu2  ;;  %v3663_v12 = vadd.f32 %v3541_v39, %v3275_v53 }
 0x4a4   : > { %v3581_v54 = vadd.f32 %v3580_v48, %v3560_v49 }
 0x4a6   : > { %v3664_v62 = vadd.f32 %v3581_v54, %v3315_v17 }
 0x4b3   : > { %v3600_v50 = vpop.f32.mrf.mxu1  ;;  %v3620_v58 = vpop.f32.mrf.mxu0 }
 0x4b4   : > { %v3621_v63 = vadd.f32 %v3620_v58, %v3600_v50 }
 0x4b6   : > { %v3640_v14 = vpop.f32.mrf.mxu3  ;;  %v3660_v24 = vpop.f32.mrf.mxu2  ;;  %v3665_v45 = vadd.f32 %v3621_v63, %v3355_v36 }
 0x4b7   : > { %v3661_v42 = vadd.f32 %v3660_v24, %v3640_v14 }
 0x4b9   : > { %v3666_v29 = vadd.f32 %v3661_v42, %v3395_v38 }
 0x4c6   : > { %v3810_v55 = vpop.f32.mrf.mxu1 }
 0x4ca   : > { %v3850_v22 = vpop.f32.mrf.mxu3 }
 0x4d6   : > { %v3790_v52 = vpop.f32.mrf.mxu0 }
 0x4d7   : > { %v3811_v46 = vadd.f32 %v3810_v55, %v3790_v52 }
 0x4d9   : > { %v3933_v3 = vadd.f32 %v3811_v46, %v3663_v12  ;;  %v3830_v18 = vpop.f32.mrf.mxu2 }
 0x4da   : > { %v3851_v5 = vadd.f32 %v3850_v22, %v3830_v18 }
 0x4db   : > { %v3947_v27 = vadd.f32 %v3939_v9, %v3933_v3 }
 0x4dc   : > { %v3934_v28 = vadd.f32 %v3851_v5, %v3664_v62 }
 0x4dd   : > { %v3951_v21 = vmax.f32 %v3947_v27, 0.0 }
 0x4de   : > { %v3948_v30 = vadd.f32 %v3940_v26, %v3934_v28 }
 0x4df   : > { %4042 = vmatmul.f32.vlgmr.msra.gmra.mxu0 %v3951_v21 }
 0x4e0   : > { %v3952_v34 = vmax.f32 %v3948_v30, 0.0 }
 0x4e2   : > { %4062 = vmatmul.f32.vlgmr.msrb.gmra.mxu1 %v3952_v34 }
 0x4e8   : > { %v3870_v40 = vpop.f32.mrf.mxu1  ;;  %v3890_v41 = vpop.f32.mrf.mxu0 }
 0x4e9   : > { %v3891_v23 = vadd.f32 %v3890_v41, %v3870_v40 }
 0x4eb   : > { %v3935_v56 = vadd.f32 %v3891_v23, %v3665_v45 }
 0x4ec   : > { %v3910_v13 = vpop.f32.mrf.mxu3  ;;  %v3930_v43 = vpop.f32.mrf.mxu2 }
 0x4ed   : > { %v3949_v47 = vadd.f32 %v3941_v2, %v3935_v56  ;;  %v3931_v48 = vadd.f32 %v3930_v43, %v3910_v13 }
 0x4ef   : > { %v3953_v15 = vmax.f32 %v3949_v47, 0.0  ;;  %v3936_v49 = vadd.f32 %v3931_v48, %v3666_v29 }
 0x4f1   : > { %v3950_v1 = vadd.f32 %v3942_v31, %v3936_v49  ;;  %4082 = vmatmul.f32.vlgmr.msrb.gmra.mxu2 %v3953_v15 }
 0x4f3   : > { %v3954_v37 = vmax.f32 %v3950_v1, 0.0 }
 0x4f5   : > { %5238 = vmatmul.msk.f32.vlgmr.msrb.gmra.mxu3 %vm4019_vm9, %v3954_v37 }
 0x55c   : > { %v4043_v16 = vpop.f32.mrf.mxu0 }
 0x55d   : > { %v4044_v57 = vadd.f32 %v4043_v16, %v4018_v0 }
 0x55f   : > { %v4063_v33 = vpop.f32.mrf.mxu1 }
 0x560   : > { %v4064_v10 = vadd.f32 %v4063_v33, %v4044_v57 }
 0x574   : > { %v4083_v6 = vpop.f32.mrf.mxu2 }
 0x575   : > { %v4084_v8 = vadd.f32 %v4083_v6, %v4064_v10 }
 0x578   : > { %v4103_v50 = vpop.f32.mrf.mxu3 }
 0x579   : > { %v4104_v58 = vadd.f32 %v4103_v50, %v4084_v8 }
 0x57b   : > { %v4107_v59 = vsel %vm4106_vm10, %v4104_v58, -inf }
 0x57c   : > { %4108 = vmax.xlane.f32.xlu0 %v4107_v59 }
 0x5ef   : > { %v4109_v60 = vpop.xlane.xlu0 %4108 }
 0x5f0   : > { %v4110_v4 = vsub.f32 %v4104_v58, %v4109_v60 }
 0x5f2   : > { %v4111_v51 = vmul.f32 1.442695, %v4110_v4 }
 0x5f4   : > { %5285 = vpow2.f32 %v4111_v51 }
 0x5fa   : > { %v5286_v14 = vpop.eup %5285 }
 0x5fb   : > { %v4113_v24 = vsel %vm4106_vm10, %v5286_v14, 0.0 }
 0x5fc   : > { %4114 = vadd.xlane.f32.xlu0 %v4113_v24 }
 0x66f   : > { %v4115_v19 = vpop.xlane.xlu0 %4114 }
 0x670   : > { %5287 = vlog2.f32 %v4115_v19 }
 0x676   : > { %v5288_v44 = vpop.eup %5287 }
 0x677   : > { %v4117_v39 = vmul.f32 0.6931472, %v5288_v44 }
 0x679   : > { %v4118_v11 = vsub.f32 %v4110_v4, %v4117_v39 }
 0x67b   : > { %4119 = vst.msk [vmem:[%s378_s25] sm:$0x1] %vm4106_vm10, %v4118_v11 }
 0x67c   : > { %5316 = shalt.err (!%p5313_p3)
}
 0x67d   : > { %5246 = dma.vmem_to_hbm [thread:$0]  (%p5451_p5), %s4132_s29, 16, %s4134_s30, %s4121_s26  }
 0x67e PF: > { %p5252_p4 = scmp.ge.s32.totalorder %s5351_s20, 2  ;;  %s4145_s15 = sand.u32 1, %s5339_s17  }
 0x67f   : > { %s4146_s25 = scalar_lea.sflag [#allocation3], %s4145_s15 }
 0x680   : > { %p5249_p7 = pnand %p5252_p4, %p5455_p6 }
 0x682   : > { %p5250_p8 = pneg %p5249_p7 }
 0x684   : > { %5334 = dma.done.wait (%p5250_p8), %s4146_s25, 16  }
 0x685   : > { %5336 = vsyncadd (%p5250_p8), %s4146_s25, 4294967280  ;;  %s9460_s13 = sld [smem:[#allocation5_spill]]  ;;  %p21_p9 = scmp.ge.s32.totalorder %s5438_s23, 4  }
 0x686   : > { %s9461_s17 = smov %s5343_s18  ;;  %s9462_s18 = smov %s5347_s19 }
 0x687   : > { %s9464_s20 = smov %s5438_s23  ;;  %23 = sbr.rel (!%p21_p9) target bundleno = 3 (0x3), region = 122 }
 0x68b   : > { %s9463_s19 = smov %s9460_s13 }
 0x68c   :  { %4151 = vsyncpa [#allocation3], 1 }
 0x68d   :  { %4153 = vsyncpa [#allocation3 + $0x1], 1 }

</bundles_post_ra>
